<compile_context>
chip_gen: v7x
topology: tpu7x:2x2x1
jax: 0.10.0
libtpu: 0.0.40
codegen_flags: <defaults>
</compile_context>

<pallas_src>
import functools

import jax
import jax.numpy as jnp
import numpy as np
from jax.experimental import pallas as pl
from jax.experimental.pallas import tpu as pltpu


# ----------------------------- Pallas kernel --------------------------------
def _basic_block_kernel(x_ref, w1_ref, s1_ref, b1_ref, w2_ref, s2_ref, b2_ref,
                        out_ref, xpad_ref, h1pad_ref,
                        *, stride, has_proj, big_k1, big_k2):
    _, H, W, Cin = x_ref.shape
    Cout = s2_ref.shape[-1]
    n1 = s1_ref.shape[-1]            # Cout, or 2*Cout when the projection is fused
    s = stride
    Ho = (H - 1) // s + 1
    Wo = (W - 1) // s + 1
    M = Ho * Wo

    def taps(src, ho, wo, ss):
        # Nine (ho, wo, C) windows, ky-major / kx-minor (matches weight layout).
        return [src[ky:ky + ss * (ho - 1) + 1:ss, kx:kx + ss * (wo - 1) + 1:ss, :]
                for ky in range(3) for kx in range(3)]

    # ---- 1-pixel halo for conv1, built in VMEM (no HBM pad round trip) ------
    # Border is re-zeroed every step (cheap, and megacore-safe for scratch).
    xpad_ref[...] = jnp.zeros_like(xpad_ref)
    xpad_ref[pl.ds(1, H), pl.ds(1, W), :] = x_ref[0].astype(jnp.float32)
    xp = xpad_ref[...].astype(jnp.bfloat16)          # (H+2, W+2, Cin)

    # ---- conv1 (3x3 / stride s / pad 1)  [+ fused 1x1 stride-s projection] --
    if big_k1:
        # 128-aligned Cin: one big-K im2col matmul (lane concat is tile-aligned).
        p1 = jnp.concatenate(taps(xp, Ho, Wo, s), axis=-1).reshape(M, 9 * Cin)
        a1 = jnp.dot(p1, w1_ref[...], preferred_element_type=jnp.float32)
    else:
        # Unaligned / small Cin: 9 accumulating MXU matmuls, no lane-axis concat.
        a1 = jnp.zeros((M, n1), jnp.float32)
        for t, tp in enumerate(taps(xp, Ho, Wo, s)):
            a1 = a1 + jnp.dot(tp.reshape(M, Cin), w1_ref[t],
                              preferred_element_type=jnp.float32)

    a1 = a1 * s1_ref[...] + b1_ref[...]               # folded BN1 (+ BNsc) in f32
    if has_proj:
        h1 = jnp.maximum(a1[:, :Cout], 0.0)           # BN1 + ReLU
        sc = a1[:, Cout:]                             # projection shortcut (post-BN)
    else:
        h1 = jnp.maximum(a1, 0.0)
        # Identity shortcut (stride == 1 and Cin == Cout): no matmul at all.
        sc = x_ref[0].reshape(M, Cout).astype(jnp.float32)

    # ---- conv2 (3x3 / stride 1 / pad 1) --------------------------------------
    h1pad_ref[...] = jnp.zeros_like(h1pad_ref)
    h1pad_ref[pl.ds(1, Ho), pl.ds(1, Wo), :] = h1.reshape(Ho, Wo, Cout)
    h1p = h1pad_ref[...].astype(jnp.bfloat16)         # (Ho+2, Wo+2, Cout)

    if big_k2:
        p2 = jnp.concatenate(taps(h1p, Ho, Wo, 1), axis=-1).reshape(M, 9 * Cout)
        y = jnp.dot(p2, w2_ref[...], preferred_element_type=jnp.float32)
    else:
        y = jnp.zeros((M, Cout), jnp.float32)
        for t, tp in enumerate(taps(h1p, Ho, Wo, 1)):
            y = y + jnp.dot(tp.reshape(M, Cout), w2_ref[t],
                            preferred_element_type=jnp.float32)

    y = y * s2_ref[...] + b2_ref[...]                  # folded BN2 in f32

    # Residual add + ReLU, bf16 write-back in the natural (Ho*Wo, Cout) layout.
    out_ref[0] = jnp.maximum(y + sc, 0.0).astype(out_ref.dtype)


# ------------------------------ JAX wrapper ----------------------------------
def _fold_bn(gamma, beta, mean, var, eps=1e-5):
    scale = gamma / jnp.sqrt(var + eps)
    bias = beta - mean * scale
    return scale.astype(jnp.float32), bias.astype(jnp.float32)


def basic_block_forward_nhwc(x_nhwc, params, stride):
    """BasicBlock forward on NHWC activations; returns NHWC bf16."""
    x = x_nhwc.astype(jnp.bfloat16)
    N, H, W, Cin = x.shape
    Cout = params["w1"].shape[0]
    s = stride
    Ho = (H - 1) // s + 1
    Wo = (W - 1) // s + 1
    has_proj = (s != 1) or (Cin != Cout)
    big_k1 = (Cin % 128 == 0)
    big_k2 = (Cout % 128 == 0)

    # Conv weights -> per-tap (9, Cin, *) layout (ky-major, kx-minor).
    w1 = jnp.transpose(params["w1"], (2, 3, 1, 0)).reshape(9, Cin, Cout)
    w2 = jnp.transpose(params["w2"], (2, 3, 1, 0)).reshape(9, Cout, Cout)
    s1, b1 = _fold_bn(*params["bn1"])
    s2, b2 = _fold_bn(*params["bn2"])

    if has_proj:
        # Fuse the 1x1 / stride-s projection into conv1: its weight occupies the
        # extra output columns of the centre tap (ky = kx = 1).
        wsc = jnp.transpose(params["wsc"][:, :, 0, 0], (1, 0))          # (Cin, Cout)
        ssc, bsc = _fold_bn(*params["bnsc"])
        proj = jnp.zeros((9, Cin, Cout), w1.dtype).at[4].set(wsc)
        w1 = jnp.concatenate([w1, proj], axis=-1)                       # (9, Cin, 2*Cout)
        s1 = jnp.concatenate([s1, ssc])
        b1 = jnp.concatenate([b1, bsc])
    n1 = w1.shape[-1]

    w1 = w1.astype(jnp.bfloat16)
    w2 = w2.astype(jnp.bfloat16)
    if big_k1:
        w1 = w1.reshape(9 * Cin, n1)        # single big-K im2col weight
    if big_k2:
        w2 = w2.reshape(9 * Cout, Cout)
    s1 = s1.reshape(1, n1)
    b1 = b1.reshape(1, n1)
    s2 = s2.reshape(1, Cout)
    b2 = b2.reshape(1, Cout)

    def full(arr):
        nd = arr.ndim
        return pl.BlockSpec(arr.shape, lambda n, _nd=nd: (0,) * _nd)

    in_specs = [
        pl.BlockSpec((1, H, W, Cin), lambda n: (n, 0, 0, 0)),   # unpadded activation
        full(w1), full(s1), full(b1),
        full(w2), full(s2), full(b2),
    ]

    flops = 2 * N * Ho * Wo * (9 * Cin * n1 + 9 * Cout * Cout)
    bytes_accessed = (x.size + w1.size + w2.size + N * Ho * Wo * Cout) * 2

    kernel = functools.partial(_basic_block_kernel, stride=s, has_proj=has_proj,
                               big_k1=big_k1, big_k2=big_k2)

    out = pl.pallas_call(
        kernel,
        out_shape=jax.ShapeDtypeStruct((N, Ho * Wo, Cout), jnp.bfloat16),
        grid_spec=pltpu.PrefetchScalarGridSpec(
            num_scalar_prefetch=0,
            grid=(N,),
            in_specs=in_specs,
            out_specs=pl.BlockSpec((1, Ho * Wo, Cout), lambda n: (n, 0, 0)),
            scratch_shapes=[
                pltpu.VMEM((H + 2, W + 2, Cin), jnp.float32),     # padded x halo
                pltpu.VMEM((Ho + 2, Wo + 2, Cout), jnp.float32),  # padded h1 halo
            ]),
        compiler_params=pltpu.CompilerParams(
            dimension_semantics=("parallel",),
            vmem_limit_bytes=32 * 1024 * 1024),
        cost_estimate=pl.CostEstimate(
            flops=flops, transcendentals=0, bytes_accessed=bytes_accessed),
    )(x, w1, s1, b1, w2, s2, b2)

    return out.reshape(N, Ho, Wo, Cout)


def basic_block_forward(x_nchw, params, stride):
    """PyTorch-convention wrapper (NCHW in / NCHW out). Chained blocks should
    use basic_block_forward_nhwc directly to avoid per-block transposes."""
    x = jnp.transpose(x_nchw, (0, 2, 3, 1))
    out = basic_block_forward_nhwc(x, params, stride)
    return jnp.transpose(out, (0, 3, 1, 2))


# --------------------------- pure-JAX reference ------------------------------
def _conv_ref(x_nhwc, w_hwio, stride, padding):
    return jax.lax.conv_general_dilated(
        x_nhwc, w_hwio, (stride, stride), padding,
        dimension_numbers=("NHWC", "HWIO", "NHWC"),
        preferred_element_type=jnp.float32)


def basic_block_reference(x_nchw, params, stride):
    # Mirrors the kernel's bf16 storage / f32 accumulation for a tight compare.
    x = jnp.transpose(x_nchw, (0, 2, 3, 1)).astype(jnp.bfloat16)
    Cin = x.shape[-1]
    Cout = params["w1"].shape[0]
    w1 = jnp.transpose(params["w1"], (2, 3, 1, 0)).astype(jnp.bfloat16)   # HWIO
    w2 = jnp.transpose(params["w2"], (2, 3, 1, 0)).astype(jnp.bfloat16)
    s1, b1 = _fold_bn(*params["bn1"])
    s2, b2 = _fold_bn(*params["bn2"])

    h = _conv_ref(x, w1, stride, [(1, 1), (1, 1)]) * s1 + b1
    h = jnp.maximum(h, 0.0).astype(jnp.bfloat16)
    h = _conv_ref(h, w2, 1, [(1, 1), (1, 1)]) * s2 + b2

    if stride != 1 or Cin != Cout:
        wsc = jnp.transpose(params["wsc"], (2, 3, 1, 0)).astype(jnp.bfloat16)
        ssc, bsc = _fold_bn(*params["bnsc"])
        sc = _conv_ref(x, wsc, stride, [(0, 0), (0, 0)]) * ssc + bsc
    else:
        sc = x.astype(jnp.float32)
    out = jnp.maximum(h + sc, 0.0).astype(jnp.bfloat16)
    return jnp.transpose(out, (0, 3, 1, 2))


# ---------------------------------- main --------------------------------------
if __name__ == "__main__":
    N, Cin, H, W = 2, 4, 16, 16
    Cout, stride = 8, 1          # Cin != Cout -> exercises the fused 1x1 shortcut

    key = jax.random.PRNGKey(0)
    ks = jax.random.split(key, 8)

    def bn_params(k, c):
        k1, k2, k3, k4 = jax.random.split(k, 4)
        gamma = jax.random.uniform(k1, (c,), jnp.float32, 0.5, 1.5)
        beta = 0.1 * jax.random.normal(k2, (c,), jnp.float32)
        mean = 0.1 * jax.random.normal(k3, (c,), jnp.float32)
        var = jax.random.uniform(k4, (c,), jnp.float32, 0.5, 1.5)
        return gamma, beta, mean, var

    params = {
        "w1": 0.1 * jax.random.normal(ks[0], (Cout, Cin, 3, 3), jnp.float32),
        "bn1": bn_params(ks[1], Cout),
        "w2": 0.1 * jax.random.normal(ks[2], (Cout, Cout, 3, 3), jnp.float32),
        "bn2": bn_params(ks[3], Cout),
        "wsc": 0.1 * jax.random.normal(ks[4], (Cout, Cin, 1, 1), jnp.float32),
        "bnsc": bn_params(ks[5], Cout),
    }

    x = jax.random.normal(ks[6], (N, Cin, H, W), jnp.float32)

    out = jax.block_until_ready(basic_block_forward(x, params, stride))
    ref = jax.block_until_ready(basic_block_reference(x, params, stride))

    assert out.shape == ref.shape, (out.shape, ref.shape)
    np.testing.assert_allclose(np.asarray(out.astype(jnp.float32)),
                               np.asarray(ref.astype(jnp.float32)),
                               rtol=2e-2, atol=2e-2)

    print("KERNEL_OK")
</pallas_src>

<mosaic_0001>
module attributes {stable_mosaic.version = 11 : i64} {
  func.func @_basic_block_kernel(%arg0: i32, %arg1: memref<1x16x16x4xbf16, #tpu.memory_space<vmem>>, %arg2: memref<9x4x16xbf16, #tpu.memory_space<vmem>>, %arg3: memref<1x16xf32, #tpu.memory_space<vmem>>, %arg4: memref<1x16xf32, #tpu.memory_space<vmem>>, %arg5: memref<9x8x8xbf16, #tpu.memory_space<vmem>>, %arg6: memref<1x8xf32, #tpu.memory_space<vmem>>, %arg7: memref<1x8xf32, #tpu.memory_space<vmem>>, %arg8: memref<1x256x8xbf16, #tpu.memory_space<vmem>>, %arg9: memref<18x18x4xf32, #tpu.memory_space<vmem>>, %arg10: memref<18x18x8xf32, #tpu.memory_space<vmem>>) attributes {dimension_semantics = [#tpu.dimension_semantics<parallel>], iteration_bounds = array<i64: 2>, scalar_prefetch = 0 : i64, scratch_operands = 2 : i64, tpu.core_type = #tpu.core_type<tc>, window_params = [{transform_indices = @transform_0, window_bounds = array<i64: 1, 16, 16, 4>}, {pipeline_mode = #tpu.pipeline_mode<synchronous>, transform_indices = @transform_1, window_bounds = array<i64: 9, 4, 16>}, {pipeline_mode = #tpu.pipeline_mode<synchronous>, transform_indices = @transform_2, window_bounds = array<i64: 1, 16>}, {pipeline_mode = #tpu.pipeline_mode<synchronous>, transform_indices = @transform_3, window_bounds = array<i64: 1, 16>}, {pipeline_mode = #tpu.pipeline_mode<synchronous>, transform_indices = @transform_4, window_bounds = array<i64: 9, 8, 8>}, {pipeline_mode = #tpu.pipeline_mode<synchronous>, transform_indices = @transform_5, window_bounds = array<i64: 1, 8>}, {pipeline_mode = #tpu.pipeline_mode<synchronous>, transform_indices = @transform_6, window_bounds = array<i64: 1, 8>}, {transform_indices = @transform_7, window_bounds = array<i64: 1, 256, 8>}]} {
    %cst = arith.constant 0.000000e+00 : f32
    %0 = vector.broadcast %cst : f32 to vector<18x18x4xf32>
    %c0 = arith.constant 0 : index
    %c0_0 = arith.constant 0 : index
    %c0_1 = arith.constant 0 : index
    %1 = vector.load %arg9[%c0, %c0_0, %c0_1] : memref<18x18x4xf32, #tpu.memory_space<vmem>>, vector<18x18x4xf32>
    tpu.vector_store %arg9[%c0, %c0_0, %c0_1], %0 {strides = array<i32>} : memref<18x18x4xf32, #tpu.memory_space<vmem>>, vector<18x18x4xf32>,
    %c0_2 = arith.constant 0 : index
    %c0_3 = arith.constant 0 : index
    %c0_4 = arith.constant 0 : index
    %c0_5 = arith.constant 0 : index
    %2 = vector.load %arg1[%c0_2, %c0_3, %c0_4, %c0_5] : memref<1x16x16x4xbf16, #tpu.memory_space<vmem>>, vector<1x16x16x4xbf16>
    %3 = vector.shape_cast %2 : vector<1x16x16x4xbf16> to vector<16x16x4xbf16>
    %4 = arith.extf %3 : vector<16x16x4xbf16> to vector<16x16x4xf32>
    %c1 = arith.constant 1 : index
    %c1_6 = arith.constant 1 : index
    %c0_7 = arith.constant 0 : index
    %5 = vector.load %arg9[%c1, %c1_6, %c0_7] : memref<18x18x4xf32, #tpu.memory_space<vmem>>, vector<16x16x4xf32>
    tpu.vector_store %arg9[%c1, %c1_6, %c0_7], %4 {strides = array<i32>} : memref<18x18x4xf32, #tpu.memory_space<vmem>>, vector<16x16x4xf32>,
    %c0_8 = arith.constant 0 : index
    %c0_9 = arith.constant 0 : index
    %c0_10 = arith.constant 0 : index
    %6 = vector.load %arg9[%c0_8, %c0_9, %c0_10] : memref<18x18x4xf32, #tpu.memory_space<vmem>>, vector<18x18x4xf32>
    %7 = arith.truncf %6 : vector<18x18x4xf32> to vector<18x18x4xbf16>
    %cst_11 = arith.constant 0.000000e+00 : f32
    %8 = vector.broadcast %cst_11 : f32 to vector<256x16xf32>
    %9 = vector.extract_strided_slice %7 {offsets = [0, 0, 0], sizes = [16, 16, 4], strides = [1, 1, 1]} : vector<18x18x4xbf16> to vector<16x16x4xbf16>
    %10 = vector.extract_strided_slice %7 {offsets = [0, 1, 0], sizes = [16, 16, 4], strides = [1, 1, 1]} : vector<18x18x4xbf16> to vector<16x16x4xbf16>
    %11 = vector.extract_strided_slice %7 {offsets = [0, 2, 0], sizes = [16, 16, 4], strides = [1, 1, 1]} : vector<18x18x4xbf16> to vector<16x16x4xbf16>
    %12 = vector.extract_strided_slice %7 {offsets = [1, 0, 0], sizes = [16, 16, 4], strides = [1, 1, 1]} : vector<18x18x4xbf16> to vector<16x16x4xbf16>
    %13 = vector.extract_strided_slice %7 {offsets = [1, 1, 0], sizes = [16, 16, 4], strides = [1, 1, 1]} : vector<18x18x4xbf16> to vector<16x16x4xbf16>
    %14 = vector.extract_strided_slice %7 {offsets = [1, 2, 0], sizes = [16, 16, 4], strides = [1, 1, 1]} : vector<18x18x4xbf16> to vector<16x16x4xbf16>
    %15 = vector.extract_strided_slice %7 {offsets = [2, 0, 0], sizes = [16, 16, 4], strides = [1, 1, 1]} : vector<18x18x4xbf16> to vector<16x16x4xbf16>
    %16 = vector.extract_strided_slice %7 {offsets = [2, 1, 0], sizes = [16, 16, 4], strides = [1, 1, 1]} : vector<18x18x4xbf16> to vector<16x16x4xbf16>
    %17 = vector.extract_strided_slice %7 {offsets = [2, 2, 0], sizes = [16, 16, 4], strides = [1, 1, 1]} : vector<18x18x4xbf16> to vector<16x16x4xbf16>
    %18 = vector.shape_cast %9 : vector<16x16x4xbf16> to vector<256x4xbf16>
    %c0_12 = arith.constant 0 : index
    %c0_13 = arith.constant 0 : index
    %c0_14 = arith.constant 0 : index
    %19 = vector.load %arg2[%c0_12, %c0_13, %c0_14] : memref<9x4x16xbf16, #tpu.memory_space<vmem>>, vector<1x4x16xbf16>
    %20 = vector.shape_cast %19 : vector<1x4x16xbf16> to vector<4x16xbf16>
    %cst_15 = arith.constant dense<0.000000e+00> : vector<256x16xf32>
    %21 = tpu.matmul %18, %20, %cst_15 {dimension_numbers = #tpu.dot_dimension_numbers<[1], [0], [0], [1], [0, 0, 1, 1], [], []>} : vector<256x4xbf16>, vector<4x16xbf16>, vector<256x16xf32> -> vector<256x16xf32>
    %22 = arith.addf %8, %21 : vector<256x16xf32>
    %23 = vector.shape_cast %10 : vector<16x16x4xbf16> to vector<256x4xbf16>
    %c1_16 = arith.constant 1 : index
    %c0_17 = arith.constant 0 : index
    %c0_18 = arith.constant 0 : index
    %24 = vector.load %arg2[%c1_16, %c0_17, %c0_18] : memref<9x4x16xbf16, #tpu.memory_space<vmem>>, vector<1x4x16xbf16>
    %25 = vector.shape_cast %24 : vector<1x4x16xbf16> to vector<4x16xbf16>
    %cst_19 = arith.constant dense<0.000000e+00> : vector<256x16xf32>
    %26 = tpu.matmul %23, %25, %cst_19 {dimension_numbers = #tpu.dot_dimension_numbers<[1], [0], [0], [1], [0, 0, 1, 1], [], []>} : vector<256x4xbf16>, vector<4x16xbf16>, vector<256x16xf32> -> vector<256x16xf32>
    %27 = arith.addf %22, %26 : vector<256x16xf32>
    %28 = vector.shape_cast %11 : vector<16x16x4xbf16> to vector<256x4xbf16>
    %c2 = arith.constant 2 : index
    %c0_20 = arith.constant 0 : index
    %c0_21 = arith.constant 0 : index
    %29 = vector.load %arg2[%c2, %c0_20, %c0_21] : memref<9x4x16xbf16, #tpu.memory_space<vmem>>, vector<1x4x16xbf16>
    %30 = vector.shape_cast %29 : vector<1x4x16xbf16> to vector<4x16xbf16>
    %cst_22 = arith.constant dense<0.000000e+00> : vector<256x16xf32>
    %31 = tpu.matmul %28, %30, %cst_22 {dimension_numbers = #tpu.dot_dimension_numbers<[1], [0], [0], [1], [0, 0, 1, 1], [], []>} : vector<256x4xbf16>, vector<4x16xbf16>, vector<256x16xf32> -> vector<256x16xf32>
    %32 = arith.addf %27, %31 : vector<256x16xf32>
    %33 = vector.shape_cast %12 : vector<16x16x4xbf16> to vector<256x4xbf16>
    %c3 = arith.constant 3 : index
    %c0_23 = arith.constant 0 : index
    %c0_24 = arith.constant 0 : index
    %34 = vector.load %arg2[%c3, %c0_23, %c0_24] : memref<9x4x16xbf16, #tpu.memory_space<vmem>>, vector<1x4x16xbf16>
    %35 = vector.shape_cast %34 : vector<1x4x16xbf16> to vector<4x16xbf16>
    %cst_25 = arith.constant dense<0.000000e+00> : vector<256x16xf32>
    %36 = tpu.matmul %33, %35, %cst_25 {dimension_numbers = #tpu.dot_dimension_numbers<[1], [0], [0], [1], [0, 0, 1, 1], [], []>} : vector<256x4xbf16>, vector<4x16xbf16>, vector<256x16xf32> -> vector<256x16xf32>
    %37 = arith.addf %32, %36 : vector<256x16xf32>
    %38 = vector.shape_cast %13 : vector<16x16x4xbf16> to vector<256x4xbf16>
    %c4 = arith.constant 4 : index
    %c0_26 = arith.constant 0 : index
    %c0_27 = arith.constant 0 : index
    %39 = vector.load %arg2[%c4, %c0_26, %c0_27] : memref<9x4x16xbf16, #tpu.memory_space<vmem>>, vector<1x4x16xbf16>
    %40 = vector.shape_cast %39 : vector<1x4x16xbf16> to vector<4x16xbf16>
    %cst_28 = arith.constant dense<0.000000e+00> : vector<256x16xf32>
    %41 = tpu.matmul %38, %40, %cst_28 {dimension_numbers = #tpu.dot_dimension_numbers<[1], [0], [0], [1], [0, 0, 1, 1], [], []>} : vector<256x4xbf16>, vector<4x16xbf16>, vector<256x16xf32> -> vector<256x16xf32>
    %42 = arith.addf %37, %41 : vector<256x16xf32>
    %43 = vector.shape_cast %14 : vector<16x16x4xbf16> to vector<256x4xbf16>
    %c5 = arith.constant 5 : index
    %c0_29 = arith.constant 0 : index
    %c0_30 = arith.constant 0 : index
    %44 = vector.load %arg2[%c5, %c0_29, %c0_30] : memref<9x4x16xbf16, #tpu.memory_space<vmem>>, vector<1x4x16xbf16>
    %45 = vector.shape_cast %44 : vector<1x4x16xbf16> to vector<4x16xbf16>
    %cst_31 = arith.constant dense<0.000000e+00> : vector<256x16xf32>
    %46 = tpu.matmul %43, %45, %cst_31 {dimension_numbers = #tpu.dot_dimension_numbers<[1], [0], [0], [1], [0, 0, 1, 1], [], []>} : vector<256x4xbf16>, vector<4x16xbf16>, vector<256x16xf32> -> vector<256x16xf32>
    %47 = arith.addf %42, %46 : vector<256x16xf32>
    %48 = vector.shape_cast %15 : vector<16x16x4xbf16> to vector<256x4xbf16>
    %c6 = arith.constant 6 : index
    %c0_32 = arith.constant 0 : index
    %c0_33 = arith.constant 0 : index
    %49 = vector.load %arg2[%c6, %c0_32, %c0_33] : memref<9x4x16xbf16, #tpu.memory_space<vmem>>, vector<1x4x16xbf16>
    %50 = vector.shape_cast %49 : vector<1x4x16xbf16> to vector<4x16xbf16>
    %cst_34 = arith.constant dense<0.000000e+00> : vector<256x16xf32>
    %51 = tpu.matmul %48, %50, %cst_34 {dimension_numbers = #tpu.dot_dimension_numbers<[1], [0], [0], [1], [0, 0, 1, 1], [], []>} : vector<256x4xbf16>, vector<4x16xbf16>, vector<256x16xf32> -> vector<256x16xf32>
    %52 = arith.addf %47, %51 : vector<256x16xf32>
    %53 = vector.shape_cast %16 : vector<16x16x4xbf16> to vector<256x4xbf16>
    %c7 = arith.constant 7 : index
    %c0_35 = arith.constant 0 : index
    %c0_36 = arith.constant 0 : index
    %54 = vector.load %arg2[%c7, %c0_35, %c0_36] : memref<9x4x16xbf16, #tpu.memory_space<vmem>>, vector<1x4x16xbf16>
    %55 = vector.shape_cast %54 : vector<1x4x16xbf16> to vector<4x16xbf16>
    %cst_37 = arith.constant dense<0.000000e+00> : vector<256x16xf32>
    %56 = tpu.matmul %53, %55, %cst_37 {dimension_numbers = #tpu.dot_dimension_numbers<[1], [0], [0], [1], [0, 0, 1, 1], [], []>} : vector<256x4xbf16>, vector<4x16xbf16>, vector<256x16xf32> -> vector<256x16xf32>
    %57 = arith.addf %52, %56 : vector<256x16xf32>
    %58 = vector.shape_cast %17 : vector<16x16x4xbf16> to vector<256x4xbf16>
    %c8 = arith.constant 8 : index
    %c0_38 = arith.constant 0 : index
    %c0_39 = arith.constant 0 : index
    %59 = vector.load %arg2[%c8, %c0_38, %c0_39] : memref<9x4x16xbf16, #tpu.memory_space<vmem>>, vector<1x4x16xbf16>
    %60 = vector.shape_cast %59 : vector<1x4x16xbf16> to vector<4x16xbf16>
    %cst_40 = arith.constant dense<0.000000e+00> : vector<256x16xf32>
    %61 = tpu.matmul %58, %60, %cst_40 {dimension_numbers = #tpu.dot_dimension_numbers<[1], [0], [0], [1], [0, 0, 1, 1], [], []>} : vector<256x4xbf16>, vector<4x16xbf16>, vector<256x16xf32> -> vector<256x16xf32>
    %62 = arith.addf %57, %61 : vector<256x16xf32>
    %c0_41 = arith.constant 0 : index
    %c0_42 = arith.constant 0 : index
    %63 = vector.load %arg3[%c0_41, %c0_42] : memref<1x16xf32, #tpu.memory_space<vmem>>, vector<1x16xf32>
    %64 = vector.broadcast %63 : vector<1x16xf32> to vector<256x16xf32>
    %65 = arith.mulf %62, %64 : vector<256x16xf32>
    %c0_43 = arith.constant 0 : index
    %c0_44 = arith.constant 0 : index
    %66 = vector.load %arg4[%c0_43, %c0_44] : memref<1x16xf32, #tpu.memory_space<vmem>>, vector<1x16xf32>
    %67 = vector.broadcast %66 : vector<1x16xf32> to vector<256x16xf32>
    %68 = arith.addf %65, %67 : vector<256x16xf32>
    %69 = vector.extract_strided_slice %68 {offsets = [0, 0], sizes = [256, 8], strides = [1, 1]} : vector<256x16xf32> to vector<256x8xf32>
    %cst_45 = arith.constant 0.000000e+00 : f32
    %70 = vector.broadcast %cst_45 : f32 to vector<256x8xf32>
    %71 = arith.maximumf %69, %70 : vector<256x8xf32>
    %72 = vector.extract_strided_slice %68 {offsets = [0, 8], sizes = [256, 8], strides = [1, 1]} : vector<256x16xf32> to vector<256x8xf32>
    %cst_46 = arith.constant 0.000000e+00 : f32
    %73 = vector.broadcast %cst_46 : f32 to vector<18x18x8xf32>
    %c0_47 = arith.constant 0 : index
    %c0_48 = arith.constant 0 : index
    %c0_49 = arith.constant 0 : index
    %74 = vector.load %arg10[%c0_47, %c0_48, %c0_49] : memref<18x18x8xf32, #tpu.memory_space<vmem>>, vector<18x18x8xf32>
    tpu.vector_store %arg10[%c0_47, %c0_48, %c0_49], %73 {strides = array<i32>} : memref<18x18x8xf32, #tpu.memory_space<vmem>>, vector<18x18x8xf32>,
    %75 = vector.shape_cast %71 : vector<256x8xf32> to vector<16x16x8xf32>
    %c1_50 = arith.constant 1 : index
    %c1_51 = arith.constant 1 : index
    %c0_52 = arith.constant 0 : index
    %76 = vector.load %arg10[%c1_50, %c1_51, %c0_52] : memref<18x18x8xf32, #tpu.memory_space<vmem>>, vector<16x16x8xf32>
    tpu.vector_store %arg10[%c1_50, %c1_51, %c0_52], %75 {strides = array<i32>} : memref<18x18x8xf32, #tpu.memory_space<vmem>>, vector<16x16x8xf32>,
    %c0_53 = arith.constant 0 : index
    %c0_54 = arith.constant 0 : index
    %c0_55 = arith.constant 0 : index
    %77 = vector.load %arg10[%c0_53, %c0_54, %c0_55] : memref<18x18x8xf32, #tpu.memory_space<vmem>>, vector<18x18x8xf32>
    %78 = arith.truncf %77 : vector<18x18x8xf32> to vector<18x18x8xbf16>
    %cst_56 = arith.constant 0.000000e+00 : f32
    %79 = vector.broadcast %cst_56 : f32 to vector<256x8xf32>
    %80 = vector.extract_strided_slice %78 {offsets = [0, 0, 0], sizes = [16, 16, 8], strides = [1, 1, 1]} : vector<18x18x8xbf16> to vector<16x16x8xbf16>
    %81 = vector.extract_strided_slice %78 {offsets = [0, 1, 0], sizes = [16, 16, 8], strides = [1, 1, 1]} : vector<18x18x8xbf16> to vector<16x16x8xbf16>
    %82 = vector.extract_strided_slice %78 {offsets = [0, 2, 0], sizes = [16, 16, 8], strides = [1, 1, 1]} : vector<18x18x8xbf16> to vector<16x16x8xbf16>
    %83 = vector.extract_strided_slice %78 {offsets = [1, 0, 0], sizes = [16, 16, 8], strides = [1, 1, 1]} : vector<18x18x8xbf16> to vector<16x16x8xbf16>
    %84 = vector.extract_strided_slice %78 {offsets = [1, 1, 0], sizes = [16, 16, 8], strides = [1, 1, 1]} : vector<18x18x8xbf16> to vector<16x16x8xbf16>
    %85 = vector.extract_strided_slice %78 {offsets = [1, 2, 0], sizes = [16, 16, 8], strides = [1, 1, 1]} : vector<18x18x8xbf16> to vector<16x16x8xbf16>
    %86 = vector.extract_strided_slice %78 {offsets = [2, 0, 0], sizes = [16, 16, 8], strides = [1, 1, 1]} : vector<18x18x8xbf16> to vector<16x16x8xbf16>
    %87 = vector.extract_strided_slice %78 {offsets = [2, 1, 0], sizes = [16, 16, 8], strides = [1, 1, 1]} : vector<18x18x8xbf16> to vector<16x16x8xbf16>
    %88 = vector.extract_strided_slice %78 {offsets = [2, 2, 0], sizes = [16, 16, 8], strides = [1, 1, 1]} : vector<18x18x8xbf16> to vector<16x16x8xbf16>
    %89 = vector.shape_cast %80 : vector<16x16x8xbf16> to vector<256x8xbf16>
    %c0_57 = arith.constant 0 : index
    %c0_58 = arith.constant 0 : index
    %c0_59 = arith.constant 0 : index
    %90 = vector.load %arg5[%c0_57, %c0_58, %c0_59] : memref<9x8x8xbf16, #tpu.memory_space<vmem>>, vector<1x8x8xbf16>
    %91 = vector.shape_cast %90 : vector<1x8x8xbf16> to vector<8x8xbf16>
    %cst_60 = arith.constant dense<0.000000e+00> : vector<256x8xf32>
    %92 = tpu.matmul %89, %91, %cst_60 {dimension_numbers = #tpu.dot_dimension_numbers<[1], [0], [0], [1], [0, 0, 1, 1], [], []>} : vector<256x8xbf16>, vector<8x8xbf16>, vector<256x8xf32> -> vector<256x8xf32>
    %93 = arith.addf %79, %92 : vector<256x8xf32>
    %94 = vector.shape_cast %81 : vector<16x16x8xbf16> to vector<256x8xbf16>
    %c1_61 = arith.constant 1 : index
    %c0_62 = arith.constant 0 : index
    %c0_63 = arith.constant 0 : index
    %95 = vector.load %arg5[%c1_61, %c0_62, %c0_63] : memref<9x8x8xbf16, #tpu.memory_space<vmem>>, vector<1x8x8xbf16>
    %96 = vector.shape_cast %95 : vector<1x8x8xbf16> to vector<8x8xbf16>
    %cst_64 = arith.constant dense<0.000000e+00> : vector<256x8xf32>
    %97 = tpu.matmul %94, %96, %cst_64 {dimension_numbers = #tpu.dot_dimension_numbers<[1], [0], [0], [1], [0, 0, 1, 1], [], []>} : vector<256x8xbf16>, vector<8x8xbf16>, vector<256x8xf32> -> vector<256x8xf32>
    %98 = arith.addf %93, %97 : vector<256x8xf32>
    %99 = vector.shape_cast %82 : vector<16x16x8xbf16> to vector<256x8xbf16>
    %c2_65 = arith.constant 2 : index
    %c0_66 = arith.constant 0 : index
    %c0_67 = arith.constant 0 : index
    %100 = vector.load %arg5[%c2_65, %c0_66, %c0_67] : memref<9x8x8xbf16, #tpu.memory_space<vmem>>, vector<1x8x8xbf16>
    %101 = vector.shape_cast %100 : vector<1x8x8xbf16> to vector<8x8xbf16>
    %cst_68 = arith.constant dense<0.000000e+00> : vector<256x8xf32>
    %102 = tpu.matmul %99, %101, %cst_68 {dimension_numbers = #tpu.dot_dimension_numbers<[1], [0], [0], [1], [0, 0, 1, 1], [], []>} : vector<256x8xbf16>, vector<8x8xbf16>, vector<256x8xf32> -> vector<256x8xf32>
    %103 = arith.addf %98, %102 : vector<256x8xf32>
    %104 = vector.shape_cast %83 : vector<16x16x8xbf16> to vector<256x8xbf16>
    %c3_69 = arith.constant 3 : index
    %c0_70 = arith.constant 0 : index
    %c0_71 = arith.constant 0 : index
    %105 = vector.load %arg5[%c3_69, %c0_70, %c0_71] : memref<9x8x8xbf16, #tpu.memory_space<vmem>>, vector<1x8x8xbf16>
    %106 = vector.shape_cast %105 : vector<1x8x8xbf16> to vector<8x8xbf16>
    %cst_72 = arith.constant dense<0.000000e+00> : vector<256x8xf32>
    %107 = tpu.matmul %104, %106, %cst_72 {dimension_numbers = #tpu.dot_dimension_numbers<[1], [0], [0], [1], [0, 0, 1, 1], [], []>} : vector<256x8xbf16>, vector<8x8xbf16>, vector<256x8xf32> -> vector<256x8xf32>
    %108 = arith.addf %103, %107 : vector<256x8xf32>
    %109 = vector.shape_cast %84 : vector<16x16x8xbf16> to vector<256x8xbf16>
    %c4_73 = arith.constant 4 : index
    %c0_74 = arith.constant 0 : index
    %c0_75 = arith.constant 0 : index
    %110 = vector.load %arg5[%c4_73, %c0_74, %c0_75] : memref<9x8x8xbf16, #tpu.memory_space<vmem>>, vector<1x8x8xbf16>
    %111 = vector.shape_cast %110 : vector<1x8x8xbf16> to vector<8x8xbf16>
    %cst_76 = arith.constant dense<0.000000e+00> : vector<256x8xf32>
    %112 = tpu.matmul %109, %111, %cst_76 {dimension_numbers = #tpu.dot_dimension_numbers<[1], [0], [0], [1], [0, 0, 1, 1], [], []>} : vector<256x8xbf16>, vector<8x8xbf16>, vector<256x8xf32> -> vector<256x8xf32>
    %113 = arith.addf %108, %112 : vector<256x8xf32>
    %114 = vector.shape_cast %85 : vector<16x16x8xbf16> to vector<256x8xbf16>
    %c5_77 = arith.constant 5 : index
    %c0_78 = arith.constant 0 : index
    %c0_79 = arith.constant 0 : index
    %115 = vector.load %arg5[%c5_77, %c0_78, %c0_79] : memref<9x8x8xbf16, #tpu.memory_space<vmem>>, vector<1x8x8xbf16>
    %116 = vector.shape_cast %115 : vector<1x8x8xbf16> to vector<8x8xbf16>
    %cst_80 = arith.constant dense<0.000000e+00> : vector<256x8xf32>
    %117 = tpu.matmul %114, %116, %cst_80 {dimension_numbers = #tpu.dot_dimension_numbers<[1], [0], [0], [1], [0, 0, 1, 1], [], []>} : vector<256x8xbf16>, vector<8x8xbf16>, vector<256x8xf32> -> vector<256x8xf32>
    %118 = arith.addf %113, %117 : vector<256x8xf32>
    %119 = vector.shape_cast %86 : vector<16x16x8xbf16> to vector<256x8xbf16>
    %c6_81 = arith.constant 6 : index
    %c0_82 = arith.constant 0 : index
    %c0_83 = arith.constant 0 : index
    %120 = vector.load %arg5[%c6_81, %c0_82, %c0_83] : memref<9x8x8xbf16, #tpu.memory_space<vmem>>, vector<1x8x8xbf16>
    %121 = vector.shape_cast %120 : vector<1x8x8xbf16> to vector<8x8xbf16>
    %cst_84 = arith.constant dense<0.000000e+00> : vector<256x8xf32>
    %122 = tpu.matmul %119, %121, %cst_84 {dimension_numbers = #tpu.dot_dimension_numbers<[1], [0], [0], [1], [0, 0, 1, 1], [], []>} : vector<256x8xbf16>, vector<8x8xbf16>, vector<256x8xf32> -> vector<256x8xf32>
    %123 = arith.addf %118, %122 : vector<256x8xf32>
    %124 = vector.shape_cast %87 : vector<16x16x8xbf16> to vector<256x8xbf16>
    %c7_85 = arith.constant 7 : index
    %c0_86 = arith.constant 0 : index
    %c0_87 = arith.constant 0 : index
    %125 = vector.load %arg5[%c7_85, %c0_86, %c0_87] : memref<9x8x8xbf16, #tpu.memory_space<vmem>>, vector<1x8x8xbf16>
    %126 = vector.shape_cast %125 : vector<1x8x8xbf16> to vector<8x8xbf16>
    %cst_88 = arith.constant dense<0.000000e+00> : vector<256x8xf32>
    %127 = tpu.matmul %124, %126, %cst_88 {dimension_numbers = #tpu.dot_dimension_numbers<[1], [0], [0], [1], [0, 0, 1, 1], [], []>} : vector<256x8xbf16>, vector<8x8xbf16>, vector<256x8xf32> -> vector<256x8xf32>
    %128 = arith.addf %123, %127 : vector<256x8xf32>
    %129 = vector.shape_cast %88 : vector<16x16x8xbf16> to vector<256x8xbf16>
    %c8_89 = arith.constant 8 : index
    %c0_90 = arith.constant 0 : index
    %c0_91 = arith.constant 0 : index
    %130 = vector.load %arg5[%c8_89, %c0_90, %c0_91] : memref<9x8x8xbf16, #tpu.memory_space<vmem>>, vector<1x8x8xbf16>
    %131 = vector.shape_cast %130 : vector<1x8x8xbf16> to vector<8x8xbf16>
    %cst_92 = arith.constant dense<0.000000e+00> : vector<256x8xf32>
    %132 = tpu.matmul %129, %131, %cst_92 {dimension_numbers = #tpu.dot_dimension_numbers<[1], [0], [0], [1], [0, 0, 1, 1], [], []>} : vector<256x8xbf16>, vector<8x8xbf16>, vector<256x8xf32> -> vector<256x8xf32>
    %133 = arith.addf %128, %132 : vector<256x8xf32>
    %c0_93 = arith.constant 0 : index
    %c0_94 = arith.constant 0 : index
    %134 = vector.load %arg6[%c0_93, %c0_94] : memref<1x8xf32, #tpu.memory_space<vmem>>, vector<1x8xf32>
    %135 = vector.broadcast %134 : vector<1x8xf32> to vector<256x8xf32>
    %136 = arith.mulf %133, %135 : vector<256x8xf32>
    %c0_95 = arith.constant 0 : index
    %c0_96 = arith.constant 0 : index
    %137 = vector.load %arg7[%c0_95, %c0_96] : memref<1x8xf32, #tpu.memory_space<vmem>>, vector<1x8xf32>
    %138 = vector.broadcast %137 : vector<1x8xf32> to vector<256x8xf32>
    %139 = arith.addf %136, %138 : vector<256x8xf32>
    %140 = arith.addf %139, %72 : vector<256x8xf32>
    %cst_97 = arith.constant 0.000000e+00 : f32
    %141 = vector.broadcast %cst_97 : f32 to vector<256x8xf32>
    %142 = arith.maximumf %140, %141 : vector<256x8xf32>
    %143 = arith.truncf %142 : vector<256x8xf32> to vector<256x8xbf16>
    %c0_98 = arith.constant 0 : index
    %c0_99 = arith.constant 0 : index
    %c0_100 = arith.constant 0 : index
    %144 = vector.load %arg8[%c0_98, %c0_99, %c0_100] : memref<1x256x8xbf16, #tpu.memory_space<vmem>>, vector<1x256x8xbf16>
    %145 = vector.shape_cast %144 : vector<1x256x8xbf16> to vector<256x8xbf16>
    %146 = vector.shape_cast %143 : vector<256x8xbf16> to vector<1x256x8xbf16>
    tpu.vector_store %arg8[%c0_98, %c0_99, %c0_100], %146 {strides = array<i32>} : memref<1x256x8xbf16, #tpu.memory_space<vmem>>, vector<1x256x8xbf16>,
    return
  }
  func.func @transform_0(%arg0: i32) -> (i32, i32, i32, i32) {
    %c0_i32 = arith.constant 0 : i32
    %c0_i32_0 = arith.constant 0 : i32
    %c0_i32_1 = arith.constant 0 : i32
    %c0_i32_2 = arith.constant 0 : i32
    return %arg0, %c0_i32, %c0_i32_0, %c0_i32_1 : i32, i32, i32, i32
  }
  func.func @transform_1(%arg0: i32) -> (i32, i32, i32) {
    %c0_i32 = arith.constant 0 : i32
    %c0_i32_0 = arith.constant 0 : i32
    %c0_i32_1 = arith.constant 0 : i32
    %c0_i32_2 = arith.constant 0 : i32
    return %c0_i32, %c0_i32_0, %c0_i32_1 : i32, i32, i32
  }
  func.func @transform_2(%arg0: i32) -> (i32, i32) {
    %c0_i32 = arith.constant 0 : i32
    %c0_i32_0 = arith.constant 0 : i32
    %c0_i32_1 = arith.constant 0 : i32
    return %c0_i32, %c0_i32_0 : i32, i32
  }
  func.func @transform_3(%arg0: i32) -> (i32, i32) {
    %c0_i32 = arith.constant 0 : i32
    %c0_i32_0 = arith.constant 0 : i32
    %c0_i32_1 = arith.constant 0 : i32
    return %c0_i32, %c0_i32_0 : i32, i32
  }
  func.func @transform_4(%arg0: i32) -> (i32, i32, i32) {
    %c0_i32 = arith.constant 0 : i32
    %c0_i32_0 = arith.constant 0 : i32
    %c0_i32_1 = arith.constant 0 : i32
    %c0_i32_2 = arith.constant 0 : i32
    return %c0_i32, %c0_i32_0, %c0_i32_1 : i32, i32, i32
  }
  func.func @transform_5(%arg0: i32) -> (i32, i32) {
    %c0_i32 = arith.constant 0 : i32
    %c0_i32_0 = arith.constant 0 : i32
    %c0_i32_1 = arith.constant 0 : i32
    return %c0_i32, %c0_i32_0 : i32, i32
  }
  func.func @transform_6(%arg0: i32) -> (i32, i32) {
    %c0_i32 = arith.constant 0 : i32
    %c0_i32_0 = arith.constant 0 : i32
    %c0_i32_1 = arith.constant 0 : i32
    return %c0_i32, %c0_i32_0 : i32, i32
  }
  func.func @transform_7(%arg0: i32) -> (i32, i32, i32) {
    %c0_i32 = arith.constant 0 : i32
    %c0_i32_0 = arith.constant 0 : i32
    %c0_i32_1 = arith.constant 0 : i32
    return %arg0, %c0_i32, %c0_i32_0 : i32, i32, i32
  }
}

</mosaic_0001>

<bundles_post_ra>
// kernel: tpu_custom_call.1
= control target key start
LH: loop header
LB: loop body
LE: loop exit
PB: predicated region body
PF: predicated region fallthrough
CT: control target
= control target key end

     0   :  { %s7608_s24 = smov 0   ;;  %s9380_s0 = inlined_call_operand.vmem [shape: bf16[2,16,16,4], index: 0, kind: input, shape index: {}]   ;;  %s9381_s1 = inlined_call_operand.vmem [shape: bf16[9,4,16], index: 1, kind: input, shape index: {}]   ;;  %s9382_s2 = inlined_call_operand.vmem [shape: f32[1,16], index: 2, kind: input, shape index: {}]   ;;  %s9383_s3 = inlined_call_operand.vmem [shape: f32[1,16], index: 3, kind: input, shape index: {}]   ;;  %s9384_s4 = inlined_call_operand.vmem [shape: bf16[9,8,8], index: 4, kind: input, shape index: {}]   ;;  %s9385_s5 = inlined_call_operand.vmem [shape: f32[1,8], index: 5, kind: input, shape index: {}]   ;;  %s9386_s6 = inlined_call_operand.vmem [shape: f32[1,8], index: 6, kind: input, shape index: {}]   ;;  %s9387_s7 = inlined_call_operand.vmem [shape: bf16[2,256,8], index: 7, kind: output, shape index: {}]  }
   0x1 LB: > { %s5636_s25 = sadd.s32 4294967295, %s7564_s24   ;;  %p5640_p0 = scmp.ge.s32.totalorder %s7564_s24, 1  ;;  %s7564_s24 = sphi %s7608_s24, %s17_s24  }
   0x2   : > { %p237_p1 = scmp.lt.s32.totalorder %s7564_s24, 3 }
   0x4   : > { %p238_p2 = pnand %p5640_p0, %p237_p1 }
   0x5   : > { %v5645_v0 = vld [vmem:[%s9381_s1 + $0x2] sm:$0x3] (!%p238_p2)  ;;  %vm767_vm0 = vcmask (!%p238_p2), 1041408   ;;  %vm280_vm1 = vcmask (!%p238_p2), 31744   ;;  %vm283_vm2 = vcmask (!%p238_p2), 25600   ;;  %v7566_v2 = vmov (!%p238_p2), 0.0  }
   0x6   : > { %241 = sbr.rel (%p238_p2) target bundleno = 1596 (0x63c), region = 48  ;;  %7530 = vmatprep.subr.msk.bf16.mxu0 (!%p238_p2), %vm767_vm0, %v5645_v0  ;;  %v769_v1 = vsel (!%p238_p2), %vm767_vm0, %v5645_v0, 0  ;;  %281 = vst.msk [vmem:[#allocation2] sm:$0xff] (!%p238_p2), %vm280_vm1, %v7566_v2  ;;  %282 = vst.msk [vmem:[#allocation2 + $0x8] sm:$0xff] (!%p238_p2), %vm280_vm1, %v7566_v2  ;;  %v7732_v3 = vld [vmem:[%s9381_s1] sm:$0x3] (!%p238_p2) }
   0x7   : > { %284 = vst.msk [vmem:[#allocation2 + $0x10] sm:$0x3] (!%p238_p2), %vm283_vm2, %v7566_v2  ;;  %287 = vst.msk [vmem:[#allocation2 + $0x28] sm:$0x3] (!%p238_p2), %vm283_vm2, %v7566_v2  ;;  %p269_p3 = scmp.lt.s32.totalorder (!%p238_p2), %s5636_s25, 1  ;;  %6407 = vmatpush3.bf16.msra.mxu0 (!%p238_p2), %v769_v1  ;;  %vm1160_vm4 = vcmask (!%p238_p2), 1046528  }
   0x8   : > { %285 = vst.msk [vmem:[#allocation2 + $0x18] sm:$0xff] (!%p238_p2), %vm280_vm1, %v7566_v2  ;;  %286 = vst.msk [vmem:[#allocation2 + $0x20] sm:$0xff] (!%p238_p2), %vm280_vm1, %v7566_v2  ;;  %7531 = vmatprep.subr.msk.bf16.mxu0 (!%p238_p2), %vm767_vm0, %v7732_v3  ;;  %vm524_vm3 = vsmask.f32 (!%p238_p2), 7424  ;;  %vm2803_vm5 = vcmask (!%p238_p2), 64512   ;;  %vm2806_vm6 = vcmask (!%p238_p2), 58368  }
   0x9   : > { %288 = vst.msk [vmem:[#allocation2 + $0x30] sm:$0xff] (!%p238_p2), %vm280_vm1, %v7566_v2  ;;  %289 = vst.msk [vmem:[#allocation2 + $0x38] sm:$0xff] (!%p238_p2), %vm280_vm1, %v7566_v2  ;;  %vm3225_vm7 = vcmask (!%p238_p2), 1043456   ;;  %s7567_s13 = smov (!%p238_p2), 120   ;;  %vm5548_vm8 = vcmask (!%p238_p2), 60416  }
   0xa   : > { %290 = vst.msk [vmem:[#allocation2 + $0x40] sm:$0x3] (!%p238_p2), %vm283_vm2, %v7566_v2  ;;  %293 = vst.msk [vmem:[#allocation2 + $0x58] sm:$0x3] (!%p238_p2), %vm283_vm2, %v7566_v2 }
   0xb   : > { %291 = vst.msk [vmem:[#allocation2 + $0x48] sm:$0xff] (!%p238_p2), %vm280_vm1, %v7566_v2  ;;  %292 = vst.msk [vmem:[#allocation2 + $0x50] sm:$0xff] (!%p238_p2), %vm280_vm1, %v7566_v2 }
   0xc   : > { %294 = vst.msk [vmem:[#allocation2 + $0x60] sm:$0xff] (!%p238_p2), %vm280_vm1, %v7566_v2  ;;  %295 = vst.msk [vmem:[#allocation2 + $0x68] sm:$0xff] (!%p238_p2), %vm280_vm1, %v7566_v2 }
   0xd   : > { %296 = vst.msk [vmem:[#allocation2 + $0x70] sm:$0x3] %vm283_vm2, %v7566_v2  ;;  %299 = vst.msk [vmem:[#allocation2 + $0x88] sm:$0x3] %vm283_vm2, %v7566_v2  ;;  %s9389_s25 = smov (!%p269_p3, %s5636_s25), 1  ;;  %v433_v7 = vld [vmem:[#allocation2] sm:$0xff] }
   0xe   : > { %297 = vst.msk [vmem:[#allocation2 + $0x78] sm:$0xff] %vm280_vm1, %v7566_v2  ;;  %298 = vst.msk [vmem:[#allocation2 + $0x80] sm:$0xff] %vm280_vm1, %v7566_v2  ;;  %s5987_s30 = sshll.u32 %s9389_s25, 7  ;;  %v434_v8 = vld [vmem:[#allocation2 + $0x8] sm:$0xff]  ;;  %v435_v9 = vld [vmem:[#allocation2 + $0x10] sm:$0x3] }
   0xf   : > { %300 = vst.msk [vmem:[#allocation2 + $0x90] sm:$0xff] %vm280_vm1, %v7566_v2  ;;  %301 = vst.msk [vmem:[#allocation2 + $0x98] sm:$0xff] %vm280_vm1, %v7566_v2  ;;  %s7748_s10 = scalar_lea.vmem %s9380_s0, %s5987_s30  ;;  %v7753_v14 = vpack.c.bf16 %v434_v8, %v433_v7  ;;  %v7755_v15 = vpack.c.bf16 %v435_v9, %v435_v9  ;;  %s9235_s14 = scalar_lea.vmem %s9387_s7, %s5987_s30 }
  0x10   : > { %302 = vst.msk [vmem:[#allocation2 + $0xa0] sm:$0x3] %vm283_vm2, %v7566_v2  ;;  %305 = vst.msk [vmem:[#allocation2 + $0xb8] sm:$0x3] %vm283_vm2, %v7566_v2  ;;  %v6022_v4 = vld [vmem:[%s7748_s10] sm:$0xff]   ;;  %v6085_v5 = vld [vmem:[%s7748_s10 + $0x8] sm:$0xff]  }
  0x11   : > { %303 = vst.msk [vmem:[#allocation2 + $0xa8] sm:$0xff] %vm280_vm1, %v7566_v2  ;;  %304 = vst.msk [vmem:[#allocation2 + $0xb0] sm:$0xff] %vm280_vm1, %v7566_v2  ;;  %v6086_v6 = vld [vmem:[%s7748_s10 + $0x10] sm:$0xff]   ;;  %v6023_v10 = vunpack.c.l.bf16 %v6022_v4  ;;  %v6024_v11 = vunpack.c.h.bf16 %v6022_v4  ;;  %v6027_v12 = vunpack.c.l.bf16 %v6085_v5  ;;  %v6028_v13 = vunpack.c.h.bf16 %v6085_v5  ;;  %v6087_v18 = vld [vmem:[%s7748_s10 + $0x18] sm:$0xff]  }
  0x12   : > { %306 = vst.msk [vmem:[#allocation2 + $0xc0] sm:$0xff] %vm280_vm1, %v7566_v2  ;;  %307 = vst.msk [vmem:[#allocation2 + $0xc8] sm:$0xff] %vm280_vm1, %v7566_v2  ;;  %v6031_v16 = vunpack.c.l.bf16 %v6086_v6  ;;  %v6032_v17 = vunpack.c.h.bf16 %v6086_v6  ;;  %v6088_v19 = vld [vmem:[%s7748_s10 + $0x20] sm:$0xff]   ;;  %v6089_v20 = vld [vmem:[%s7748_s10 + $0x28] sm:$0xff]   ;;  %v6035_v21 = vunpack.c.l.bf16 %v6087_v18  ;;  %v6036_v22 = vunpack.c.h.bf16 %v6087_v18 }
  0x13   : > { %308 = vst.msk [vmem:[#allocation2 + $0xd0] sm:$0x3] %vm283_vm2, %v7566_v2  ;;  %311 = vst.msk [vmem:[#allocation2 + $0xe8] sm:$0x3] %vm283_vm2, %v7566_v2  ;;  %v6039_v23 = vunpack.c.l.bf16 %v6088_v19  ;;  %v6040_v24 = vunpack.c.h.bf16 %v6088_v19  ;;  %v6090_v25 = vld [vmem:[%s7748_s10 + $0x30] sm:$0xff]   ;;  %v6091_v26 = vld [vmem:[%s7748_s10 + $0x38] sm:$0xff]   ;;  %v6043_v31 = vunpack.c.l.bf16 %v6089_v20  ;;  %v6044_v34 = vunpack.c.h.bf16 %v6089_v20 }
  0x14   : > { %309 = vst.msk [vmem:[#allocation2 + $0xd8] sm:$0xff] %vm280_vm1, %v7566_v2  ;;  %310 = vst.msk [vmem:[#allocation2 + $0xe0] sm:$0xff] %vm280_vm1, %v7566_v2  ;;  %v6092_v27 = vld [vmem:[%s7748_s10 + $0x40] sm:$0xff]   ;;  %v526_v28 = vshrl.u32 %v7753_v14, 16  ;;  %v528_v29 = vshll.u32 %v7753_v14, 16  ;;  %v533_v30 = vshll.u32 %v7755_v15, 16  ;;  %v6047_v35 = vunpack.c.l.bf16 %v6090_v25 }
  0x15   : > { %312 = vst.msk [vmem:[#allocation2 + $0xf0] sm:$0xff] %vm280_vm1, %v7566_v2  ;;  %313 = vst.msk [vmem:[#allocation2 + $0xf8] sm:$0xff] %vm280_vm1, %v7566_v2  ;;  %v6093_v32 = vld [vmem:[%s7748_s10 + $0x48] sm:$0xff]   ;;  %v6094_v33 = vld [vmem:[%s7748_s10 + $0x50] sm:$0xff]   ;;  %v6048_v36 = vunpack.c.h.bf16 %v6090_v25  ;;  %v6051_v37 = vunpack.c.l.bf16 %v6091_v26  ;;  %v6052_v41 = vunpack.c.h.bf16 %v6091_v26  ;;  %v6055_v42 = vunpack.c.l.bf16 %v6092_v27 }
  0x16   : > { %314 = vst.msk [vmem:[#allocation2 + $0x100] sm:$0x3] %vm283_vm2, %v7566_v2  ;;  %317 = vst.msk [vmem:[#allocation2 + $0x118] sm:$0x3] %vm283_vm2, %v7566_v2  ;;  %v6095_v38 = vld [vmem:[%s7748_s10 + $0x58] sm:$0xff]   ;;  %v530_v39 = vrot.slane %v528_v29, 1  ;;  %v6056_v45 = vunpack.c.h.bf16 %v6092_v27  ;;  %v6059_v46 = vunpack.c.l.bf16 %v6093_v32  ;;  %v6060_v47 = vunpack.c.h.bf16 %v6093_v32 }
  0x17   : > { %315 = vst.msk [vmem:[#allocation2 + $0x108] sm:$0xff] %vm280_vm1, %v7566_v2  ;;  %316 = vst.msk [vmem:[#allocation2 + $0x110] sm:$0xff] %vm280_vm1, %v7566_v2  ;;  %v535_v40 = vrot.slane %v533_v30, 1  ;;  %v6096_v43 = vld [vmem:[%s7748_s10 + $0x60] sm:$0xff]   ;;  %v6097_v44 = vld [vmem:[%s7748_s10 + $0x68] sm:$0xff]   ;;  %v6063_v48 = vunpack.c.l.bf16 %v6094_v33  ;;  %v6064_v51 = vunpack.c.h.bf16 %v6094_v33  ;;  %v6067_v52 = vunpack.c.l.bf16 %v6095_v38 }
  0x18   : > { %318 = vst.msk [vmem:[#allocation2 + $0x120] sm:$0xff] %vm280_vm1, %v7566_v2  ;;  %319 = vst.msk [vmem:[#allocation2 + $0x128] sm:$0xff] %vm280_vm1, %v7566_v2  ;;  %v6098_v49 = vld [vmem:[%s7748_s10 + $0x70] sm:$0xff]   ;;  %v531_v50 = vor.u32 %v530_v39, %v526_v28  ;;  %v6068_v53 = vunpack.c.h.bf16 %v6095_v38  ;;  %v6071_v54 = vunpack.c.l.bf16 %v6096_v43  ;;  %v6072_v55 = vunpack.c.h.bf16 %v6096_v43 }
  0x19   : > { %320 = vst.msk [vmem:[#allocation2 + $0x130] sm:$0x3] %vm283_vm2, %v7566_v2  ;;  %323 = vst.msk [vmem:[#allocation2 + $0x148] sm:$0x3] %vm283_vm2, %v7566_v2  ;;  %v6075_v56 = vunpack.c.l.bf16 %v6097_v44  ;;  %v6076_v57 = vunpack.c.h.bf16 %v6097_v44  ;;  %v6079_v62 = vunpack.c.l.bf16 %v6098_v49  ;;  %v6080_v63 = vunpack.c.h.bf16 %v6098_v49 }
  0x1a   : > { %321 = vst.msk [vmem:[#allocation2 + $0x138] sm:$0xff] %vm280_vm1, %v7566_v2  ;;  %322 = vst.msk [vmem:[#allocation2 + $0x140] sm:$0xff] %vm280_vm1, %v7566_v2  ;;  %v536_v58 = vsel %vm524_vm3, %v531_v50, %v535_v40 }
  0x1b   : > { %324 = vst.msk [vmem:[#allocation2 + $0x150] sm:$0xff] %vm280_vm1, %v7566_v2  ;;  %325 = vst.msk [vmem:[#allocation2 + $0x158] sm:$0xff] %vm280_vm1, %v7566_v2  ;;  %6408 = vmatprep.mubr.msk.bf16.mxu0 %vm280_vm1, %v536_v58 }
  0x1c   : > { %326 = vst.msk [vmem:[#allocation2 + $0x160] sm:$0x3] %vm283_vm2, %v7566_v2  ;;  %329 = vst.msk [vmem:[#allocation2 + $0x178] sm:$0x3] %vm283_vm2, %v7566_v2 }
  0x1d   : > { %327 = vst.msk [vmem:[#allocation2 + $0x168] sm:$0xff] %vm280_vm1, %v7566_v2  ;;  %328 = vst.msk [vmem:[#allocation2 + $0x170] sm:$0xff] %vm280_vm1, %v7566_v2 }
  0x1e   : > { %330 = vst.msk [vmem:[#allocation2 + $0x180] sm:$0xff] %vm280_vm1, %v7566_v2  ;;  %331 = vst.msk [vmem:[#allocation2 + $0x188] sm:$0xff] %vm280_vm1, %v7566_v2 }
  0x1f   : > { %332 = vst.msk [vmem:[#allocation2 + $0x190] sm:$0x3] %vm283_vm2, %v7566_v2  ;;  %335 = vst.msk [vmem:[#allocation2 + $0x1a8] sm:$0x3] %vm283_vm2, %v7566_v2 }
  0x20   : > { %333 = vst.msk [vmem:[#allocation2 + $0x198] sm:$0xff] %vm280_vm1, %v7566_v2  ;;  %334 = vst.msk [vmem:[#allocation2 + $0x1a0] sm:$0xff] %vm280_vm1, %v7566_v2 }
  0x21   : > { %401 = vst.msk [vmem:[#allocation2 + $0x19] sm:$0xff] %vm280_vm1, %v6023_v10  ;;  %402 = vst.msk [vmem:[#allocation2 + $0x21] sm:$0xff] %vm280_vm1, %v6024_v11 }
  0x22   : > { %403 = vst.msk [vmem:[#allocation2 + $0x31] sm:$0xff] %vm280_vm1, %v6027_v12  ;;  %404 = vst.msk [vmem:[#allocation2 + $0x39] sm:$0xff] %vm280_vm1, %v6028_v13 }
  0x23   : > { %405 = vst.msk [vmem:[#allocation2 + $0x49] sm:$0xff] %vm280_vm1, %v6031_v16  ;;  %406 = vst.msk [vmem:[#allocation2 + $0x51] sm:$0xff] %vm280_vm1, %v6032_v17  ;;  %v965_v17 = vsel %vm767_vm0, %v7732_v3, 0 }
  0x24   : > { %407 = vst.msk [vmem:[#allocation2 + $0x61] sm:$0xff] %vm280_vm1, %v6035_v21  ;;  %408 = vst.msk [vmem:[#allocation2 + $0x69] sm:$0xff] %vm280_vm1, %v6036_v22 }
  0x25   : > { %409 = vst.msk [vmem:[#allocation2 + $0x79] sm:$0xff] %vm280_vm1, %v6039_v23  ;;  %410 = vst.msk [vmem:[#allocation2 + $0x81] sm:$0xff] %vm280_vm1, %v6040_v24 }
  0x26   : > { %411 = vst.msk [vmem:[#allocation2 + $0x91] sm:$0xff] %vm280_vm1, %v6043_v31  ;;  %412 = vst.msk [vmem:[#allocation2 + $0x99] sm:$0xff] %vm280_vm1, %v6044_v34 }
  0x27   : > { %413 = vst.msk [vmem:[#allocation2 + $0xa9] sm:$0xff] %vm280_vm1, %v6047_v35  ;;  %414 = vst.msk [vmem:[#allocation2 + $0xb1] sm:$0xff] %vm280_vm1, %v6048_v36 }
  0x28   : > { %415 = vst.msk [vmem:[#allocation2 + $0xc1] sm:$0xff] %vm280_vm1, %v6051_v37  ;;  %416 = vst.msk [vmem:[#allocation2 + $0xc9] sm:$0xff] %vm280_vm1, %v6052_v41  ;;  %v436_v59 = vld [vmem:[#allocation2 + $0x18] sm:$0xff]  ;;  %v437_v60 = vld [vmem:[#allocation2 + $0x20] sm:$0xff] }
  0x29   : > { %417 = vst.msk [vmem:[#allocation2 + $0xd9] sm:$0xff] %vm280_vm1, %v6055_v42  ;;  %418 = vst.msk [vmem:[#allocation2 + $0xe1] sm:$0xff] %vm280_vm1, %v6056_v45  ;;  %v438_v61 = vld [vmem:[#allocation2 + $0x28] sm:$0x3]  ;;  %v7798_v0 = vpack.c.bf16 %v437_v60, %v436_v59  ;;  %v439_v4 = vld [vmem:[#allocation2 + $0x30] sm:$0xff] }
  0x2a   : > { %419 = vst.msk [vmem:[#allocation2 + $0xf1] sm:$0xff] %vm280_vm1, %v6059_v46  ;;  %420 = vst.msk [vmem:[#allocation2 + $0xf9] sm:$0xff] %vm280_vm1, %v6060_v47  ;;  %v7800_v1 = vpack.c.bf16 %v438_v61, %v438_v61  ;;  %v440_v5 = vld [vmem:[#allocation2 + $0x38] sm:$0xff]  ;;  %v441_v6 = vld [vmem:[#allocation2 + $0x40] sm:$0x3] }
  0x2b   : > { %421 = vst.msk [vmem:[#allocation2 + $0x109] sm:$0xff] %vm280_vm1, %v6063_v48  ;;  %422 = vst.msk [vmem:[#allocation2 + $0x111] sm:$0xff] %vm280_vm1, %v6064_v51  ;;  %v7806_v7 = vpack.c.bf16 %v440_v5, %v439_v4  ;;  %v7808_v8 = vpack.c.bf16 %v441_v6, %v441_v6  ;;  %v442_v9 = vld [vmem:[#allocation2 + $0x48] sm:$0xff]  ;;  %v443_v10 = vld [vmem:[#allocation2 + $0x50] sm:$0xff]  ;;  %v538_v12 = vshrl.u32 %v7798_v0, 16  ;;  %v540_v13 = vshll.u32 %v7798_v0, 16 }
  0x2c   : > { %423 = vst.msk [vmem:[#allocation2 + $0x121] sm:$0xff] %vm280_vm1, %v6067_v52  ;;  %424 = vst.msk [vmem:[#allocation2 + $0x129] sm:$0xff] %vm280_vm1, %v6068_v53  ;;  %v444_v11 = vld [vmem:[#allocation2 + $0x58] sm:$0x3]  ;;  %v545_v16 = vshll.u32 %v7800_v1, 16  ;;  %v445_v18 = vld [vmem:[#allocation2 + $0x60] sm:$0xff]  ;;  %v7820_v23 = vpack.c.bf16 %v443_v10, %v442_v9 }
  0x2d   : > { %425 = vst.msk [vmem:[#allocation2 + $0x139] sm:$0xff] %vm280_vm1, %v6071_v54  ;;  %426 = vst.msk [vmem:[#allocation2 + $0x141] sm:$0xff] %vm280_vm1, %v6072_v55  ;;  %v446_v19 = vld [vmem:[#allocation2 + $0x68] sm:$0xff]  ;;  %v550_v20 = vshrl.u32 %v7806_v7, 16  ;;  %v552_v21 = vshll.u32 %v7806_v7, 16  ;;  %v557_v22 = vshll.u32 %v7808_v8, 16  ;;  %v7822_v27 = vpack.c.bf16 %v444_v11, %v444_v11 }
  0x2e   : > { %427 = vst.msk [vmem:[#allocation2 + $0x151] sm:$0xff] %vm280_vm1, %v6075_v56  ;;  %428 = vst.msk [vmem:[#allocation2 + $0x159] sm:$0xff] %vm280_vm1, %v6076_v57  ;;  %v447_v24 = vld [vmem:[#allocation2 + $0x70] sm:$0x3]  ;;  %v542_v25 = vrot.slane %v540_v13, 1  ;;  %v547_v26 = vrot.slane %v545_v16, 1  ;;  %v7824_v28 = vpack.c.bf16 %v446_v19, %v445_v18 }
  0x2f   : > { %429 = vst.msk [vmem:[#allocation2 + $0x169] sm:$0xff] %vm280_vm1, %v6079_v62  ;;  %430 = vst.msk [vmem:[#allocation2 + $0x171] sm:$0xff] %vm280_vm1, %v6080_v63  ;;  %v448_v29 = vld [vmem:[#allocation2 + $0x78] sm:$0xff]  ;;  %v449_v30 = vld [vmem:[#allocation2 + $0x80] sm:$0xff]  ;;  %v554_v3 = vrot.slane %v552_v21, 1  ;;  %v559_v31 = vrot.slane %v557_v22, 1  ;;  %v7829_v36 = vpack.c.bf16 %v447_v24, %v447_v24 }
  0x30   : > { %v562_v32 = vshrl.u32 %v7820_v23, 16  ;;  %v564_v33 = vshll.u32 %v7820_v23, 16  ;;  %v543_v34 = vor.u32 %v542_v25, %v538_v12  ;;  %v569_v35 = vshll.u32 %v7822_v27, 16  ;;  %v450_v38 = vld [vmem:[#allocation2 + $0x88] sm:$0x3]  ;;  %v451_v43 = vld [vmem:[#allocation2 + $0x90] sm:$0xff] }
  0x31   : > { %v574_v37 = vshrl.u32 %v7824_v28, 16  ;;  %v555_v39 = vor.u32 %v554_v3, %v550_v20  ;;  %v576_v41 = vshll.u32 %v7824_v28, 16  ;;  %v7833_v42 = vpack.c.bf16 %v449_v30, %v448_v29  ;;  %v452_v44 = vld [vmem:[#allocation2 + $0x98] sm:$0xff]  ;;  %v453_v47 = vld [vmem:[#allocation2 + $0xa0] sm:$0x3]  ;;  %v454_v59 = vld [vmem:[#allocation2 + $0xa8] sm:$0xff] }
  0x32   : > { %v566_v40 = vrot.slane %v564_v33, 1  ;;  %v7836_v45 = vsel %vm524_vm3, %v543_v34, %v547_v26  ;;  %v581_v46 = vshll.u32 %v7829_v36, 16  ;;  %v7842_v48 = vld [vmem:[%s9381_s1 + $0x4] sm:$0x3]  ;;  %v7849_v51 = vpack.c.bf16 %v450_v38, %v450_v38  ;;  %v455_v60 = vld [vmem:[#allocation2 + $0xb0] sm:$0xff]  ;;  %v458_v63 = vld [vmem:[#allocation2 + $0xc8] sm:$0xff] }
  0x33   : > { %6409 = vmatmul.mubr.msk.bf16.vlgmr.msra.gmra.mrb[0].mxu0 %vm280_vm1, %v7836_v45  ;;  %v7847_v49 = vsel %vm524_vm3, %v555_v39, %v559_v31  ;;  %v578_v50 = vrot.slane %v576_v41, 1  ;;  %v571_v53 = vrot.slane %v569_v35, 1  ;;  %v588_v54 = vshll.u32 %v7833_v42, 16  ;;  %v457_v62 = vld [vmem:[#allocation2 + $0xc0] sm:$0xff]  ;;  %v459_v19 = vld [vmem:[#allocation2 + $0xd0] sm:$0x3] }
  0x34   : > { %6441 = vmatpush3.bf16.msra.mxu0 %v965_v17  ;;  %6412 = vmatprep.mubr.msk.bf16.mxu0 %vm280_vm1, %v7847_v49  ;;  %v567_v52 = vor.u32 %v566_v40, %v562_v32  ;;  %v7854_v55 = vpack.c.bf16 %v452_v44, %v451_v43  ;;  %v583_v57 = vrot.slane %v581_v46, 1  ;;  %v7856_v58 = vpack.c.bf16 %v453_v47, %v453_v47  ;;  %v456_v17 = vld [vmem:[#allocation2 + $0xb8] sm:$0x3]  ;;  %v461_v26 = vld [vmem:[#allocation2 + $0xe0] sm:$0xff]  ;;  %v463_v32 = vld [vmem:[#allocation2 + $0xf0] sm:$0xff] }
  0x35   : > { %v579_v56 = vor.u32 %v578_v50, %v574_v37  ;;  %7532 = vmatprep.subr.msk.bf16.mxu0 %vm767_vm0, %v7842_v48  ;;  %v586_v4 = vshrl.u32 %v7833_v42, 16  ;;  %v593_v5 = vshll.u32 %v7849_v51, 16  ;;  %v590_v9 = vrot.slane %v588_v54, 1  ;;  %v460_v25 = vld [vmem:[#allocation2 + $0xd8] sm:$0xff]  ;;  %v462_v41 = vld [vmem:[#allocation2 + $0xe8] sm:$0x3] }
  0x36   : > { %v600_v61 = vshll.u32 %v7854_v55, 16  ;;  %v7864_v6 = vsel %vm524_vm3, %v567_v52, %v571_v53  ;;  %v598_v10 = vshrl.u32 %v7854_v55, 16  ;;  %v7867_v11 = vpack.c.bf16 %v455_v60, %v454_v59  ;;  %v464_v33 = vld [vmem:[#allocation2 + $0xf8] sm:$0xff]  ;;  %v465_v50 = vld [vmem:[#allocation2 + $0x100] sm:$0x3]  ;;  %2812 = vst.msk [vmem:[#allocation3 + $0x38] sm:$0xff] %vm2803_vm5, %v7566_v2 }
  0x37   : > { %v7870_v12 = vsel %vm524_vm3, %v579_v56, %v583_v57  ;;  %v605_v16 = vshll.u32 %v7856_v58, 16  ;;  %v7873_v18 = vpack.c.bf16 %v458_v63, %v457_v62  ;;  %v591_v20 = vor.u32 %v590_v9, %v586_v4  ;;  %v466_v62 = vld [vmem:[#allocation2 + $0x108] sm:$0xff]  ;;  %v467_v63 = vld [vmem:[#allocation2 + $0x110] sm:$0xff]  ;;  %v469_v4 = vld [vmem:[#allocation2 + $0x120] sm:$0xff]  ;;  %2804 = vst.msk [vmem:[#allocation3] sm:$0xff] %vm2803_vm5, %v7566_v2 }
  0x38   : > { %v602_v13 = vrot.slane %v600_v61, 1  ;;  %v595_v21 = vrot.slane %v593_v5, 1  ;;  %v7879_v22 = vpack.c.bf16 %v456_v17, %v456_v17  ;;  %v612_v24 = vshll.u32 %v7867_v11, 16  ;;  %v470_v5 = vld [vmem:[#allocation2 + $0x128] sm:$0xff]  ;;  %2805 = vst.msk [vmem:[#allocation3 + $0x8] sm:$0xff] %vm2803_vm5, %v7566_v2  ;;  %2808 = vst.msk [vmem:[#allocation3 + $0x18] sm:$0xff] %vm2803_vm5, %v7566_v2 }
  0x39   : > { %v607_v30 = vrot.slane %v605_v16, 1  ;;  %v7882_v3 = vpack.c.bf16 %v459_v19, %v459_v19  ;;  %v624_v31 = vshll.u32 %v7873_v18, 16  ;;  %v610_v34 = vshrl.u32 %v7867_v11, 16  ;;  %2809 = vst.msk [vmem:[#allocation3 + $0x20] sm:$0xff] %vm2803_vm5, %v7566_v2  ;;  %2811 = vst.msk [vmem:[#allocation3 + $0x30] sm:$0xff] %vm2803_vm5, %v7566_v2 }
  0x3a   : > { %v603_v29 = vor.u32 %v602_v13, %v598_v10  ;;  %v7886_v35 = vpack.c.bf16 %v461_v26, %v460_v25  ;;  %v7889_v37 = vsel %vm524_vm3, %v591_v20, %v595_v21  ;;  %v614_v38 = vrot.slane %v612_v24, 1  ;;  %v468_v25 = vld [vmem:[#allocation2 + $0x118] sm:$0x3]  ;;  %2814 = vst.msk [vmem:[#allocation3 + $0x48] sm:$0xff] %vm2803_vm5, %v7566_v2  ;;  %2815 = vst.msk [vmem:[#allocation3 + $0x50] sm:$0xff] %vm2803_vm5, %v7566_v2 }
  0x3b   : > { %6413 = vmatmul.mubr.msk.bf16.gmra.mrb[4].mxu0 %vm280_vm1, %v7864_v6  ;;  %v617_v39 = vshll.u32 %v7879_v22, 16  ;;  %v622_v40 = vshrl.u32 %v7873_v18, 16  ;;  %v626_v44 = vrot.slane %v624_v31, 1  ;;  %v629_v46 = vshll.u32 %v7882_v3, 16  ;;  %2817 = vst.msk [vmem:[#allocation3 + $0x60] sm:$0xff] %vm2803_vm5, %v7566_v2  ;;  %2818 = vst.msk [vmem:[#allocation3 + $0x68] sm:$0xff] %vm2803_vm5, %v7566_v2 }
  0x3c   : > { %6416 = vmatprep.mubr.msk.bf16.mxu0 %vm280_vm1, %v7870_v12  ;;  %v7894_v43 = vsel %vm524_vm3, %v603_v29, %v607_v30  ;;  %v7897_v47 = vpack.c.bf16 %v464_v33, %v463_v32  ;;  %v7901_v52 = vpack.c.bf16 %v462_v41, %v462_v41  ;;  %v636_v53 = vshll.u32 %v7886_v35, 16  ;;  %v471_v29 = vld [vmem:[#allocation2 + $0x130] sm:$0x3]  ;;  %v472_v41 = vld [vmem:[#allocation2 + $0x138] sm:$0xff]  ;;  %2820 = vst.msk [vmem:[#allocation3 + $0x78] sm:$0xff] %vm2803_vm5, %v7566_v2 }
  0x3d   : > { %v615_v54 = vor.u32 %v614_v38, %v610_v34  ;;  %v619_v56 = vrot.slane %v617_v39, 1  ;;  %v627_v57 = vor.u32 %v626_v44, %v622_v40  ;;  %v631_v59 = vrot.slane %v629_v46, 1  ;;  %v473_v44 = vld [vmem:[#allocation2 + $0x140] sm:$0xff]  ;;  %v475_v46 = vld [vmem:[#allocation2 + $0x150] sm:$0xff]  ;;  %2821 = vst.msk [vmem:[#allocation3 + $0x80] sm:$0xff] %vm2803_vm5, %v7566_v2  ;;  %2823 = vst.msk [vmem:[#allocation3 + $0x90] sm:$0xff] %vm2803_vm5, %v7566_v2 }
  0x3e   : > { %v7906_v60 = vpack.c.bf16 %v465_v50, %v465_v50  ;;  %v648_v61 = vshll.u32 %v7897_v47, 16  ;;  %v634_v9 = vshrl.u32 %v7886_v35, 16  ;;  %v638_v10 = vrot.slane %v636_v53, 1  ;;  %v476_v50 = vld [vmem:[#allocation2 + $0x158] sm:$0xff]  ;;  %2824 = vst.msk [vmem:[#allocation3 + $0x98] sm:$0xff] %vm2803_vm5, %v7566_v2  ;;  %2826 = vst.msk [vmem:[#allocation3 + $0xa8] sm:$0xff] %vm2803_vm5, %v7566_v2 }
  0x3f   : > { %v641_v13 = vshll.u32 %v7901_v52, 16  ;;  %v7912_v16 = vsel %vm524_vm3, %v615_v54, %v619_v56  ;;  %v646_v17 = vshrl.u32 %v7897_v47, 16  ;;  %v7915_v19 = vpack.c.bf16 %v467_v63, %v466_v62  ;;  %2827 = vst.msk [vmem:[#allocation3 + $0xb0] sm:$0xff] %vm2803_vm5, %v7566_v2  ;;  %2829 = vst.msk [vmem:[#allocation3 + $0xc0] sm:$0xff] %vm2803_vm5, %v7566_v2 }
  0x40   : > { %v7918_v20 = vsel %vm524_vm3, %v627_v57, %v631_v59  ;;  %v650_v21 = vrot.slane %v648_v61, 1  ;;  %v653_v24 = vshll.u32 %v7906_v60, 16  ;;  %v7921_v26 = vpack.c.bf16 %v470_v5, %v469_v4  ;;  %v474_v5 = vld [vmem:[#allocation2 + $0x148] sm:$0x3]  ;;  %2830 = vst.msk [vmem:[#allocation3 + $0xc8] sm:$0xff] %vm2803_vm5, %v7566_v2  ;;  %2832 = vst.msk [vmem:[#allocation3 + $0xd8] sm:$0xff] %vm2803_vm5, %v7566_v2 }
  0x41   : > { %v639_v30 = vor.u32 %v638_v10, %v634_v9  ;;  %v643_v31 = vrot.slane %v641_v13, 1  ;;  %v7927_v32 = vpack.c.bf16 %v468_v25, %v468_v25  ;;  %v660_v33 = vshll.u32 %v7915_v19, 16  ;;  %v477_v10 = vld [vmem:[#allocation2 + $0x160] sm:$0x3]  ;;  %2833 = vst.msk [vmem:[#allocation3 + $0xe0] sm:$0xff] %vm2803_vm5, %v7566_v2  ;;  %2835 = vst.msk [vmem:[#allocation3 + $0xf0] sm:$0xff] %vm2803_vm5, %v7566_v2 }
  0x42   : > { %v651_v34 = vor.u32 %v650_v21, %v646_v17  ;;  %v655_v38 = vrot.slane %v653_v24, 1  ;;  %v7930_v39 = vpack.c.bf16 %v471_v29, %v471_v29  ;;  %v672_v40 = vshll.u32 %v7921_v26, 16  ;;  %2836 = vst.msk [vmem:[#allocation3 + $0xf8] sm:$0xff] %vm2803_vm5, %v7566_v2  ;;  %2838 = vst.msk [vmem:[#allocation3 + $0x108] sm:$0xff] %vm2803_vm5, %v7566_v2 }
  0x43   : > { %6417 = vmatmul.mubr.msk.bf16.gmra.mrb[8].mxu0 %vm280_vm1, %v7889_v37  ;;  %v7934_v53 = vsel %vm524_vm3, %v639_v30, %v643_v31  ;;  %v658_v54 = vshrl.u32 %v7915_v19, 16  ;;  %v662_v56 = vrot.slane %v660_v33, 1  ;;  %v665_v57 = vshll.u32 %v7927_v32, 16  ;;  %v478_v33 = vld [vmem:[#allocation2 + $0x168] sm:$0xff]  ;;  %2839 = vst.msk [vmem:[#allocation3 + $0x110] sm:$0xff] %vm2803_vm5, %v7566_v2  ;;  %2841 = vst.msk [vmem:[#allocation3 + $0x120] sm:$0xff] %vm2803_vm5, %v7566_v2 }
  0x44   : > { %6420 = vmatprep.mubr.msk.bf16.mxu0 %vm280_vm1, %v7894_v43  ;;  %v670_v59 = vshrl.u32 %v7921_v26, 16  ;;  %v7939_v61 = vpack.c.bf16 %v473_v44, %v472_v41  ;;  %v7942_v62 = vsel %vm524_vm3, %v651_v34, %v655_v38  ;;  %v674_v63 = vrot.slane %v672_v40, 1  ;;  %v479_v34 = vld [vmem:[#allocation2 + $0x170] sm:$0xff]  ;;  %2842 = vst.msk [vmem:[#allocation3 + $0x128] sm:$0xff] %vm2803_vm5, %v7566_v2  ;;  %2844 = vst.msk [vmem:[#allocation3 + $0x138] sm:$0xff] %vm2803_vm5, %v7566_v2 }
  0x45   : > { %v677_v4 = vshll.u32 %v7930_v39, 16  ;;  %v7945_v9 = vpack.c.bf16 %v476_v50, %v475_v46  ;;  %v663_v13 = vor.u32 %v662_v56, %v658_v54  ;;  %v667_v17 = vrot.slane %v665_v57, 1  ;;  %2845 = vst.msk [vmem:[#allocation3 + $0x140] sm:$0xff] %vm2803_vm5, %v7566_v2  ;;  %2847 = vst.msk [vmem:[#allocation3 + $0x150] sm:$0xff] %vm2803_vm5, %v7566_v2 }
  0x46   : > { %v7951_v21 = vpack.c.bf16 %v474_v5, %v474_v5  ;;  %v684_v24 = vshll.u32 %v7939_v61, 16  ;;  %v675_v25 = vor.u32 %v674_v63, %v670_v59  ;;  %v7954_v30 = vpack.c.bf16 %v477_v10, %v477_v10  ;;  %v480_v59 = vld [vmem:[#allocation2 + $0x178] sm:$0x3]  ;;  %2848 = vst.msk [vmem:[#allocation3 + $0x158] sm:$0xff] %vm2803_vm5, %v7566_v2  ;;  %2850 = vst.msk [vmem:[#allocation3 + $0x168] sm:$0xff] %vm2803_vm5, %v7566_v2 }
  0x47   : > { %v679_v29 = vrot.slane %v677_v4, 1  ;;  %v696_v31 = vshll.u32 %v7945_v9, 16  ;;  %v682_v38 = vshrl.u32 %v7939_v61, 16  ;;  %v7959_v40 = vsel %vm524_vm3, %v663_v13, %v667_v17  ;;  %2851 = vst.msk [vmem:[#allocation3 + $0x170] sm:$0xff] %vm2803_vm5, %v7566_v2  ;;  %2853 = vst.msk [vmem:[#allocation3 + $0x180] sm:$0xff] %vm2803_vm5, %v7566_v2 }
  0x48   : > { %v686_v41 = vrot.slane %v684_v24, 1  ;;  %v689_v44 = vshll.u32 %v7951_v21, 16  ;;  %v7962_v46 = vpack.c.bf16 %v479_v34, %v478_v33  ;;  %v694_v54 = vshrl.u32 %v7945_v9, 16  ;;  %2854 = vst.msk [vmem:[#allocation3 + $0x188] sm:$0xff] %vm2803_vm5, %v7566_v2  ;;  %2856 = vst.msk [vmem:[#allocation3 + $0x198] sm:$0xff] %vm2803_vm5, %v7566_v2 }
  0x49   : > { %v7965_v50 = vsel %vm524_vm3, %v675_v25, %v679_v29  ;;  %v698_v56 = vrot.slane %v696_v31, 1  ;;  %v701_v57 = vshll.u32 %v7954_v30, 16  ;;  %v7973_v5 = vpack.c.bf16 %v480_v59, %v480_v59  ;;  %2857 = vst.msk [vmem:[#allocation3 + $0x1a0] sm:$0xff] %vm2803_vm5, %v7566_v2 }
  0x4a   : > { %v687_v63 = vor.u32 %v686_v41, %v682_v38  ;;  %v691_v4 = vrot.slane %v689_v44, 1  ;;  %v708_v10 = vshll.u32 %v7962_v46, 16  ;;  %v706_v25 = vshrl.u32 %v7962_v46, 16  ;;  %2813 = vst.msk [vmem:[#allocation3 + $0x40] sm:$0x3] %vm2806_vm6, %v7566_v2 }
  0x4b   : > { %6421 = vmatmul.mubr.msk.bf16.gmra.mrb[12].mxu0 %vm280_vm1, %v7912_v16  ;;  %v699_v13 = vor.u32 %v698_v56, %v694_v54  ;;  %v703_v17 = vrot.slane %v701_v57, 1  ;;  %v713_v31 = vshll.u32 %v7973_v5, 16  ;;  %v1260_v44 = vsel %vm767_vm0, %v7842_v48, 0  ;;  %v5695_v54 = vld [vmem:[%s9381_s1 + $0x6] sm:$0x3]  ;;  %v6099_v48 = vld [vmem:[%s7748_s10 + $0x78] sm:$0xff]  }
  0x4c   : > { %6424 = vmatprep.mubr.msk.bf16.mxu0 %vm280_vm1, %v7918_v20  ;;  %v7977_v24 = vsel %vm524_vm3, %v687_v63, %v691_v4  ;;  %v710_v29 = vrot.slane %v708_v10, 1  ;;  %v6083_v56 = vunpack.c.l.bf16 %v6099_v48  ;;  %v6084_v57 = vunpack.c.h.bf16 %v6099_v48  ;;  %2807 = vst.msk [vmem:[#allocation3 + $0x10] sm:$0x3] %vm2806_vm6, %v7566_v2  ;;  %2810 = vst.msk [vmem:[#allocation3 + $0x28] sm:$0x3] %vm2806_vm6, %v7566_v2 }
  0x4d   : > { %v7982_v33 = vsel %vm524_vm3, %v699_v13, %v703_v17  ;;  %v715_v38 = vrot.slane %v713_v31, 1  ;;  %v1161_v59 = vrot.slane %v7753_v14, 1  ;;  %v1162_v63 = vrot.slane %v7755_v15, 1  ;;  %2816 = vst.msk [vmem:[#allocation3 + $0x58] sm:$0x3] %vm2806_vm6, %v7566_v2 }
  0x4e   : > { %v711_v34 = vor.u32 %v710_v29, %v706_v25  ;;  %431 = vst.msk [vmem:[#allocation2 + $0x181] sm:$0xff] %vm280_vm1, %v6083_v56  ;;  %432 = vst.msk [vmem:[#allocation2 + $0x189] sm:$0xff] %vm280_vm1, %v6084_v57  ;;  %v1165_v10 = vrot.slane %v7800_v1, 1  ;;  %v1164_v13 = vrot.slane %v7798_v0, 1  ;;  %v1167_v17 = vrot.slane %v7806_v7, 1 }
  0x4f   : > { %v1163_v4 = vsel %vm1160_vm4, %v1161_v59, %v1162_v63  ;;  %v1168_v25 = vrot.slane %v7808_v8, 1  ;;  %v1461_v15 = vsel %vm767_vm0, %v5695_v54, 0  ;;  %v5712_v1 = vld [vmem:[%s9381_s1 + $0x8] sm:$0x3]  ;;  %v1170_v8 = vrot.slane %v7820_v23, 1 }
  0x50   : > { %v7989_v41 = vsel %vm524_vm3, %v711_v34, %v715_v38  ;;  %v1171_v31 = vrot.slane %v7822_v27, 1  ;;  %v1173_v34 = vrot.slane %v7824_v28, 1  ;;  %v1174_v38 = vrot.slane %v7829_v36, 1  ;;  %2819 = vst.msk [vmem:[#allocation3 + $0x70] sm:$0x3] %vm2806_vm6, %v7566_v2 }
  0x51   : > { %v8047_v29 = vsel %vm1160_vm4, %v1167_v17, %v1168_v25  ;;  %v1176_v27 = vrot.slane %v7833_v42, 1  ;;  %v1177_v48 = vrot.slane %v7849_v51, 1  ;;  %v1179_v36 = vrot.slane %v7854_v55, 1  ;;  %2822 = vst.msk [vmem:[#allocation3 + $0x88] sm:$0x3] %vm2806_vm6, %v7566_v2 }
  0x52   : > { %v1180_v56 = vrot.slane %v7856_v58, 1  ;;  %v1182_v63 = vrot.slane %v7867_v11, 1  ;;  %v1183_v51 = vrot.slane %v7879_v22, 1  ;;  %v1186_v58 = vrot.slane %v7882_v3, 1  ;;  %2825 = vst.msk [vmem:[#allocation3 + $0xa0] sm:$0x3] %vm2806_vm6, %v7566_v2 }
  0x53   : > { %6425 = vmatmul.mubr.msk.bf16.gmra.mrb[16].mxu0 %vm280_vm1, %v7934_v53  ;;  %v8076_v57 = vsel %vm1160_vm4, %v1176_v27, %v1177_v48  ;;  %v1188_v17 = vrot.slane %v7886_v35, 1  ;;  %v1189_v22 = vrot.slane %v7901_v52, 1  ;;  %v1191_v25 = vrot.slane %v7897_v47, 1  ;;  %2828 = vst.msk [vmem:[#allocation3 + $0xb8] sm:$0x3] %vm2806_vm6, %v7566_v2 }
  0x54   : > { %6428 = vmatprep.mubr.msk.bf16.mxu0 %vm280_vm1, %v7942_v62  ;;  %v8079_v59 = vsel %vm1160_vm4, %v1179_v36, %v1180_v56  ;;  %v1192_v3 = vrot.slane %v7906_v60, 1  ;;  %v1195_v52 = vrot.slane %v7927_v32, 1  ;;  %v1198_v60 = vrot.slane %v7930_v39, 1  ;;  %2831 = vst.msk [vmem:[#allocation3 + $0xd0] sm:$0x3] %vm2806_vm6, %v7566_v2 }
  0x55   : > { %v1200_v48 = vrot.slane %v7939_v61, 1  ;;  %v1201_v32 = vrot.slane %v7951_v21, 1  ;;  %v1203_v36 = vrot.slane %v7945_v9, 1  ;;  %v1204_v39 = vrot.slane %v7954_v30, 1  ;;  %2834 = vst.msk [vmem:[#allocation3 + $0xe8] sm:$0x3] %vm2806_vm6, %v7566_v2 }
  0x56   : > { %v1207_v21 = vrot.slane %v7973_v5, 1  ;;  %v1673_v30 = vsel %vm767_vm0, %v5712_v1, 0  ;;  %v482_v5 = vld [vmem:[#allocation2 + $0x188] sm:$0xff]  ;;  %2837 = vst.msk [vmem:[#allocation3 + $0x100] sm:$0x3] %vm2806_vm6, %v7566_v2 }
  0x57   : > { %v8132_v56 = vsel %vm1160_vm4, %v1200_v48, %v1201_v32  ;;  %2840 = vst.msk [vmem:[#allocation3 + $0x118] sm:$0x3] %vm2806_vm6, %v7566_v2  ;;  %2843 = vst.msk [vmem:[#allocation3 + $0x130] sm:$0x3] %vm2806_vm6, %v7566_v2 }
  0x58   : > { %2846 = vst.msk [vmem:[#allocation3 + $0x148] sm:$0x3] %vm2806_vm6, %v7566_v2  ;;  %2849 = vst.msk [vmem:[#allocation3 + $0x160] sm:$0x3] %vm2806_vm6, %v7566_v2 }
  0x59   : > { %2852 = vst.msk [vmem:[#allocation3 + $0x178] sm:$0x3] %vm2806_vm6, %v7566_v2  ;;  %2855 = vst.msk [vmem:[#allocation3 + $0x190] sm:$0x3] %vm2806_vm6, %v7566_v2 }
  0x5a   : > { %2858 = vst.msk [vmem:[#allocation3 + $0x1a8] sm:$0x3] %vm2806_vm6, %v7566_v2 }
  0x5b   : > { %6429 = vmatmul.mubr.msk.bf16.gmra.mrb[20].mxu0 %vm280_vm1, %v7959_v40 }
  0x5c   : > { %6432 = vmatprep.mubr.msk.bf16.mxu0 %vm280_vm1, %v7965_v50 }
  0x63   : > { %6433 = vmatmul.mubr.msk.bf16.gmra.mrb[24].mxu0 %vm280_vm1, %v7977_v24 }
  0x64   : > { %6436 = vmatprep.mubr.msk.bf16.mxu0 %vm280_vm1, %v7982_v33 }
  0x6b   : > { %6437 = vmatmul.mubr.msk.bf16.gmra.mrb[28].mxu0 %vm280_vm1, %v7989_v41 }
  0x6c   : > { %6442 = vmatprep.mubr.msk.bf16.mxu0 %vm280_vm1, %v7753_v14  ;;  %v8043_v14 = vsel %vm1160_vm4, %v1164_v13, %v1165_v10  ;;  %v8090_v10 = vsel %vm1160_vm4, %v1182_v63, %v1183_v51  ;;  %v8135_v63 = vsel %vm1160_vm4, %v1203_v36, %v1204_v39  ;;  %v1206_v51 = vrot.slane %v7962_v46, 1  ;;  %v5763_v39 = vld [vmem:[%s9381_s1 + $0xe] sm:$0x3] }
  0x73   : > { %6443 = vmatmul.mubr.msk.bf16.vlgmr.msra.gmra.mrb[0].mxu0 %vm280_vm1, %v7798_v0 }
  0x74   : > { %6475 = vmatpush3.bf16.msra.mxu0 %v1260_v44  ;;  %6446 = vmatprep.mubr.msk.bf16.mxu0 %vm280_vm1, %v7806_v7  ;;  %v8062_v44 = vsel %vm1160_vm4, %v1170_v8, %v1171_v31  ;;  %v8107_v8 = vsel %vm1160_vm4, %v1191_v25, %v1192_v3  ;;  %v1194_v31 = vrot.slane %v7915_v19, 1 }
  0x75   : > { %7533 = vmatprep.subr.msk.bf16.mxu0 %vm767_vm0, %v5695_v54  ;;  %v8065_v54 = vsel %vm1160_vm4, %v1173_v34, %v1174_v38  ;;  %v1197_v34 = vrot.slane %v7921_v26, 1 }
  0x76   : > { %v8118_v38 = vsel %vm1160_vm4, %v1194_v31, %v1195_v52 }
  0x77   : > { %v8121_v27 = vsel %vm1160_vm4, %v1197_v34, %v1198_v60 }
  0x7b   : > { %6447 = vmatmul.mubr.msk.bf16.gmra.mrb[4].mxu0 %vm280_vm1, %v7820_v23 }
  0x7c   : > { %6450 = vmatprep.mubr.msk.bf16.mxu0 %vm280_vm1, %v7824_v28 }
  0x83   : > { %6451 = vmatmul.mubr.msk.bf16.gmra.mrb[8].mxu0 %vm280_vm1, %v7833_v42 }
  0x84   : > { %6454 = vmatprep.mubr.msk.bf16.mxu0 %vm280_vm1, %v7854_v55 }
  0x8b   : > { %6455 = vmatmul.mubr.msk.bf16.gmra.mrb[12].mxu0 %vm280_vm1, %v7867_v11 }
  0x8c   : > { %6458 = vmatprep.mubr.msk.bf16.mxu0 %vm280_vm1, %v7873_v18 }
  0x93   : > { %6459 = vmatmul.mubr.msk.bf16.gmra.mrb[16].mxu0 %vm280_vm1, %v7886_v35 }
  0x94   : > { %6462 = vmatprep.mubr.msk.bf16.mxu0 %vm280_vm1, %v7897_v47 }
  0x9b   : > { %6463 = vmatmul.mubr.msk.bf16.gmra.mrb[20].mxu0 %vm280_vm1, %v7915_v19 }
  0x9c   : > { %6466 = vmatprep.mubr.msk.bf16.mxu0 %vm280_vm1, %v7921_v26 }
  0xa3   : > { %6467 = vmatmul.mubr.msk.bf16.gmra.mrb[24].mxu0 %vm280_vm1, %v7939_v61 }
  0xa4   : > { %6470 = vmatprep.mubr.msk.bf16.mxu0 %vm280_vm1, %v7945_v9 }
  0xab   : > { %6471 = vmatmul.mubr.msk.bf16.gmra.mrb[28].mxu0 %vm280_vm1, %v7962_v46 }
  0xac   : > { %6476 = vmatprep.mubr.msk.bf16.mxu0 %vm280_vm1, %v1163_v4  ;;  %v1185_v4 = vrot.slane %v7873_v18, 1 }
  0xae   : > { %v8093_v13 = vsel %vm1160_vm4, %v1185_v4, %v1186_v58  ;;  %v8144_v4 = vsel %vm1160_vm4, %v1206_v51, %v1207_v21  ;;  %v5729_v58 = vld [vmem:[%s9381_s1 + $0xa] sm:$0x3] }
  0xb3   : > { %6477 = vmatmul.mubr.msk.bf16.vlgmr.msra.gmra.mrb[0].mxu0 %vm280_vm1, %v8043_v14 }
  0xb4   : > { %6509 = vmatpush3.bf16.msra.mxu0 %v1461_v15  ;;  %6480 = vmatprep.mubr.msk.bf16.mxu0 %vm280_vm1, %v8047_v29  ;;  %v8104_v15 = vsel %vm1160_vm4, %v1188_v17, %v1189_v22  ;;  %v1879_v17 = vsel %vm767_vm0, %v5729_v58, 0  ;;  %v5746_v22 = vld [vmem:[%s9381_s1 + $0xc] sm:$0x3] }
  0xb5   : > { %7534 = vmatprep.subr.msk.bf16.mxu0 %vm767_vm0, %v5712_v1  ;;  %v2080_v36 = vsel %vm767_vm0, %v5746_v22, 0 }
  0xbb   : > { %6481 = vmatmul.mubr.msk.bf16.gmra.mrb[4].mxu0 %vm280_vm1, %v8062_v44 }
  0xbc   : > { %6484 = vmatprep.mubr.msk.bf16.mxu0 %vm280_vm1, %v8065_v54 }
  0xc3   : > { %6485 = vmatmul.mubr.msk.bf16.gmra.mrb[8].mxu0 %vm280_vm1, %v8076_v57 }
  0xc4   : > { %6488 = vmatprep.mubr.msk.bf16.mxu0 %vm280_vm1, %v8079_v59 }
  0xcb   : > { %6489 = vmatmul.mubr.msk.bf16.gmra.mrb[12].mxu0 %vm280_vm1, %v8090_v10 }
  0xcc   : > { %6492 = vmatprep.mubr.msk.bf16.mxu0 %vm280_vm1, %v8093_v13 }
  0xd3   : > { %6493 = vmatmul.mubr.msk.bf16.gmra.mrb[16].mxu0 %vm280_vm1, %v8104_v15 }
  0xd4   : > { %6496 = vmatprep.mubr.msk.bf16.mxu0 %vm280_vm1, %v8107_v8 }
  0xdb   : > { %6497 = vmatmul.mubr.msk.bf16.gmra.mrb[20].mxu0 %vm280_vm1, %v8118_v38 }
  0xdc   : > { %6500 = vmatprep.mubr.msk.bf16.mxu0 %vm280_vm1, %v8121_v27 }
  0xe3   : > { %6501 = vmatmul.mubr.msk.bf16.gmra.mrb[24].mxu0 %vm280_vm1, %v8132_v56 }
  0xe4   : > { %6504 = vmatprep.mubr.msk.bf16.mxu0 %vm280_vm1, %v8135_v63 }
  0xeb   : > { %6505 = vmatmul.mubr.msk.bf16.gmra.mrb[28].mxu0 %vm280_vm1, %v8144_v4 }
  0xec   : > { %6510 = vmatprep.mubr.msk.bf16.mxu0 %vm280_vm1, %v7798_v0  ;;  %v481_v0 = vld [vmem:[#allocation2 + $0x180] sm:$0xff] }
  0xed   : > { %v8183_v1 = vpack.c.bf16 %v482_v5, %v481_v0 }
  0xef   : > { %v1658_v3 = vshll.u32 %v8183_v1, 16  ;;  %v1656_v31 = vshrl.u32 %v8183_v1, 16 }
  0xf1   : > { %v1660_v52 = vrot.slane %v1658_v3, 1 }
  0xf3   : > { %6511 = vmatmul.mubr.msk.bf16.vlgmr.msra.gmra.mrb[0].mxu0 %vm280_vm1, %v7806_v7  ;;  %v1661_v60 = vor.u32 %v1660_v52, %v1656_v31 }
  0xf4   : > { %6543 = vmatpush3.bf16.msra.mxu0 %v1673_v30  ;;  %6514 = vmatprep.mubr.msk.bf16.mxu0 %vm280_vm1, %v7820_v23  ;;  %v2292_v30 = vsel %vm767_vm0, %v5763_v39, 0 }
  0xf5   : > { %7535 = vmatprep.subr.msk.bf16.mxu0 %vm767_vm0, %v5729_v58  ;;  %v5780_v58 = vld [vmem:[%s9381_s1 + $0x10] sm:$0x3] }
  0xfb   : > { %6515 = vmatmul.mubr.msk.bf16.gmra.mrb[4].mxu0 %vm280_vm1, %v7824_v28 }
  0xfc   : > { %6518 = vmatprep.mubr.msk.bf16.mxu0 %vm280_vm1, %v7833_v42 }
 0x103   : > { %6519 = vmatmul.mubr.msk.bf16.gmra.mrb[8].mxu0 %vm280_vm1, %v7854_v55 }
 0x104   : > { %6522 = vmatprep.mubr.msk.bf16.mxu0 %vm280_vm1, %v7867_v11 }
 0x10b   : > { %6523 = vmatmul.mubr.msk.bf16.gmra.mrb[12].mxu0 %vm280_vm1, %v7873_v18 }
 0x10c   : > { %6526 = vmatprep.mubr.msk.bf16.mxu0 %vm280_vm1, %v7886_v35 }
 0x113   : > { %6527 = vmatmul.mubr.msk.bf16.gmra.mrb[16].mxu0 %vm280_vm1, %v7897_v47 }
 0x114   : > { %6530 = vmatprep.mubr.msk.bf16.mxu0 %vm280_vm1, %v7915_v19 }
 0x11b   : > { %6531 = vmatmul.mubr.msk.bf16.gmra.mrb[20].mxu0 %vm280_vm1, %v7921_v26 }
 0x11c   : > { %6534 = vmatprep.mubr.msk.bf16.mxu0 %vm280_vm1, %v7939_v61 }
 0x123   : > { %6535 = vmatmul.mubr.msk.bf16.gmra.mrb[24].mxu0 %vm280_vm1, %v7945_v9 }
 0x124   : > { %6538 = vmatprep.mubr.msk.bf16.mxu0 %vm280_vm1, %v7962_v46 }
 0x12b   : > { %6539 = vmatmul.mubr.msk.bf16.gmra.mrb[28].mxu0 %vm280_vm1, %v8183_v1 }
 0x12c   : > { %6544 = vmatprep.mubr.msk.bf16.mxu0 %vm280_vm1, %v7836_v45  ;;  %v483_v45 = vld [vmem:[#allocation2 + $0x190] sm:$0x3] }
 0x12d   : > { %v520_v25 = vpack.c.bf16 %v483_v45, %v483_v45 }
 0x12f   : > { %v1663_v34 = vshll.u32 %v520_v25, 16  ;;  %v1871_v51 = vrot.slane %v520_v25, 1 }
 0x131   : > { %v1665_v48 = vrot.slane %v1663_v34, 1 }
 0x133   : > { %6545 = vmatmul.mubr.msk.bf16.vlgmr.msra.gmra.mrb[0].mxu0 %vm280_vm1, %v7847_v49  ;;  %v8225_v32 = vsel %vm524_vm3, %v1661_v60, %v1665_v48 }
 0x134   : > { %6577 = vmatpush3.bf16.msra.mxu0 %v1879_v17  ;;  %6548 = vmatprep.mubr.msk.bf16.mxu0 %vm280_vm1, %v7864_v6 }
 0x135   : > { %7536 = vmatprep.subr.msk.bf16.mxu0 %vm767_vm0, %v5746_v22 }
 0x13b   : > { %6549 = vmatmul.mubr.msk.bf16.gmra.mrb[4].mxu0 %vm280_vm1, %v7870_v12 }
 0x13c   : > { %6552 = vmatprep.mubr.msk.bf16.mxu0 %vm280_vm1, %v7889_v37 }
 0x143   : > { %6553 = vmatmul.mubr.msk.bf16.gmra.mrb[8].mxu0 %vm280_vm1, %v7894_v43 }
 0x144   : > { %6556 = vmatprep.mubr.msk.bf16.mxu0 %vm280_vm1, %v7912_v16 }
 0x14b   : > { %6557 = vmatmul.mubr.msk.bf16.gmra.mrb[12].mxu0 %vm280_vm1, %v7918_v20 }
 0x14c   : > { %6560 = vmatprep.mubr.msk.bf16.mxu0 %vm280_vm1, %v7934_v53 }
 0x153   : > { %6561 = vmatmul.mubr.msk.bf16.gmra.mrb[16].mxu0 %vm280_vm1, %v7942_v62 }
 0x154   : > { %6564 = vmatprep.mubr.msk.bf16.mxu0 %vm280_vm1, %v7959_v40 }
 0x15b   : > { %6565 = vmatmul.mubr.msk.bf16.gmra.mrb[20].mxu0 %vm280_vm1, %v7965_v50 }
 0x15c   : > { %6568 = vmatprep.mubr.msk.bf16.mxu0 %vm280_vm1, %v7977_v24 }
 0x163   : > { %6569 = vmatmul.mubr.msk.bf16.gmra.mrb[24].mxu0 %vm280_vm1, %v7982_v33 }
 0x164   : > { %6572 = vmatprep.mubr.msk.bf16.mxu0 %vm280_vm1, %v7989_v41 }
 0x16b   : > { %6573 = vmatmul.mubr.msk.bf16.gmra.mrb[28].mxu0 %vm280_vm1, %v8225_v32 }
 0x16c   : > { %6578 = vmatprep.mubr.msk.bf16.mxu0 %vm280_vm1, %v8043_v14  ;;  %v1870_v14 = vrot.slane %v8183_v1, 1 }
 0x16e   : > { %v8266_v21 = vsel %vm1160_vm4, %v1870_v14, %v1871_v51 }
 0x173   : > { %6579 = vmatmul.mubr.msk.bf16.vlgmr.msra.gmra.mrb[0].mxu0 %vm280_vm1, %v8047_v29 }
 0x174   : > { %6611 = vmatpush3.bf16.msra.mxu0 %v2080_v36  ;;  %6582 = vmatprep.mubr.msk.bf16.mxu0 %vm280_vm1, %v8062_v44 }
 0x175   : > { %7537 = vmatprep.subr.msk.bf16.mxu0 %vm767_vm0, %v5763_v39 }
 0x17b   : > { %6583 = vmatmul.mubr.msk.bf16.gmra.mrb[4].mxu0 %vm280_vm1, %v8065_v54 }
 0x17c   : > { %6586 = vmatprep.mubr.msk.bf16.mxu0 %vm280_vm1, %v8076_v57 }
 0x183   : > { %6587 = vmatmul.mubr.msk.bf16.gmra.mrb[8].mxu0 %vm280_vm1, %v8079_v59 }
 0x184   : > { %6590 = vmatprep.mubr.msk.bf16.mxu0 %vm280_vm1, %v8090_v10 }
 0x18b   : > { %6591 = vmatmul.mubr.msk.bf16.gmra.mrb[12].mxu0 %vm280_vm1, %v8093_v13 }
 0x18c   : > { %6594 = vmatprep.mubr.msk.bf16.mxu0 %vm280_vm1, %v8104_v15 }
 0x193   : > { %6595 = vmatmul.mubr.msk.bf16.gmra.mrb[16].mxu0 %vm280_vm1, %v8107_v8 }
 0x194   : > { %6598 = vmatprep.mubr.msk.bf16.mxu0 %vm280_vm1, %v8118_v38 }
 0x19b   : > { %6599 = vmatmul.mubr.msk.bf16.gmra.mrb[20].mxu0 %vm280_vm1, %v8121_v27 }
 0x19c   : > { %6602 = vmatprep.mubr.msk.bf16.mxu0 %vm280_vm1, %v8132_v56 }
 0x1a3   : > { %6603 = vmatmul.mubr.msk.bf16.gmra.mrb[24].mxu0 %vm280_vm1, %v8135_v63 }
 0x1a4   : > { %6606 = vmatprep.mubr.msk.bf16.mxu0 %vm280_vm1, %v8144_v4 }
 0x1ab   : > { %6607 = vmatmul.mubr.msk.bf16.gmra.mrb[28].mxu0 %vm280_vm1, %v8266_v21 }
 0x1ac   : > { %6612 = vmatprep.mubr.msk.bf16.mxu0 %vm280_vm1, %v7806_v7  ;;  %v484_v7 = vld [vmem:[#allocation2 + $0x198] sm:$0xff] }
 0x1b3   : > { %6613 = vmatmul.mubr.msk.bf16.vlgmr.msra.gmra.mrb[0].mxu0 %vm280_vm1, %v7820_v23  ;;  %v485_v23 = vld [vmem:[#allocation2 + $0x1a0] sm:$0xff] }
 0x1b4   : > { %6645 = vmatpush3.bf16.msra.mxu0 %v2292_v30  ;;  %6616 = vmatprep.mubr.msk.bf16.mxu0 %vm280_vm1, %v7824_v28  ;;  %v521_v28 = vpack.c.bf16 %v485_v23, %v484_v7 }
 0x1b5   : > { %7538 = vmatprep.subr.msk.bf16.mxu0 %vm767_vm0, %v5780_v58 }
 0x1bb   : > { %6617 = vmatmul.mubr.msk.bf16.gmra.mrb[4].mxu0 %vm280_vm1, %v7833_v42  ;;  %v2498_v42 = vsel %vm767_vm0, %v5780_v58, 0 }
 0x1bc   : > { %6620 = vmatprep.mubr.msk.bf16.mxu0 %vm280_vm1, %v7854_v55 }
 0x1c3   : > { %6621 = vmatmul.mubr.msk.bf16.gmra.mrb[8].mxu0 %vm280_vm1, %v7867_v11  ;;  %v2275_v11 = vshrl.u32 %v521_v28, 16 }
 0x1c4   : > { %6624 = vmatprep.mubr.msk.bf16.mxu0 %vm280_vm1, %v7873_v18 }
 0x1cb   : > { %6625 = vmatmul.mubr.msk.bf16.gmra.mrb[12].mxu0 %vm280_vm1, %v7886_v35 }
 0x1cc   : > { %6628 = vmatprep.mubr.msk.bf16.mxu0 %vm280_vm1, %v7897_v47  ;;  %v2489_v47 = vrot.slane %v521_v28, 1 }
 0x1d3   : > { %6629 = vmatmul.mubr.msk.bf16.gmra.mrb[16].mxu0 %vm280_vm1, %v7915_v19 }
 0x1d4   : > { %6632 = vmatprep.mubr.msk.bf16.mxu0 %vm280_vm1, %v7921_v26  ;;  %v2893_v26 = vld [vmem:[#allocation3 + $0x8] sm:$0xff] }
 0x1db   : > { %6633 = vmatmul.mubr.msk.bf16.gmra.mrb[20].mxu0 %vm280_vm1, %v7939_v61  ;;  %v2894_v61 = vld [vmem:[#allocation3 + $0x10] sm:$0x3] }
 0x1dc   : > { %6636 = vmatprep.mubr.msk.bf16.mxu0 %vm280_vm1, %v7945_v9 }
 0x1e3   : > { %6637 = vmatmul.mubr.msk.bf16.gmra.mrb[24].mxu0 %vm280_vm1, %v7962_v46 }
 0x1e4   : > { %6640 = vmatprep.mubr.msk.bf16.mxu0 %vm280_vm1, %v8183_v1 }
 0x1eb   : > { %6641 = vmatmul.mubr.msk.bf16.gmra.mrb[28].mxu0 %vm280_vm1, %v521_v28 }
 0x1ec   : > { %6646 = vmatprep.mubr.msk.bf16.mxu0 %vm280_vm1, %v7847_v49  ;;  %v486_v49 = vld [vmem:[#allocation2 + $0x1a8] sm:$0x3] }
 0x1ed   : > { %v522_v55 = vpack.c.bf16 %v486_v49, %v486_v49 }
 0x1ef   : > { %v2282_v18 = vshll.u32 %v522_v55, 16 }
 0x1f3   : > { %6647 = vmatmul.mubr.msk.bf16.vlgmr.msra.gmra.mrb[0].mxu0 %vm280_vm1, %v7864_v6  ;;  %v2277_v6 = vshll.u32 %v521_v28, 16 }
 0x1f4   : > { %6679 = vmatpush3.bf16.msra.mxu0 %v2498_v42  ;;  %6650 = vmatprep.mubr.msk.bf16.mxu0 %vm280_vm1, %v7870_v12 }
 0x1f5   : > { %v2279_v12 = vrot.slane %v2277_v6, 1 }
 0x1f7   : > { %v2280_v35 = vor.u32 %v2279_v12, %v2275_v11 }
 0x1fb   : > { %6651 = vmatmul.mubr.msk.bf16.gmra.mrb[4].mxu0 %vm280_vm1, %v7889_v37  ;;  %v2284_v37 = vrot.slane %v2282_v18, 1 }
 0x1fc   : > { %6654 = vmatprep.mubr.msk.bf16.mxu0 %vm280_vm1, %v7894_v43 }
 0x1fd   : > { %v2285_v43 = vsel %vm524_vm3, %v2280_v35, %v2284_v37 }
 0x203   : > { %6655 = vmatmul.mubr.msk.bf16.gmra.mrb[8].mxu0 %vm280_vm1, %v7912_v16  ;;  %v2490_v16 = vrot.slane %v522_v55, 1 }
 0x204   : > { %6658 = vmatprep.mubr.msk.bf16.mxu0 %vm280_vm1, %v7918_v20  ;;  %v2892_v20 = vld [vmem:[#allocation3] sm:$0xff] }
 0x205   : > { %v2491_v19 = vsel %vm1160_vm4, %v2489_v47, %v2490_v16 }
 0x20b   : > { %6659 = vmatmul.mubr.msk.bf16.gmra.mrb[12].mxu0 %vm280_vm1, %v7934_v53  ;;  %v8479_v53 = vpack.c.bf16 %v2893_v26, %v2892_v20 }
 0x20c   : > { %6662 = vmatprep.mubr.msk.bf16.mxu0 %vm280_vm1, %v7942_v62  ;;  %v8481_v62 = vpack.c.bf16 %v2894_v61, %v2894_v61 }
 0x20d   : > { %v2986_v9 = vshll.u32 %v8479_v53, 16 }
 0x20f   : > { %v2988_v46 = vrot.slane %v2986_v9, 1 }
 0x213   : > { %6663 = vmatmul.mubr.msk.bf16.gmra.mrb[16].mxu0 %vm280_vm1, %v7959_v40  ;;  %v2984_v40 = vshrl.u32 %v8479_v53, 16 }
 0x214   : > { %6666 = vmatprep.mubr.msk.bf16.mxu0 %vm280_vm1, %v7965_v50  ;;  %v2991_v50 = vshll.u32 %v8481_v62, 16 }
 0x21b   : > { %6667 = vmatmul.mubr.msk.bf16.gmra.mrb[20].mxu0 %vm280_vm1, %v7977_v24  ;;  %v5799_v24 = vld [vmem:[%s9384_s4 + $0x4] sm:$0xf] }
 0x21c   : > { %6670 = vmatprep.mubr.msk.bf16.mxu0 %vm280_vm1, %v7982_v33  ;;  %7539 = vmatprep.subr.msk.bf16.mxu1 %vm3225_vm7, %v5799_v24  ;;  %v3227_v2 = vsel %vm3225_vm7, %v5799_v24, 0  ;;  %v2989_v33 = vor.u32 %v2988_v46, %v2984_v40 }
 0x21d   : > { %6713 = vmatpush3.bf16.msra.mxu1 %v3227_v2 }
 0x223   : > { %6671 = vmatmul.mubr.msk.bf16.gmra.mrb[24].mxu0 %vm280_vm1, %v7989_v41  ;;  %v2993_v41 = vrot.slane %v2991_v50, 1 }
 0x224   : > { %6674 = vmatprep.mubr.msk.bf16.mxu0 %vm280_vm1, %v8225_v32 }
 0x22b   : > { %6675 = vmatmul.mubr.msk.bf16.gmra.mrb[28].mxu0 %vm280_vm1, %v2285_v43 }
 0x22c   : > { %6680 = vmatprep.mubr.msk.bf16.mxu0 %vm280_vm1, %v8047_v29  ;;  %v2994_v29 = vsel %vm524_vm3, %v2989_v33, %v2993_v41 }
 0x22d   : > { %6714 = vmatprep.mubr.msk.bf16.mxu1 %vm2803_vm5, %v2994_v29 }
 0x233   : > { %6681 = vmatmul.mubr.msk.bf16.vlgmr.msra.gmra.mrb[0].mxu0 %vm280_vm1, %v8062_v44  ;;  %v8496_v44 = vld [vmem:[%s9384_s4] sm:$0xf] }
 0x234   : > { %6684 = vmatprep.mubr.msk.bf16.mxu0 %vm280_vm1, %v8065_v54  ;;  %7540 = vmatprep.subr.msk.bf16.mxu1 %vm3225_vm7, %v8496_v44  ;;  %v8503_v54 = vld [vmem:[%s9382_s2] ss:$0 sm:$0xff] }
 0x23b   : > { %6685 = vmatmul.mubr.msk.bf16.gmra.mrb[4].mxu0 %vm280_vm1, %v8076_v57 }
 0x23c   : > { %6688 = vmatprep.mubr.msk.bf16.mxu0 %vm280_vm1, %v8079_v59  ;;  %v8508_v59 = vld [vmem:[%s9383_s3] ss:$0 sm:$0xff] }
 0x243   : > { %6689 = vmatmul.mubr.msk.bf16.gmra.mrb[8].mxu0 %vm280_vm1, %v8090_v10 }
 0x244   : > { %6692 = vmatprep.mubr.msk.bf16.mxu0 %vm280_vm1, %v8093_v13 }
 0x24b   : > { %6693 = vmatmul.mubr.msk.bf16.gmra.mrb[12].mxu0 %vm280_vm1, %v8104_v15 }
 0x24c   : > { %6696 = vmatprep.mubr.msk.bf16.mxu0 %vm280_vm1, %v8107_v8 }
 0x253   : > { %6697 = vmatmul.mubr.msk.bf16.gmra.mrb[16].mxu0 %vm280_vm1, %v8118_v38 }
 0x254   : > { %6700 = vmatprep.mubr.msk.bf16.mxu0 %vm280_vm1, %v8121_v27 }
 0x25b   : > { %6701 = vmatmul.mubr.msk.bf16.gmra.mrb[20].mxu0 %vm280_vm1, %v8132_v56 }
 0x25c   : > { %6704 = vmatprep.mubr.msk.bf16.mxu0 %vm280_vm1, %v8135_v63 }
 0x263   : > { %6705 = vmatmul.mubr.msk.bf16.gmra.mrb[24].mxu0 %vm280_vm1, %v8144_v4 }
 0x264   : > { %6708 = vmatprep.mubr.msk.bf16.mxu0 %vm280_vm1, %v8266_v21 }
 0x26b   : > { %6709 = vmatmul.mubr.msk.bf16.gmra.mrb[28].mxu0 %vm280_vm1, %v2491_v19 }
 0x306   : > { %v6682_v57 = vpop.f32.mrb[0].mxu0 }
 0x307   : > { %v2702_v10 = vmul.f32 %v6682_v57, %v8503_v54  ;;  %v2534_v13 = vpop.f32.mrb[1].mxu0 }
 0x308   : > { %v2700_v15 = vmul.f32 %v8503_v54, %v2534_v13  ;;  %v6683_v8 = vpop.f32.mrb[2].mxu0 }
 0x309   : > { %v2703_v38 = vmul.f32 %v6683_v8, %v8503_v54  ;;  %v2537_v27 = vpop.f32.mrb[3].mxu0  ;;  %v2741_v56 = vadd.f32 %v8508_v59, %v2702_v10 }
 0x30a   : > { %v2701_v63 = vmul.f32 %v8503_v54, %v2537_v27  ;;  %v2739_v4 = vadd.f32 %v8508_v59, %v2700_v15 }
 0x30b   : > { %v2742_v0 = vadd.f32 %v8508_v59, %v2703_v38  ;;  %5264 = vrot.lane.b32.xlu1 %v2741_v56, %s7567_s13  ;;  %v2773_v5 = vmax.f32 %v2741_v56, 0.0  ;;  %v3423_v38 = vsel %vm3225_vm7, %v8496_v44, 0 }
 0x30c   : > { %v2740_v1 = vadd.f32 %v8508_v59, %v2701_v63  ;;  %5260 = vrot.lane.b32.xlu0 %v2739_v4, %s7567_s13  ;;  %v2771_v17 = vmax.f32 %v2739_v4, 0.0 }
 0x30d   : > { %v2774_v22 = vmax.f32 %v2742_v0, 0.0  ;;  %2862 = vst.msk [vmem:[#allocation3 + $0x31] sm:$0xff] %vm2803_vm5, %v2773_v5 }
 0x30e   : > { %v2772_v45 = vmax.f32 %v2740_v1, 0.0  ;;  %2860 = vst.msk [vmem:[#allocation3 + $0x19] sm:$0xff] %vm2803_vm5, %v2771_v17  ;;  %v6686_v25 = vpop.f32.mrb[4].mxu0 }
 0x30f   : > { %2863 = vst.msk [vmem:[#allocation3 + $0x39] sm:$0xff] %vm2803_vm5, %v2774_v22  ;;  %v2706_v3 = vmul.f32 %v6686_v25, %v8503_v54  ;;  %5266 = vrot.lane.b32.xlu1 %v2742_v0, %s7567_s13  ;;  %v2550_v31 = vpop.f32.mrb[5].mxu0 }
 0x310   : > { %2861 = vst.msk [vmem:[#allocation3 + $0x21] sm:$0xff] %vm2803_vm5, %v2772_v45  ;;  %v2704_v52 = vmul.f32 %v8503_v54, %v2550_v31  ;;  %5262 = vrot.lane.b32.xlu0 %v2740_v1, %s7567_s13  ;;  %v6687_v34 = vpop.f32.mrb[6].mxu0 }
 0x311   : > { %v2745_v60 = vadd.f32 %v8508_v59, %v2706_v3  ;;  %v2707_v48 = vmul.f32 %v6687_v34, %v8503_v54  ;;  %v2553_v32 = vpop.f32.mrb[7].mxu0 }
 0x312   : > { %v2743_v36 = vadd.f32 %v8508_v59, %v2704_v52  ;;  %v2705_v39 = vmul.f32 %v8503_v54, %v2553_v32 }
 0x313   : > { %v2777_v14 = vmax.f32 %v2745_v60, 0.0  ;;  %v2746_v51 = vadd.f32 %v8508_v59, %v2707_v48 }
 0x314   : > { %v2775_v21 = vmax.f32 %v2743_v36, 0.0  ;;  %v2744_v30 = vadd.f32 %v8508_v59, %v2705_v39  ;;  %5272 = vrot.lane.b32.xlu0 %v2745_v60, %s7567_s13  ;;  %v2898_v28 = vld [vmem:[#allocation3 + $0x30] sm:$0xff] }
 0x315   : > { %2866 = vst.msk [vmem:[#allocation3 + $0x61] sm:$0xff] %vm2803_vm5, %v2777_v14  ;;  %v2778_v58 = vmax.f32 %v2746_v51, 0.0  ;;  %5274 = vrot.lane.b32.xlu1 %v2746_v51, %s7567_s13  ;;  %v2895_v11 = vld [vmem:[#allocation3 + $0x18] sm:$0xff] }
 0x316   : > { %2864 = vst.msk [vmem:[#allocation3 + $0x49] sm:$0xff] %vm2803_vm5, %v2775_v21  ;;  %v2776_v7 = vmax.f32 %v2744_v30, 0.0  ;;  %v6690_v23 = vpop.f32.mrb[8].mxu0  ;;  %v2899_v42 = vld [vmem:[#allocation3 + $0x38] sm:$0xff]  ;;  %v2900_v49 = vld [vmem:[#allocation3 + $0x40] sm:$0x3] }
 0x317   : > { %2867 = vst.msk [vmem:[#allocation3 + $0x69] sm:$0xff] %vm2803_vm5, %v2778_v58  ;;  %v2710_v55 = vmul.f32 %v6690_v23, %v8503_v54  ;;  %v2566_v6 = vpop.f32.mrb[9].mxu0  ;;  %v2896_v12 = vld [vmem:[#allocation3 + $0x20] sm:$0xff]  ;;  %v2897_v18 = vld [vmem:[#allocation3 + $0x28] sm:$0x3]  ;;  %v8540_v35 = vpack.c.bf16 %v2899_v42, %v2898_v28  ;;  %v8552_v61 = vpack.c.bf16 %v2900_v49, %v2900_v49 }
 0x318   : > { %2865 = vst.msk [vmem:[#allocation3 + $0x51] sm:$0xff] %vm2803_vm5, %v2776_v7  ;;  %v2708_v37 = vmul.f32 %v8503_v54, %v2566_v6  ;;  %5268 = vrot.lane.b32.xlu0 %v2743_v36, %s7567_s13  ;;  %v6691_v43 = vpop.f32.mrb[10].mxu0  ;;  %v8545_v47 = vpack.c.bf16 %v2896_v12, %v2895_v11  ;;  %v8547_v16 = vpack.c.bf16 %v2897_v18, %v2897_v18  ;;  %v8589_v51 = vld [vmem:[%s9384_s4 + $0x8] sm:$0xf] }
 0x319   : > { %v2749_v19 = vadd.f32 %v8508_v59, %v2710_v55  ;;  %v2711_v20 = vmul.f32 %v6691_v43, %v8503_v54  ;;  %5270 = vrot.lane.b32.xlu1 %v2744_v30, %s7567_s13  ;;  %v2569_v26 = vpop.f32.mrb[11].mxu0  ;;  %v3010_v9 = vshll.u32 %v8540_v35, 16  ;;  %v3008_v24 = vshrl.u32 %v8540_v35, 16 }
 0x31a   : > { %v2747_v40 = vadd.f32 %v8508_v59, %v2708_v37  ;;  %v2709_v46 = vmul.f32 %v8503_v54, %v2569_v26  ;;  %v2998_v50 = vshll.u32 %v8545_v47, 16  ;;  %v2996_v41 = vshrl.u32 %v8545_v47, 16 }
 0x31b   : > { %v2781_v2 = vmax.f32 %v2749_v19, 0.0  ;;  %v2750_v33 = vadd.f32 %v8508_v59, %v2711_v20  ;;  %v3003_v29 = vshll.u32 %v8547_v16, 16  ;;  %v3012_v15 = vrot.slane %v3010_v9, 1 }
 0x31c   : > { %v2779_v57 = vmax.f32 %v2747_v40, 0.0  ;;  %v2748_v10 = vadd.f32 %v8508_v59, %v2709_v46  ;;  %5280 = vrot.lane.b32.xlu0 %v2749_v19, %s7567_s13  ;;  %v3000_v13 = vrot.slane %v2998_v50, 1  ;;  %v3015_v27 = vshll.u32 %v8552_v61, 16  ;;  %v2904_v56 = vld [vmem:[#allocation3 + $0x60] sm:$0xff] }
 0x31d   : > { %2870 = vst.msk [vmem:[#allocation3 + $0x91] sm:$0xff] %vm2803_vm5, %v2781_v2  ;;  %v2782_v8 = vmax.f32 %v2750_v33, 0.0  ;;  %5282 = vrot.lane.b32.xlu1 %v2750_v33, %s7567_s13  ;;  %v3005_v5 = vrot.slane %v3003_v29, 1  ;;  %v3013_v1 = vor.u32 %v3012_v15, %v3008_v24  ;;  %v2901_v31 = vld [vmem:[#allocation3 + $0x48] sm:$0xff] }
 0x31e   : > { %2868 = vst.msk [vmem:[#allocation3 + $0x79] sm:$0xff] %vm2803_vm5, %v2779_v57  ;;  %v2780_v63 = vmax.f32 %v2748_v10, 0.0  ;;  %v6694_v4 = vpop.f32.mrb[12].mxu0  ;;  %v3001_v0 = vor.u32 %v3000_v13, %v2996_v41  ;;  %v2905_v17 = vld [vmem:[#allocation3 + $0x68] sm:$0xff]  ;;  %v2906_v22 = vld [vmem:[#allocation3 + $0x70] sm:$0x3] }
 0x31f   : > { %2871 = vst.msk [vmem:[#allocation3 + $0x99] sm:$0xff] %vm2803_vm5, %v2782_v8  ;;  %v2714_v45 = vmul.f32 %v6694_v4, %v8503_v54  ;;  %v2582_v25 = vpop.f32.mrb[13].mxu0  ;;  %v3017_v3 = vrot.slane %v3015_v27, 1  ;;  %v2902_v44 = vld [vmem:[#allocation3 + $0x50] sm:$0xff]  ;;  %v2903_v52 = vld [vmem:[#allocation3 + $0x58] sm:$0x3]  ;;  %v8572_v34 = vpack.c.bf16 %v2905_v17, %v2904_v56  ;;  %v8574_v60 = vpack.c.bf16 %v2906_v22, %v2906_v22 }
 0x320   : > { %2869 = vst.msk [vmem:[#allocation3 + $0x81] sm:$0xff] %vm2803_vm5, %v2780_v63  ;;  %v2712_v48 = vmul.f32 %v8503_v54, %v2582_v25  ;;  %5276 = vrot.lane.b32.xlu0 %v2747_v40, %s7567_s13  ;;  %v6695_v32 = vpop.f32.mrb[14].mxu0  ;;  %v8580_v36 = vsel %vm524_vm3, %v3001_v0, %v3005_v5  ;;  %v8582_v39 = vpack.c.bf16 %v2902_v44, %v2901_v31 }
 0x321   : > { %v8584_v14 = vpack.c.bf16 %v2903_v52, %v2903_v52  ;;  %v2753_v21 = vadd.f32 %v8508_v59, %v2714_v45  ;;  %v2715_v30 = vmul.f32 %v6695_v32, %v8503_v54  ;;  %6715 = vmatmul.mubr.msk.bf16.vlgmr.msra.gmra.mrb[0].mxu1 %vm2803_vm5, %v8580_v36  ;;  %5278 = vrot.lane.b32.xlu1 %v2748_v10, %s7567_s13  ;;  %v2585_v58 = vpop.f32.mrb[15].mxu0  ;;  %v3034_v12 = vshll.u32 %v8572_v34, 16 }
 0x322   : > { %v8597_v7 = vsel %vm524_vm3, %v3013_v1, %v3017_v3  ;;  %v2751_v23 = vadd.f32 %v8508_v59, %v2712_v48  ;;  %6747 = vmatpush3.bf16.msra.mxu1 %v3423_v38  ;;  %v2713_v28 = vmul.f32 %v8503_v54, %v2585_v58  ;;  %v3020_v42 = vshrl.u32 %v8582_v39, 16 }
 0x323   : > { %6718 = vmatprep.mubr.msk.bf16.mxu1 %vm2803_vm5, %v8597_v7  ;;  %v3022_v49 = vshll.u32 %v8582_v39, 16  ;;  %v2785_v55 = vmax.f32 %v2753_v21, 0.0  ;;  %v2754_v6 = vadd.f32 %v8508_v59, %v2715_v30  ;;  %v3027_v11 = vshll.u32 %v8584_v14, 16  ;;  %7541 = vmatprep.subr.msk.bf16.mxu1 %vm3225_vm7, %v8589_v51 }
 0x324   : > { %v2783_v18 = vmax.f32 %v2751_v23, 0.0  ;;  %v2752_v37 = vadd.f32 %v8508_v59, %v2713_v28  ;;  %5288 = vrot.lane.b32.xlu0 %v2753_v21, %s7567_s13  ;;  %v3039_v19 = vshll.u32 %v8574_v60, 16  ;;  %v3032_v9 = vshrl.u32 %v8572_v34, 16  ;;  %v2910_v46 = vld [vmem:[#allocation3 + $0x90] sm:$0xff] }
 0x325   : > { %v3024_v43 = vrot.slane %v3022_v49, 1  ;;  %2874 = vst.msk [vmem:[#allocation3 + $0xc1] sm:$0xff] %vm2803_vm5, %v2785_v55  ;;  %v2786_v20 = vmax.f32 %v2754_v6, 0.0  ;;  %5290 = vrot.lane.b32.xlu1 %v2754_v6, %s7567_s13  ;;  %v3029_v26 = vrot.slane %v3027_v11, 1  ;;  %v3036_v40 = vrot.slane %v3034_v12, 1  ;;  %v2907_v15 = vld [vmem:[#allocation3 + $0x78] sm:$0xff] }
 0x326   : > { %2872 = vst.msk [vmem:[#allocation3 + $0xa9] sm:$0xff] %vm2803_vm5, %v2783_v18  ;;  %v2784_v50 = vmax.f32 %v2752_v37, 0.0  ;;  %v6698_v24 = vpop.f32.mrb[16].mxu0  ;;  %v3041_v33 = vrot.slane %v3039_v19, 1  ;;  %v2911_v41 = vld [vmem:[#allocation3 + $0x98] sm:$0xff] }
 0x327   : > { %v3025_v2 = vor.u32 %v3024_v43, %v3020_v42  ;;  %v2912_v29 = vld [vmem:[#allocation3 + $0xa0] sm:$0x3]  ;;  %2875 = vst.msk [vmem:[#allocation3 + $0xc9] sm:$0xff] %vm2803_vm5, %v2786_v20  ;;  %v2718_v57 = vmul.f32 %v6698_v24, %v8503_v54  ;;  %v2598_v10 = vpop.f32.mrb[17].mxu0  ;;  %v3037_v13 = vor.u32 %v3036_v40, %v3032_v9  ;;  %v2909_v38 = vld [vmem:[#allocation3 + $0x88] sm:$0x3]  ;;  %v8619_v27 = vpack.c.bf16 %v2911_v41, %v2910_v46 }
 0x328   : > { %v2908_v8 = vld [vmem:[#allocation3 + $0x80] sm:$0xff]  ;;  %v8621_v56 = vpack.c.bf16 %v2912_v29, %v2912_v29  ;;  %2873 = vst.msk [vmem:[#allocation3 + $0xb1] sm:$0xff] %vm2803_vm5, %v2784_v50  ;;  %v2716_v63 = vmul.f32 %v8503_v54, %v2598_v10  ;;  %5284 = vrot.lane.b32.xlu0 %v2751_v23, %s7567_s13  ;;  %v6699_v4 = vpop.f32.mrb[18].mxu0  ;;  %v8631_v1 = vpack.c.bf16 %v2909_v38, %v2909_v38 }
 0x329   : > { %v8627_v0 = vsel %vm524_vm3, %v3025_v2, %v3029_v26  ;;  %v8629_v5 = vpack.c.bf16 %v2908_v8, %v2907_v15  ;;  %v2757_v17 = vadd.f32 %v8508_v59, %v2718_v57  ;;  %v2719_v22 = vmul.f32 %v6699_v4, %v8503_v54  ;;  %5286 = vrot.lane.b32.xlu1 %v2752_v37, %s7567_s13  ;;  %v2601_v45 = vpop.f32.mrb[19].mxu0 }
 0x32a   : > { %6719 = vmatmul.mubr.msk.bf16.gmra.mrb[4].mxu1 %vm2803_vm5, %v8627_v0  ;;  %v8639_v25 = vsel %vm524_vm3, %v3037_v13, %v3041_v33  ;;  %v2755_v3 = vadd.f32 %v8508_v59, %v2716_v63  ;;  %v2717_v31 = vmul.f32 %v8503_v54, %v2601_v45  ;;  %v3051_v21 = vshll.u32 %v8631_v1, 16 }
 0x32b   : > { %6722 = vmatprep.mubr.msk.bf16.mxu1 %vm2803_vm5, %v8639_v25  ;;  %v3044_v44 = vshrl.u32 %v8629_v5, 16  ;;  %v3046_v52 = vshll.u32 %v8629_v5, 16  ;;  %v2789_v48 = vmax.f32 %v2757_v17, 0.0  ;;  %v2758_v32 = vadd.f32 %v8508_v59, %v2719_v22 }
 0x32c   : > { %v3058_v30 = vshll.u32 %v8619_v27, 16  ;;  %v2787_v58 = vmax.f32 %v2755_v3, 0.0  ;;  %v2756_v23 = vadd.f32 %v8508_v59, %v2717_v31  ;;  %5296 = vrot.lane.b32.xlu0 %v2757_v17, %s7567_s13  ;;  %v3063_v42 = vshll.u32 %v8621_v56, 16  ;;  %v2916_v12 = vld [vmem:[#allocation3 + $0xc0] sm:$0xff] }
 0x32d   : > { %v3048_v28 = vrot.slane %v3046_v52, 1  ;;  %2878 = vst.msk [vmem:[#allocation3 + $0xf1] sm:$0xff] %vm2803_vm5, %v2789_v48  ;;  %v2790_v49 = vmax.f32 %v2758_v32, 0.0  ;;  %5298 = vrot.lane.b32.xlu1 %v2758_v32, %s7567_s13  ;;  %v3053_v55 = vrot.slane %v3051_v21, 1  ;;  %v3056_v6 = vshrl.u32 %v8619_v27, 16  ;;  %v2913_v50 = vld [vmem:[#allocation3 + $0xa8] sm:$0xff] }
 0x32e   : > { %v3060_v11 = vrot.slane %v3058_v30, 1  ;;  %2876 = vst.msk [vmem:[#allocation3 + $0xd9] sm:$0xff] %vm2803_vm5, %v2787_v58  ;;  %v2788_v18 = vmax.f32 %v2756_v23, 0.0  ;;  %v6702_v37 = vpop.f32.mrb[20].mxu0  ;;  %v3065_v19 = vrot.slane %v3063_v42, 1  ;;  %v2917_v20 = vld [vmem:[#allocation3 + $0xc8] sm:$0xff] }
 0x32f   : > { %v3049_v43 = vor.u32 %v3048_v28, %v3044_v44  ;;  %v2918_v26 = vld [vmem:[#allocation3 + $0xd0] sm:$0x3]  ;;  %2879 = vst.msk [vmem:[#allocation3 + $0xf9] sm:$0xff] %vm2803_vm5, %v2790_v49  ;;  %v2722_v9 = vmul.f32 %v6702_v37, %v8503_v54  ;;  %v2614_v40 = vpop.f32.mrb[21].mxu0  ;;  %v2915_v2 = vld [vmem:[#allocation3 + $0xb8] sm:$0x3]  ;;  %v8659_v33 = vpack.c.bf16 %v2917_v20, %v2916_v12 }
 0x330   : > { %v3061_v46 = vor.u32 %v3060_v11, %v3056_v6  ;;  %v2914_v24 = vld [vmem:[#allocation3 + $0xb0] sm:$0xff]  ;;  %v8661_v41 = vpack.c.bf16 %v2918_v26, %v2918_v26  ;;  %2877 = vst.msk [vmem:[#allocation3 + $0xe1] sm:$0xff] %vm2803_vm5, %v2788_v18  ;;  %v2720_v29 = vmul.f32 %v8503_v54, %v2614_v40  ;;  %5292 = vrot.lane.b32.xlu0 %v2755_v3, %s7567_s13  ;;  %v6703_v57 = vpop.f32.mrb[22].mxu0 }
 0x331   : > { %v8667_v10 = vsel %vm524_vm3, %v3049_v43, %v3053_v55  ;;  %v8669_v13 = vpack.c.bf16 %v2914_v24, %v2913_v50  ;;  %v8671_v15 = vpack.c.bf16 %v2915_v2, %v2915_v2  ;;  %v2761_v8 = vadd.f32 %v8508_v59, %v2722_v9  ;;  %5294 = vrot.lane.b32.xlu1 %v2756_v23, %s7567_s13  ;;  %v2617_v63 = vpop.f32.mrb[23].mxu0 }
 0x332   : > { %v2723_v38 = vmul.f32 %v6703_v57, %v8503_v54  ;;  %6723 = vmatmul.mubr.msk.bf16.gmra.mrb[8].mxu1 %vm2803_vm5, %v8667_v10  ;;  %v8679_v4 = vsel %vm524_vm3, %v3061_v46, %v3065_v19  ;;  %v2759_v17 = vadd.f32 %v8508_v59, %v2720_v29  ;;  %v2721_v22 = vmul.f32 %v8503_v54, %v2617_v63 }
 0x333   : > { %6726 = vmatprep.mubr.msk.bf16.mxu1 %vm2803_vm5, %v8679_v4  ;;  %v3068_v45 = vshrl.u32 %v8669_v13, 16  ;;  %v3070_v3 = vshll.u32 %v8669_v13, 16  ;;  %v2793_v31 = vmax.f32 %v2761_v8, 0.0  ;;  %v3075_v52 = vshll.u32 %v8671_v15, 16 }
 0x334   : > { %v2762_v44 = vadd.f32 %v8508_v59, %v2723_v38  ;;  %v3082_v48 = vshll.u32 %v8659_v33, 16  ;;  %v2791_v32 = vmax.f32 %v2759_v17, 0.0  ;;  %v2760_v21 = vadd.f32 %v8508_v59, %v2721_v22  ;;  %5304 = vrot.lane.b32.xlu0 %v2761_v8, %s7567_s13  ;;  %v2922_v55 = vld [vmem:[#allocation3 + $0xf0] sm:$0xff] }
 0x335   : > { %v3072_v30 = vrot.slane %v3070_v3, 1  ;;  %v3087_v58 = vshll.u32 %v8661_v41, 16  ;;  %2882 = vst.msk [vmem:[#allocation3 + $0x121] sm:$0xff] %vm2803_vm5, %v2793_v31  ;;  %v3077_v28 = vrot.slane %v3075_v52, 1  ;;  %v3080_v42 = vshrl.u32 %v8659_v33, 16  ;;  %v2919_v9 = vld [vmem:[#allocation3 + $0xd8] sm:$0xff] }
 0x336   : > { %v2794_v23 = vmax.f32 %v2762_v44, 0.0  ;;  %5306 = vrot.lane.b32.xlu1 %v2762_v44, %s7567_s13  ;;  %v3084_v49 = vrot.slane %v3082_v48, 1  ;;  %2880 = vst.msk [vmem:[#allocation3 + $0x109] sm:$0xff] %vm2803_vm5, %v2791_v32  ;;  %v2792_v6 = vmax.f32 %v2760_v21, 0.0  ;;  %v6706_v11 = vpop.f32.mrb[24].mxu0  ;;  %v2923_v37 = vld [vmem:[#allocation3 + $0xf8] sm:$0xff] }
 0x337   : > { %v3073_v12 = vor.u32 %v3072_v30, %v3068_v45  ;;  %v3089_v18 = vrot.slane %v3087_v58, 1  ;;  %v2924_v43 = vld [vmem:[#allocation3 + $0x100] sm:$0x3]  ;;  %v2726_v19 = vmul.f32 %v6706_v11, %v8503_v54  ;;  %v2630_v20 = vpop.f32.mrb[25].mxu0  ;;  %v2921_v46 = vld [vmem:[#allocation3 + $0xe8] sm:$0x3]  ;;  %v8699_v50 = vpack.c.bf16 %v2923_v37, %v2922_v55 }
 0x338   : > { %2883 = vst.msk [vmem:[#allocation3 + $0x129] sm:$0xff] %vm2803_vm5, %v2794_v23  ;;  %v3085_v26 = vor.u32 %v3084_v49, %v3080_v42  ;;  %v2920_v40 = vld [vmem:[#allocation3 + $0xe0] sm:$0xff]  ;;  %v8701_v24 = vpack.c.bf16 %v2924_v43, %v2924_v43  ;;  %2881 = vst.msk [vmem:[#allocation3 + $0x111] sm:$0xff] %vm2803_vm5, %v2792_v6  ;;  %v2724_v2 = vmul.f32 %v8503_v54, %v2630_v20  ;;  %5300 = vrot.lane.b32.xlu0 %v2759_v17, %s7567_s13  ;;  %v6707_v29 = vpop.f32.mrb[26].mxu0 }
 0x339   : > { %v8707_v57 = vsel %vm524_vm3, %v3073_v12, %v3077_v28  ;;  %v8709_v8 = vpack.c.bf16 %v2920_v40, %v2919_v9  ;;  %v8711_v38 = vpack.c.bf16 %v2921_v46, %v2921_v46  ;;  %v2765_v63 = vadd.f32 %v8508_v59, %v2726_v19  ;;  %v2633_v45 = vpop.f32.mrb[27].mxu0 }
 0x33a   : > { %v2727_v22 = vmul.f32 %v6707_v29, %v8503_v54  ;;  %6727 = vmatmul.mubr.msk.bf16.gmra.mrb[12].mxu1 %vm2803_vm5, %v8707_v57  ;;  %5302 = vrot.lane.b32.xlu1 %v2760_v21, %s7567_s13  ;;  %v8719_v17 = vsel %vm524_vm3, %v3085_v26, %v3089_v18  ;;  %v2763_v3 = vadd.f32 %v8508_v59, %v2724_v2  ;;  %v3106_v30 = vshll.u32 %v8699_v50, 16 }
 0x33b   : > { %v2725_v31 = vmul.f32 %v8503_v54, %v2633_v45  ;;  %6730 = vmatprep.mubr.msk.bf16.mxu1 %vm2803_vm5, %v8719_v17  ;;  %v3092_v44 = vshrl.u32 %v8709_v8, 16  ;;  %v3094_v52 = vshll.u32 %v8709_v8, 16  ;;  %v2797_v48 = vmax.f32 %v2765_v63, 0.0 }
 0x33c   : > { %v2766_v32 = vadd.f32 %v8508_v59, %v2727_v22  ;;  %v3099_v21 = vshll.u32 %v8711_v38, 16  ;;  %v2795_v58 = vmax.f32 %v2763_v3, 0.0  ;;  %5312 = vrot.lane.b32.xlu0 %v2765_v63, %s7567_s13  ;;  %v3111_v42 = vshll.u32 %v8701_v24, 16  ;;  %v2928_v12 = vld [vmem:[#allocation3 + $0x120] sm:$0xff] }
 0x33d   : > { %v2764_v23 = vadd.f32 %v8508_v59, %v2725_v31  ;;  %v3096_v28 = vrot.slane %v3094_v52, 1  ;;  %2886 = vst.msk [vmem:[#allocation3 + $0x151] sm:$0xff] %vm2803_vm5, %v2797_v48  ;;  %v3104_v6 = vshrl.u32 %v8699_v50, 16  ;;  %v3108_v11 = vrot.slane %v3106_v30, 1  ;;  %v2925_v2 = vld [vmem:[#allocation3 + $0x108] sm:$0xff] }
 0x33e   : > { %v2798_v49 = vmax.f32 %v2766_v32, 0.0  ;;  %5314 = vrot.lane.b32.xlu1 %v2766_v32, %s7567_s13  ;;  %v3101_v55 = vrot.slane %v3099_v21, 1  ;;  %2884 = vst.msk [vmem:[#allocation3 + $0x139] sm:$0xff] %vm2803_vm5, %v2795_v58  ;;  %v6710_v37 = vpop.f32.mrb[28].mxu0  ;;  %v3113_v19 = vrot.slane %v3111_v42, 1 }
 0x33f   : > { %v2796_v18 = vmax.f32 %v2764_v23, 0.0  ;;  %v3097_v43 = vor.u32 %v3096_v28, %v3092_v44  ;;  %v2929_v20 = vld [vmem:[#allocation3 + $0x128] sm:$0xff]  ;;  %v2930_v26 = vld [vmem:[#allocation3 + $0x130] sm:$0x3]  ;;  %v2730_v9 = vmul.f32 %v6710_v37, %v8503_v54  ;;  %v2646_v40 = vpop.f32.mrb[29].mxu0  ;;  %v3109_v46 = vor.u32 %v3108_v11, %v3104_v6 }
 0x340   : > { %2887 = vst.msk [vmem:[#allocation3 + $0x159] sm:$0xff] %vm2803_vm5, %v2798_v49  ;;  %v2926_v29 = vld [vmem:[#allocation3 + $0x110] sm:$0xff]  ;;  %v2927_v63 = vld [vmem:[#allocation3 + $0x118] sm:$0x3]  ;;  %v8739_v22 = vpack.c.bf16 %v2929_v20, %v2928_v12  ;;  %v8741_v45 = vpack.c.bf16 %v2930_v26, %v2930_v26  ;;  %v2728_v31 = vmul.f32 %v8503_v54, %v2646_v40  ;;  %5308 = vrot.lane.b32.xlu0 %v2763_v3, %s7567_s13  ;;  %v6711_v44 = vpop.f32.mrb[30].mxu0 }
 0x341   : > { %2885 = vst.msk [vmem:[#allocation3 + $0x141] sm:$0xff] %vm2803_vm5, %v2796_v18  ;;  %v8747_v52 = vsel %vm524_vm3, %v3097_v43, %v3101_v55  ;;  %v8749_v48 = vpack.c.bf16 %v2926_v29, %v2925_v2  ;;  %v8751_v32 = vpack.c.bf16 %v2927_v63, %v2927_v63  ;;  %v2769_v21 = vadd.f32 %v8508_v59, %v2730_v9  ;;  %v2649_v58 = vpop.f32.mrb[31].mxu0 }
 0x342   : > { %v2731_v30 = vmul.f32 %v6711_v44, %v8503_v54  ;;  %6731 = vmatmul.mubr.msk.bf16.gmra.mrb[16].mxu1 %vm2803_vm5, %v8747_v52  ;;  %5310 = vrot.lane.b32.xlu1 %v2764_v23, %s7567_s13  ;;  %v8759_v3 = vsel %vm524_vm3, %v3109_v46, %v3113_v19  ;;  %v2767_v28 = vadd.f32 %v8508_v59, %v2728_v31  ;;  %v3130_v12 = vshll.u32 %v8739_v22, 16 }
 0x343   : > { %v2729_v42 = vmul.f32 %v8503_v54, %v2649_v58  ;;  %6734 = vmatprep.mubr.msk.bf16.mxu1 %vm2803_vm5, %v8759_v3  ;;  %v3116_v49 = vshrl.u32 %v8749_v48, 16  ;;  %v3118_v55 = vshll.u32 %v8749_v48, 16  ;;  %v2801_v6 = vmax.f32 %v2769_v21, 0.0 }
 0x344   : > { %v2770_v11 = vadd.f32 %v8508_v59, %v2731_v30  ;;  %v3123_v23 = vshll.u32 %v8751_v32, 16  ;;  %v2799_v18 = vmax.f32 %v2767_v28, 0.0  ;;  %5316 = vrot.lane.b32.xlu0 %v2767_v28, %s7567_s13  ;;  %v3135_v43 = vshll.u32 %v8741_v45, 16  ;;  %v2934_v2 = vld [vmem:[#allocation3 + $0x150] sm:$0xff] }
 0x345   : > { %v2768_v37 = vadd.f32 %v8508_v59, %v2729_v42  ;;  %v3120_v54 = vrot.slane %v3118_v55, 1  ;;  %2890 = vst.msk [vmem:[#allocation3 + $0x181] sm:$0xff] %vm2803_vm5, %v2801_v6  ;;  %v3128_v20 = vshrl.u32 %v8739_v22, 16  ;;  %v3132_v26 = vrot.slane %v3130_v12, 1  ;;  %v2931_v44 = vld [vmem:[#allocation3 + $0x138] sm:$0xff] }
 0x346   : > { %v2802_v19 = vmax.f32 %v2770_v11, 0.0  ;;  %2888 = vst.msk [vmem:[#allocation3 + $0x169] sm:$0xff] %vm2803_vm5, %v2799_v18  ;;  %v3125_v46 = vrot.slane %v3123_v23, 1  ;;  %v3137_v31 = vrot.slane %v3135_v43, 1 }
 0x347   : > { %v2800_v9 = vmax.f32 %v2768_v37, 0.0  ;;  %5318 = vrot.lane.b32.xlu1 %v2768_v37, %s7567_s13  ;;  %v3121_v40 = vor.u32 %v3120_v54, %v3116_v49  ;;  %v2935_v59 = vld [vmem:[#allocation3 + $0x158] sm:$0xff]  ;;  %v2936_v29 = vld [vmem:[#allocation3 + $0x160] sm:$0x3]  ;;  %v3133_v63 = vor.u32 %v3132_v26, %v3128_v20 }
 0x348   : > { %2891 = vst.msk [vmem:[#allocation3 + $0x189] sm:$0xff] %vm2803_vm5, %v2802_v19  ;;  %v2932_v30 = vld [vmem:[#allocation3 + $0x140] sm:$0xff]  ;;  %v2933_v58 = vld [vmem:[#allocation3 + $0x148] sm:$0x3]  ;;  %v8778_v28 = vpack.c.bf16 %v2935_v59, %v2934_v2  ;;  %v8780_v42 = vpack.c.bf16 %v2936_v29, %v2936_v29  ;;  %5320 = vrot.lane.b32.xlu0 %v2769_v21, %s7567_s13 }
 0x349   : > { %2889 = vst.msk [vmem:[#allocation3 + $0x171] sm:$0xff] %vm2803_vm5, %v2800_v9  ;;  %v8785_v49 = vsel %vm524_vm3, %v3121_v40, %v3125_v46  ;;  %v8787_v55 = vpack.c.bf16 %v2932_v30, %v2931_v44  ;;  %v8789_v6 = vpack.c.bf16 %v2933_v58, %v2933_v58  ;;  %v8794_v23 = vsel %vm524_vm3, %v3133_v63, %v3137_v31 }
 0x34a   : > { %6735 = vmatmul.mubr.msk.bf16.gmra.mrb[20].mxu1 %vm2803_vm5, %v8785_v49  ;;  %v3154_v12 = vshll.u32 %v8778_v28, 16  ;;  %v3152_v37 = vshrl.u32 %v8778_v28, 16  ;;  %v3159_v43 = vshll.u32 %v8780_v42, 16 }
 0x34b   : > { %6738 = vmatprep.mubr.msk.bf16.mxu1 %vm2803_vm5, %v8794_v23  ;;  %5322 = vrot.lane.b32.xlu1 %v2770_v11, %s7567_s13  ;;  %v3142_v21 = vshll.u32 %v8787_v55, 16  ;;  %v3147_v18 = vshll.u32 %v8789_v6, 16  ;;  %v3140_v19 = vshrl.u32 %v8787_v55, 16 }
 0x34c   : > { %v3156_v54 = vrot.slane %v3154_v12, 1  ;;  %v3161_v46 = vrot.slane %v3159_v43, 1  ;;  %v3717_v43 = vsel %vm3225_vm7, %v8589_v51, 0  ;;  %v3618_v51 = vrot.slane %v8479_v53, 1 }
 0x34d   : > { %v3144_v20 = vrot.slane %v3142_v21, 1  ;;  %v3149_v40 = vrot.slane %v3147_v18, 1  ;;  %v2937_v2 = vld [vmem:[#allocation3 + $0x168] sm:$0xff] }
 0x34e   : > { %v3157_v26 = vor.u32 %v3156_v54, %v3152_v37 }
 0x34f   : > { %v3145_v9 = vor.u32 %v3144_v20, %v3140_v19  ;;  %v5849_v19 = vld [vmem:[%s9384_s4 + $0xc] sm:$0xf]  ;;  %v3619_v20 = vrot.slane %v8481_v62, 1  ;;  %v5866_v62 = vld [vmem:[%s9384_s4 + $0x10] sm:$0xf] }
 0x350   : > { %v2938_v59 = vld [vmem:[#allocation3 + $0x170] sm:$0xff]  ;;  %v2939_v29 = vld [vmem:[#allocation3 + $0x178] sm:$0x3]  ;;  %v8815_v44 = vsel %vm524_vm3, %v3157_v26, %v3161_v46  ;;  %v3624_v46 = vrot.slane %v8540_v35, 1 }
 0x351   : > { %v8806_v11 = vsel %vm524_vm3, %v3145_v9, %v3149_v40  ;;  %v8808_v63 = vpack.c.bf16 %v2938_v59, %v2937_v2  ;;  %v8810_v31 = vpack.c.bf16 %v2939_v29, %v2939_v29  ;;  %v3620_v26 = vsel %vm1160_vm4, %v3618_v51, %v3619_v20 }
 0x352   : > { %6739 = vmatmul.mubr.msk.bf16.gmra.mrb[24].mxu1 %vm2803_vm5, %v8806_v11  ;;  %v3622_v9 = vrot.slane %v8547_v16, 1  ;;  %v3621_v40 = vrot.slane %v8545_v47, 1  ;;  %v3625_v2 = vrot.slane %v8552_v61, 1  ;;  %v3918_v59 = vsel %vm3225_vm7, %v5849_v19, 0 }
 0x353   : > { %6742 = vmatprep.mubr.msk.bf16.mxu1 %vm2803_vm5, %v8815_v44  ;;  %v3166_v30 = vshll.u32 %v8808_v63, 16  ;;  %v3171_v58 = vshll.u32 %v8810_v31, 16  ;;  %v3164_v12 = vshrl.u32 %v8808_v63, 16  ;;  %v3627_v61 = vrot.slane %v8582_v39, 1 }
 0x354   : > { %v8883_v16 = vsel %vm1160_vm4, %v3624_v46, %v3625_v2  ;;  %v3628_v29 = vrot.slane %v8584_v14, 1  ;;  %v3634_v14 = vrot.slane %v8631_v1, 1  ;;  %v3639_v51 = vrot.slane %v8669_v13, 1 }
 0x355   : > { %v3168_v21 = vrot.slane %v3166_v30, 1  ;;  %v3173_v37 = vrot.slane %v3171_v58, 1  ;;  %v3630_v30 = vrot.slane %v8572_v34, 1  ;;  %v3631_v58 = vrot.slane %v8574_v60, 1 }
 0x356   : > { %v3637_v60 = vrot.slane %v8621_v56, 1  ;;  %v3640_v1 = vrot.slane %v8671_v15, 1  ;;  %v3642_v20 = vrot.slane %v8659_v33, 1  ;;  %v3643_v56 = vrot.slane %v8661_v41, 1 }
 0x357   : > { %v3169_v18 = vor.u32 %v3168_v21, %v3164_v12  ;;  %v8893_v12 = vsel %vm1160_vm4, %v3627_v61, %v3628_v29  ;;  %v8898_v21 = vsel %vm1160_vm4, %v3630_v30, %v3631_v58  ;;  %v3646_v15 = vrot.slane %v8711_v38, 1 }
 0x358   : > { %v3648_v46 = vrot.slane %v8699_v50, 1  ;;  %v3649_v41 = vrot.slane %v8701_v24, 1  ;;  %v3651_v61 = vrot.slane %v8749_v48, 1  ;;  %v3652_v38 = vrot.slane %v8751_v32, 1 }
 0x359   : > { %v8823_v54 = vsel %vm524_vm3, %v3169_v18, %v3173_v37  ;;  %v3633_v18 = vrot.slane %v8629_v5, 1  ;;  %v3636_v37 = vrot.slane %v8619_v27, 1  ;;  %v3654_v29 = vrot.slane %v8739_v22, 1 }
 0x35a   : > { %6743 = vmatmul.mubr.msk.bf16.gmra.mrb[28].mxu1 %vm2803_vm5, %v8823_v54  ;;  %v3655_v24 = vrot.slane %v8741_v45, 1  ;;  %v8949_v30 = vsel %vm1160_vm4, %v3651_v61, %v3652_v38  ;;  %v3658_v32 = vrot.slane %v8789_v6, 1  ;;  %v3661_v45 = vrot.slane %v8780_v42, 1 }
 0x35b   : > { %6748 = vmatprep.mubr.msk.bf16.mxu1 %vm2803_vm5, %v8479_v53  ;;  %v8875_v53 = vsel %vm1160_vm4, %v3621_v40, %v3622_v9  ;;  %v8926_v9 = vsel %vm1160_vm4, %v3642_v20, %v3643_v56  ;;  %v3645_v40 = vrot.slane %v8709_v8, 1  ;;  %v3664_v6 = vrot.slane %v8810_v31, 1  ;;  %v5883_v20 = vld [vmem:[%s9384_s4 + $0x14] sm:$0xf] }
 0x35c   : > { %v8954_v58 = vsel %vm1160_vm4, %v3654_v29, %v3655_v24  ;;  %v4130_v42 = vsel %vm3225_vm7, %v5866_v62, 0  ;;  %v2940_v31 = vld [vmem:[#allocation3 + $0x180] sm:$0xff]  ;;  %v4336_v56 = vsel %vm3225_vm7, %v5883_v20, 0 }
 0x35d   : > { %v8935_v2 = vsel %vm1160_vm4, %v3645_v40, %v3646_v15  ;;  %v5900_v40 = vld [vmem:[%s9384_s4 + $0x18] sm:$0xf] }
 0x362   : > { %6749 = vmatmul.mubr.msk.bf16.vlgmr.msra.gmra.mrb[0].mxu1 %vm2803_vm5, %v8545_v47 }
 0x363   : > { %6781 = vmatpush3.bf16.msra.mxu1 %v3717_v43  ;;  %6752 = vmatprep.mubr.msk.bf16.mxu1 %vm2803_vm5, %v8540_v35  ;;  %v8907_v43 = vsel %vm1160_vm4, %v3633_v18, %v3634_v14  ;;  %v3657_v18 = vrot.slane %v8787_v55, 1  ;;  %v3660_v14 = vrot.slane %v8778_v28, 1 }
 0x364   : > { %7542 = vmatprep.subr.msk.bf16.mxu1 %vm3225_vm7, %v5849_v19  ;;  %v8912_v19 = vsel %vm1160_vm4, %v3636_v37, %v3637_v60 }
 0x365   : > { %v8963_v37 = vsel %vm1160_vm4, %v3657_v18, %v3658_v32  ;;  %v8968_v60 = vsel %vm1160_vm4, %v3660_v14, %v3661_v45  ;;  %v4537_v32 = vsel %vm3225_vm7, %v5900_v40, 0  ;;  %v5917_v14 = vld [vmem:[%s9384_s4 + $0x1c] sm:$0xf] }
 0x36a   : > { %6753 = vmatmul.mubr.msk.bf16.gmra.mrb[4].mxu1 %vm2803_vm5, %v8582_v39 }
 0x36b   : > { %6756 = vmatprep.mubr.msk.bf16.mxu1 %vm2803_vm5, %v8572_v34 }
 0x372   : > { %6757 = vmatmul.mubr.msk.bf16.gmra.mrb[8].mxu1 %vm2803_vm5, %v8629_v5 }
 0x373   : > { %6760 = vmatprep.mubr.msk.bf16.mxu1 %vm2803_vm5, %v8619_v27 }
 0x37a   : > { %6761 = vmatmul.mubr.msk.bf16.gmra.mrb[12].mxu1 %vm2803_vm5, %v8669_v13 }
 0x37b   : > { %6764 = vmatprep.mubr.msk.bf16.mxu1 %vm2803_vm5, %v8659_v33 }
 0x382   : > { %6765 = vmatmul.mubr.msk.bf16.gmra.mrb[16].mxu1 %vm2803_vm5, %v8709_v8 }
 0x383   : > { %6768 = vmatprep.mubr.msk.bf16.mxu1 %vm2803_vm5, %v8699_v50 }
 0x38a   : > { %6769 = vmatmul.mubr.msk.bf16.gmra.mrb[20].mxu1 %vm2803_vm5, %v8749_v48 }
 0x38b   : > { %6772 = vmatprep.mubr.msk.bf16.mxu1 %vm2803_vm5, %v8739_v22 }
 0x392   : > { %6773 = vmatmul.mubr.msk.bf16.gmra.mrb[24].mxu1 %vm2803_vm5, %v8787_v55 }
 0x393   : > { %6776 = vmatprep.mubr.msk.bf16.mxu1 %vm2803_vm5, %v8778_v28 }
 0x39a   : > { %6777 = vmatmul.mubr.msk.bf16.gmra.mrb[28].mxu1 %vm2803_vm5, %v8808_v63 }
 0x39b   : > { %6782 = vmatprep.mubr.msk.bf16.mxu1 %vm2803_vm5, %v3620_v26  ;;  %v8921_v26 = vsel %vm1160_vm4, %v3639_v51, %v3640_v1  ;;  %v3663_v51 = vrot.slane %v8808_v63, 1 }
 0x39d   : > { %v8975_v1 = vsel %vm1160_vm4, %v3663_v51, %v3664_v6  ;;  %v4749_v6 = vsel %vm3225_vm7, %v5917_v14, 0 }
 0x3a2   : > { %6783 = vmatmul.mubr.msk.bf16.vlgmr.msra.gmra.mrb[0].mxu1 %vm2803_vm5, %v8875_v53 }
 0x3a3   : > { %6815 = vmatpush3.bf16.msra.mxu1 %v3918_v59  ;;  %6786 = vmatprep.mubr.msk.bf16.mxu1 %vm2803_vm5, %v8883_v16  ;;  %v8940_v59 = vsel %vm1160_vm4, %v3648_v46, %v3649_v41 }
 0x3a4   : > { %7543 = vmatprep.subr.msk.bf16.mxu1 %vm3225_vm7, %v5866_v62 }
 0x3aa   : > { %6787 = vmatmul.mubr.msk.bf16.gmra.mrb[4].mxu1 %vm2803_vm5, %v8893_v12 }
 0x3ab   : > { %6790 = vmatprep.mubr.msk.bf16.mxu1 %vm2803_vm5, %v8898_v21 }
 0x3b2   : > { %6791 = vmatmul.mubr.msk.bf16.gmra.mrb[8].mxu1 %vm2803_vm5, %v8907_v43 }
 0x3b3   : > { %6794 = vmatprep.mubr.msk.bf16.mxu1 %vm2803_vm5, %v8912_v19 }
 0x3ba   : > { %6795 = vmatmul.mubr.msk.bf16.gmra.mrb[12].mxu1 %vm2803_vm5, %v8921_v26 }
 0x3bb   : > { %6798 = vmatprep.mubr.msk.bf16.mxu1 %vm2803_vm5, %v8926_v9 }
 0x3c2   : > { %6799 = vmatmul.mubr.msk.bf16.gmra.mrb[16].mxu1 %vm2803_vm5, %v8935_v2 }
 0x3c3   : > { %6802 = vmatprep.mubr.msk.bf16.mxu1 %vm2803_vm5, %v8940_v59 }
 0x3ca   : > { %6803 = vmatmul.mubr.msk.bf16.gmra.mrb[20].mxu1 %vm2803_vm5, %v8949_v30 }
 0x3cb   : > { %6806 = vmatprep.mubr.msk.bf16.mxu1 %vm2803_vm5, %v8954_v58 }
 0x3d2   : > { %6807 = vmatmul.mubr.msk.bf16.gmra.mrb[24].mxu1 %vm2803_vm5, %v8963_v37 }
 0x3d3   : > { %6810 = vmatprep.mubr.msk.bf16.mxu1 %vm2803_vm5, %v8968_v60 }
 0x3da   : > { %6811 = vmatmul.mubr.msk.bf16.gmra.mrb[28].mxu1 %vm2803_vm5, %v8975_v1 }
 0x3db   : > { %6816 = vmatprep.mubr.msk.bf16.mxu1 %vm2803_vm5, %v8545_v47  ;;  %v2941_v47 = vld [vmem:[#allocation3 + $0x188] sm:$0xff] }
 0x3dc   : > { %v9014_v62 = vpack.c.bf16 %v2941_v47, %v2940_v31 }
 0x3de   : > { %v4115_v15 = vshll.u32 %v9014_v62, 16  ;;  %v4113_v61 = vshrl.u32 %v9014_v62, 16 }
 0x3e0   : > { %v4117_v41 = vrot.slane %v4115_v15, 1 }
 0x3e2   : > { %6817 = vmatmul.mubr.msk.bf16.vlgmr.msra.gmra.mrb[0].mxu1 %vm2803_vm5, %v8540_v35  ;;  %v4118_v29 = vor.u32 %v4117_v41, %v4113_v61 }
 0x3e3   : > { %6849 = vmatpush3.bf16.msra.mxu1 %v4130_v42  ;;  %6820 = vmatprep.mubr.msk.bf16.mxu1 %vm2803_vm5, %v8582_v39  ;;  %v5934_v42 = vld [vmem:[%s9384_s4 + $0x20] sm:$0xf] }
 0x3e4   : > { %7544 = vmatprep.subr.msk.bf16.mxu1 %vm3225_vm7, %v5883_v20 }
 0x3ea   : > { %6821 = vmatmul.mubr.msk.bf16.gmra.mrb[4].mxu1 %vm2803_vm5, %v8572_v34 }
 0x3eb   : > { %6824 = vmatprep.mubr.msk.bf16.mxu1 %vm2803_vm5, %v8629_v5 }
 0x3f2   : > { %6825 = vmatmul.mubr.msk.bf16.gmra.mrb[8].mxu1 %vm2803_vm5, %v8619_v27 }
 0x3f3   : > { %6828 = vmatprep.mubr.msk.bf16.mxu1 %vm2803_vm5, %v8669_v13 }
 0x3fa   : > { %6829 = vmatmul.mubr.msk.bf16.gmra.mrb[12].mxu1 %vm2803_vm5, %v8659_v33 }
 0x3fb   : > { %6832 = vmatprep.mubr.msk.bf16.mxu1 %vm2803_vm5, %v8709_v8 }
 0x402   : > { %6833 = vmatmul.mubr.msk.bf16.gmra.mrb[16].mxu1 %vm2803_vm5, %v8699_v50 }
 0x403   : > { %6836 = vmatprep.mubr.msk.bf16.mxu1 %vm2803_vm5, %v8749_v48 }
 0x40a   : > { %6837 = vmatmul.mubr.msk.bf16.gmra.mrb[20].mxu1 %vm2803_vm5, %v8739_v22 }
 0x40b   : > { %6840 = vmatprep.mubr.msk.bf16.mxu1 %vm2803_vm5, %v8787_v55 }
 0x412   : > { %6841 = vmatmul.mubr.msk.bf16.gmra.mrb[24].mxu1 %vm2803_vm5, %v8778_v28 }
 0x413   : > { %6844 = vmatprep.mubr.msk.bf16.mxu1 %vm2803_vm5, %v8808_v63 }
 0x41a   : > { %6845 = vmatmul.mubr.msk.bf16.gmra.mrb[28].mxu1 %vm2803_vm5, %v9014_v62 }
 0x41b   : > { %6850 = vmatprep.mubr.msk.bf16.mxu1 %vm2803_vm5, %v8580_v36  ;;  %v2942_v36 = vld [vmem:[#allocation3 + $0x190] sm:$0x3] }
 0x41c   : > { %v2979_v46 = vpack.c.bf16 %v2942_v36, %v2942_v36 }
 0x41e   : > { %v4120_v38 = vshll.u32 %v2979_v46, 16  ;;  %v4328_v45 = vrot.slane %v2979_v46, 1 }
 0x420   : > { %v4122_v24 = vrot.slane %v4120_v38, 1 }
 0x422   : > { %6851 = vmatmul.mubr.msk.bf16.vlgmr.msra.gmra.mrb[0].mxu1 %vm2803_vm5, %v8597_v7  ;;  %v9056_v18 = vsel %vm524_vm3, %v4118_v29, %v4122_v24 }
 0x423   : > { %6883 = vmatpush3.bf16.msra.mxu1 %v4336_v56  ;;  %6854 = vmatprep.mubr.msk.bf16.mxu1 %vm2803_vm5, %v8627_v0 }
 0x424   : > { %7545 = vmatprep.subr.msk.bf16.mxu1 %vm3225_vm7, %v5900_v40 }
 0x42a   : > { %6855 = vmatmul.mubr.msk.bf16.gmra.mrb[4].mxu1 %vm2803_vm5, %v8639_v25 }
 0x42b   : > { %6858 = vmatprep.mubr.msk.bf16.mxu1 %vm2803_vm5, %v8667_v10 }
 0x432   : > { %6859 = vmatmul.mubr.msk.bf16.gmra.mrb[8].mxu1 %vm2803_vm5, %v8679_v4 }
 0x433   : > { %6862 = vmatprep.mubr.msk.bf16.mxu1 %vm2803_vm5, %v8707_v57 }
 0x43a   : > { %6863 = vmatmul.mubr.msk.bf16.gmra.mrb[12].mxu1 %vm2803_vm5, %v8719_v17 }
 0x43b   : > { %6866 = vmatprep.mubr.msk.bf16.mxu1 %vm2803_vm5, %v8747_v52 }
 0x442   : > { %6867 = vmatmul.mubr.msk.bf16.gmra.mrb[16].mxu1 %vm2803_vm5, %v8759_v3 }
 0x443   : > { %6870 = vmatprep.mubr.msk.bf16.mxu1 %vm2803_vm5, %v8785_v49 }
 0x44a   : > { %6871 = vmatmul.mubr.msk.bf16.gmra.mrb[20].mxu1 %vm2803_vm5, %v8794_v23 }
 0x44b   : > { %6874 = vmatprep.mubr.msk.bf16.mxu1 %vm2803_vm5, %v8806_v11 }
 0x452   : > { %6875 = vmatmul.mubr.msk.bf16.gmra.mrb[24].mxu1 %vm2803_vm5, %v8815_v44 }
 0x453   : > { %6878 = vmatprep.mubr.msk.bf16.mxu1 %vm2803_vm5, %v8823_v54 }
 0x45a   : > { %6879 = vmatmul.mubr.msk.bf16.gmra.mrb[28].mxu1 %vm2803_vm5, %v9056_v18 }
 0x45b   : > { %6884 = vmatprep.mubr.msk.bf16.mxu1 %vm2803_vm5, %v8875_v53  ;;  %v4327_v53 = vrot.slane %v9014_v62, 1 }
 0x45d   : > { %v9097_v51 = vsel %vm1160_vm4, %v4327_v53, %v4328_v45 }
 0x462   : > { %6885 = vmatmul.mubr.msk.bf16.vlgmr.msra.gmra.mrb[0].mxu1 %vm2803_vm5, %v8883_v16 }
 0x463   : > { %6917 = vmatpush3.bf16.msra.mxu1 %v4537_v32  ;;  %6888 = vmatprep.mubr.msk.bf16.mxu1 %vm2803_vm5, %v8893_v12 }
 0x464   : > { %7546 = vmatprep.subr.msk.bf16.mxu1 %vm3225_vm7, %v5917_v14 }
 0x46a   : > { %6889 = vmatmul.mubr.msk.bf16.gmra.mrb[4].mxu1 %vm2803_vm5, %v8898_v21 }
 0x46b   : > { %6892 = vmatprep.mubr.msk.bf16.mxu1 %vm2803_vm5, %v8907_v43 }
 0x472   : > { %6893 = vmatmul.mubr.msk.bf16.gmra.mrb[8].mxu1 %vm2803_vm5, %v8912_v19 }
 0x473   : > { %6896 = vmatprep.mubr.msk.bf16.mxu1 %vm2803_vm5, %v8921_v26 }
 0x47a   : > { %6897 = vmatmul.mubr.msk.bf16.gmra.mrb[12].mxu1 %vm2803_vm5, %v8926_v9 }
 0x47b   : > { %6900 = vmatprep.mubr.msk.bf16.mxu1 %vm2803_vm5, %v8935_v2 }
 0x482   : > { %6901 = vmatmul.mubr.msk.bf16.gmra.mrb[16].mxu1 %vm2803_vm5, %v8940_v59 }
 0x483   : > { %6904 = vmatprep.mubr.msk.bf16.mxu1 %vm2803_vm5, %v8949_v30 }
 0x48a   : > { %6905 = vmatmul.mubr.msk.bf16.gmra.mrb[20].mxu1 %vm2803_vm5, %v8954_v58 }
 0x48b   : > { %6908 = vmatprep.mubr.msk.bf16.mxu1 %vm2803_vm5, %v8963_v37 }
 0x492   : > { %6909 = vmatmul.mubr.msk.bf16.gmra.mrb[24].mxu1 %vm2803_vm5, %v8968_v60 }
 0x493   : > { %6912 = vmatprep.mubr.msk.bf16.mxu1 %vm2803_vm5, %v8975_v1 }
 0x49a   : > { %6913 = vmatmul.mubr.msk.bf16.gmra.mrb[28].mxu1 %vm2803_vm5, %v9097_v51 }
 0x49b   : > { %6918 = vmatprep.mubr.msk.bf16.mxu1 %vm2803_vm5, %v8540_v35  ;;  %v2943_v35 = vld [vmem:[#allocation3 + $0x198] sm:$0xff] }
 0x4a2   : > { %6919 = vmatmul.mubr.msk.bf16.vlgmr.msra.gmra.mrb[0].mxu1 %vm2803_vm5, %v8582_v39 }
 0x4a3   : > { %6951 = vmatpush3.bf16.msra.mxu1 %v4749_v6  ;;  %6922 = vmatprep.mubr.msk.bf16.mxu1 %vm2803_vm5, %v8572_v34  ;;  %v2944_v34 = vld [vmem:[#allocation3 + $0x1a0] sm:$0xff] }
 0x4a4   : > { %7547 = vmatprep.subr.msk.bf16.mxu1 %vm3225_vm7, %v5934_v42  ;;  %v2980_v39 = vpack.c.bf16 %v2944_v34, %v2943_v35 }
 0x4aa   : > { %6923 = vmatmul.mubr.msk.bf16.gmra.mrb[4].mxu1 %vm2803_vm5, %v8629_v5  ;;  %v4734_v5 = vshll.u32 %v2980_v39, 16 }
 0x4ab   : > { %6926 = vmatprep.mubr.msk.bf16.mxu1 %vm2803_vm5, %v8619_v27  ;;  %v4955_v27 = vsel %vm3225_vm7, %v5934_v42, 0 }
 0x4b2   : > { %6927 = vmatmul.mubr.msk.bf16.gmra.mrb[8].mxu1 %vm2803_vm5, %v8669_v13 }
 0x4b3   : > { %6930 = vmatprep.mubr.msk.bf16.mxu1 %vm2803_vm5, %v8659_v33  ;;  %v4736_v33 = vrot.slane %v4734_v5, 1 }
 0x4ba   : > { %6931 = vmatmul.mubr.msk.bf16.gmra.mrb[12].mxu1 %vm2803_vm5, %v8709_v8 }
 0x4bb   : > { %6934 = vmatprep.mubr.msk.bf16.mxu1 %vm2803_vm5, %v8699_v50 }
 0x4c2   : > { %6935 = vmatmul.mubr.msk.bf16.gmra.mrb[16].mxu1 %vm2803_vm5, %v8749_v48 }
 0x4c3   : > { %6938 = vmatprep.mubr.msk.bf16.mxu1 %vm2803_vm5, %v8739_v22  ;;  %v5261_v22 = vpop.permute.xlu0 %5260 }
 0x4c7   : > { %v5263_v48 = vpop.permute.xlu0 %5262 }
 0x4ca   : > { %6939 = vmatmul.mubr.msk.bf16.gmra.mrb[20].mxu1 %vm2803_vm5, %v8787_v55 }
 0x4cb   : > { %6942 = vmatprep.mubr.msk.bf16.mxu1 %vm2803_vm5, %v8778_v28  ;;  %v5273_v28 = vpop.permute.xlu0 %5272 }
 0x4cf   : > { %v5269_v55 = vpop.permute.xlu0 %5268 }
 0x4d2   : > { %6943 = vmatmul.mubr.msk.bf16.gmra.mrb[24].mxu1 %vm2803_vm5, %v8808_v63 }
 0x4d3   : > { %6946 = vmatprep.mubr.msk.bf16.mxu1 %vm2803_vm5, %v9014_v62 }
 0x4da   : > { %6947 = vmatmul.mubr.msk.bf16.gmra.mrb[28].mxu1 %vm2803_vm5, %v2980_v39 }
 0x4db   : > { %6952 = vmatprep.mubr.msk.bf16.mxu1 %vm2803_vm5, %v8597_v7  ;;  %v2945_v7 = vld [vmem:[#allocation3 + $0x1a8] sm:$0x3] }
 0x4e2   : > { %6953 = vmatmul.mubr.msk.bf16.vlgmr.msra.gmra.mrb[0].mxu1 %vm2803_vm5, %v8627_v0  ;;  %v2981_v0 = vpack.c.bf16 %v2945_v7, %v2945_v7 }
 0x4e3   : > { %6985 = vmatpush3.bf16.msra.mxu1 %v4955_v27  ;;  %6956 = vmatprep.mubr.msk.bf16.mxu1 %vm2803_vm5, %v8639_v25  ;;  %v4732_v25 = vshrl.u32 %v2980_v39, 16 }
 0x4e4   : > { %v4947_v8 = vrot.slane %v2981_v0, 1 }
 0x4e5   : > { %v4737_v13 = vor.u32 %v4736_v33, %v4732_v25 }
 0x4ea   : > { %6957 = vmatmul.mubr.msk.bf16.gmra.mrb[4].mxu1 %vm2803_vm5, %v8667_v10  ;;  %v4739_v10 = vshll.u32 %v2981_v0, 16 }
 0x4eb   : > { %6960 = vmatprep.mubr.msk.bf16.mxu1 %vm2803_vm5, %v8679_v4 }
 0x4ec   : > { %v4741_v4 = vrot.slane %v4739_v10, 1 }
 0x4ee   : > { %v4742_v50 = vsel %vm524_vm3, %v4737_v13, %v4741_v4 }
 0x4f2   : > { %6961 = vmatmul.mubr.msk.bf16.gmra.mrb[8].mxu1 %vm2803_vm5, %v8707_v57  ;;  %v4946_v57 = vrot.slane %v2980_v39, 1 }
 0x4f3   : > { %6964 = vmatprep.mubr.msk.bf16.mxu1 %vm2803_vm5, %v8719_v17 }
 0x4f4   : > { %v4948_v17 = vsel %vm1160_vm4, %v4946_v57, %v4947_v8 }
 0x4fa   : > { %6965 = vmatmul.mubr.msk.bf16.gmra.mrb[12].mxu1 %vm2803_vm5, %v8747_v52  ;;  %v5265_v52 = vpop.permute.xlu1 %5264 }
 0x4fb   : > { %6968 = vmatprep.mubr.msk.bf16.mxu1 %vm2803_vm5, %v8759_v3 }
 0x4fe   : > { %v5267_v3 = vpop.permute.xlu1 %5266 }
 0x502   : > { %6969 = vmatmul.mubr.msk.bf16.gmra.mrb[16].mxu1 %vm2803_vm5, %v8785_v49  ;;  %v5275_v49 = vpop.permute.xlu1 %5274 }
 0x503   : > { %6972 = vmatprep.mubr.msk.bf16.mxu1 %vm2803_vm5, %v8794_v23 }
 0x506   : > { %v5271_v23 = vpop.permute.xlu1 %5270 }
 0x50a   : > { %6973 = vmatmul.mubr.msk.bf16.gmra.mrb[20].mxu1 %vm2803_vm5, %v8806_v11  ;;  %v9202_v11 = vpop.permute.xlu0 %5280  ;;  %v9204_v63 = vpop.permute.xlu1 %5282 }
 0x50b   : > { %6976 = vmatprep.mubr.msk.bf16.mxu1 %vm2803_vm5, %v8815_v44  ;;  %v9209_v44 = vld [vmem:[%s9385_s5] ss:$0 sm:$0xff] }
 0x512   : > { %6977 = vmatmul.mubr.msk.bf16.gmra.mrb[24].mxu1 %vm2803_vm5, %v8823_v54  ;;  %v9211_v54 = vpop.permute.xlu0 %5276 }
 0x513   : > { %6980 = vmatprep.mubr.msk.bf16.mxu1 %vm2803_vm5, %v9056_v18 }
 0x516   : > { %v9227_v20 = vpop.permute.xlu0 %5288 }
 0x51a   : > { %6981 = vmatmul.mubr.msk.bf16.gmra.mrb[28].mxu1 %vm2803_vm5, %v4742_v50  ;;  %v9245_v42 = vpop.permute.xlu0 %5284 }
 0x51b   : > { %6986 = vmatprep.mubr.msk.bf16.mxu1 %vm2803_vm5, %v8883_v16 }
 0x522   : > { %6987 = vmatmul.mubr.msk.bf16.vlgmr.msra.gmra.mrb[0].mxu1 %vm2803_vm5, %v8893_v12  ;;  %v9216_v12 = vld [vmem:[%s9386_s6] ss:$0 sm:$0xff] }
 0x523   : > { %6990 = vmatprep.mubr.msk.bf16.mxu1 %vm2803_vm5, %v8898_v21 }
 0x52a   : > { %6991 = vmatmul.mubr.msk.bf16.gmra.mrb[4].mxu1 %vm2803_vm5, %v8907_v43 }
 0x52b   : > { %6994 = vmatprep.mubr.msk.bf16.mxu1 %vm2803_vm5, %v8912_v19  ;;  %v9219_v19 = vpop.permute.xlu1 %5278 }
 0x52f   : > { %v9237_v40 = vpop.permute.xlu1 %5290 }
 0x532   : > { %6995 = vmatmul.mubr.msk.bf16.gmra.mrb[8].mxu1 %vm2803_vm5, %v8921_v26 }
 0x533   : > { %6998 = vmatprep.mubr.msk.bf16.mxu1 %vm2803_vm5, %v8926_v9  ;;  %v9254_v0 = vpop.permute.xlu1 %5286 }
 0x53a   : > { %6999 = vmatmul.mubr.msk.bf16.gmra.mrb[12].mxu1 %vm2803_vm5, %v8935_v2 }
 0x53b   : > { %7002 = vmatprep.mubr.msk.bf16.mxu1 %vm2803_vm5, %v8940_v59 }
 0x542   : > { %7003 = vmatmul.mubr.msk.bf16.gmra.mrb[16].mxu1 %vm2803_vm5, %v8949_v30 }
 0x543   : > { %7006 = vmatprep.mubr.msk.bf16.mxu1 %vm2803_vm5, %v8954_v58 }
 0x54a   : > { %7007 = vmatmul.mubr.msk.bf16.gmra.mrb[20].mxu1 %vm2803_vm5, %v8963_v37 }
 0x54b   : > { %7010 = vmatprep.mubr.msk.bf16.mxu1 %vm2803_vm5, %v8968_v60 }
 0x552   : > { %7011 = vmatmul.mubr.msk.bf16.gmra.mrb[24].mxu1 %vm2803_vm5, %v8975_v1 }
 0x553   : > { %7014 = vmatprep.mubr.msk.bf16.mxu1 %vm2803_vm5, %v9097_v51 }
 0x55a   : > { %7015 = vmatmul.mubr.msk.bf16.gmra.mrb[28].mxu1 %vm2803_vm5, %v4948_v17 }
 0x5f5   : > { %v6988_v16 = vpop.f32.mrb[0].mxu1 }
 0x5f6   : > { %v5159_v21 = vmul.f32 %v6988_v16, %v9209_v44  ;;  %v4991_v43 = vpop.f32.mrb[1].mxu1 }
 0x5f7   : > { %v5157_v26 = vmul.f32 %v9209_v44, %v4991_v43  ;;  %v6989_v9 = vpop.f32.mrb[2].mxu1  ;;  %v9267_v43 = vpop.permute.xlu1 %5298 }
 0x5f8   : > { %v5198_v2 = vadd.f32 %v9216_v12, %v5159_v21  ;;  %v5160_v59 = vmul.f32 %v6989_v9, %v9209_v44  ;;  %v4994_v30 = vpop.f32.mrb[3].mxu1 }
 0x5f9   : > { %v5196_v58 = vadd.f32 %v9216_v12, %v5157_v26  ;;  %v5158_v37 = vmul.f32 %v9209_v44, %v4994_v30 }
 0x5fa   : > { %v5358_v60 = vadd.f32 %v5265_v52, %v5198_v2  ;;  %v5199_v1 = vadd.f32 %v9216_v12, %v5160_v59  ;;  %v9260_v52 = vpop.permute.xlu0 %5296 }
 0x5fb   : > { %v5356_v47 = vadd.f32 %v5261_v22, %v5196_v58  ;;  %v5197_v31 = vadd.f32 %v9216_v12, %v5158_v37 }
 0x5fc   : > { %v5390_v62 = vmax.f32 %v5358_v60, 0.0  ;;  %v5359_v56 = vadd.f32 %v5267_v3, %v5199_v1 }
 0x5fd   : > { %v5388_v36 = vmax.f32 %v5356_v47, 0.0  ;;  %v5357_v15 = vadd.f32 %v5263_v48, %v5197_v31  ;;  %v6992_v46 = vpop.f32.mrb[4].mxu1 }
 0x5fe   : > { %v5991_v41 = vpack.c.bf16 %v5390_v62, %v5390_v62  ;;  %v5391_v61 = vmax.f32 %v5359_v56, 0.0  ;;  %v5163_v38 = vmul.f32 %v6992_v46, %v9209_v44  ;;  %v5007_v29 = vpop.f32.mrb[5].mxu1  ;;  %v5293_v47 = vpop.permute.xlu0 %5292 }
 0x5ff   : > { %v5989_v24 = vpack.c.bf16 %v5388_v36, %v5388_v36  ;;  %v5389_v18 = vmax.f32 %v5357_v15, 0.0  ;;  %v5161_v32 = vmul.f32 %v9209_v44, %v5007_v29  ;;  %v6993_v14 = vpop.f32.mrb[6].mxu1 }
 0x600   : > { %5551 = vst.msk [vmem:[%s9235_s14 + $0x8] sm:$0xf] %vm5548_vm8, %v5991_v41  ;;  %v5992_v53 = vpack.c.bf16 %v5391_v61, %v5391_v61  ;;  %v5202_v45 = vadd.f32 %v9216_v12, %v5163_v38  ;;  %v5164_v51 = vmul.f32 %v6993_v14, %v9209_v44  ;;  %v5010_v6 = vpop.f32.mrb[7].mxu1  ;;  %v5295_v41 = vpop.permute.xlu1 %5294 }
 0x601   : > { %5549 = vst.msk [vmem:[%s9235_s14] sm:$0xf] %vm5548_vm8, %v5989_v24  ;;  %v5990_v35 = vpack.c.bf16 %v5389_v18, %v5389_v18  ;;  %v5200_v34 = vadd.f32 %v9216_v12, %v5161_v32  ;;  %v5162_v39 = vmul.f32 %v9209_v44, %v5010_v6 }
 0x602   : > { %5552 = vst.msk [vmem:[%s9235_s14 + $0xc] sm:$0xf] %vm5548_vm8, %v5992_v53  ;;  %v5362_v27 = vadd.f32 %v5273_v28, %v5202_v45  ;;  %v5203_v7 = vadd.f32 %v9216_v12, %v5164_v51  ;;  %v5305_v6 = vpop.permute.xlu0 %5304 }
 0x603   : > { %5550 = vst.msk [vmem:[%s9235_s14 + $0x4] sm:$0xf] %vm5548_vm8, %v5990_v35  ;;  %v5360_v5 = vadd.f32 %v5269_v55, %v5200_v34  ;;  %v5201_v25 = vadd.f32 %v9216_v12, %v5162_v39 }
 0x604   : > { %v5394_v33 = vmax.f32 %v5362_v27, 0.0  ;;  %v5363_v10 = vadd.f32 %v5275_v49, %v5203_v7  ;;  %v5307_v7 = vpop.permute.xlu1 %5306 }
 0x605   : > { %v5392_v13 = vmax.f32 %v5360_v5, 0.0  ;;  %v5361_v4 = vadd.f32 %v5271_v23, %v5201_v25  ;;  %v6996_v50 = vpop.f32.mrb[8].mxu1 }
 0x606   : > { %v5995_v57 = vpack.c.bf16 %v5394_v33, %v5394_v33  ;;  %v5395_v8 = vmax.f32 %v5363_v10, 0.0  ;;  %v5167_v17 = vmul.f32 %v6996_v50, %v9209_v44  ;;  %v5023_v22 = vpop.f32.mrb[9].mxu1 }
 0x607   : > { %v5993_v48 = vpack.c.bf16 %v5392_v13, %v5392_v13  ;;  %v5393_v3 = vmax.f32 %v5361_v4, 0.0  ;;  %v5165_v28 = vmul.f32 %v9209_v44, %v5023_v22  ;;  %v6997_v55 = vpop.f32.mrb[10].mxu1 }
 0x608   : > { %5555 = vst.msk [vmem:[%s9235_s14 + $0x18] sm:$0xf] %vm5548_vm8, %v5995_v57  ;;  %v5996_v49 = vpack.c.bf16 %v5395_v8, %v5395_v8  ;;  %v5206_v23 = vadd.f32 %v9216_v12, %v5167_v17  ;;  %v5168_v16 = vmul.f32 %v6997_v55, %v9209_v44  ;;  %v5026_v21 = vpop.f32.mrb[11].mxu1 }
 0x609   : > { %5553 = vst.msk [vmem:[%s9235_s14 + $0x10] sm:$0xf] %vm5548_vm8, %v5993_v48  ;;  %v5994_v26 = vpack.c.bf16 %v5393_v3, %v5393_v3  ;;  %v5204_v9 = vadd.f32 %v9216_v12, %v5165_v28  ;;  %v5166_v2 = vmul.f32 %v9209_v44, %v5026_v21  ;;  %v5301_v48 = vpop.permute.xlu0 %5300 }
 0x60a   : > { %5556 = vst.msk [vmem:[%s9235_s14 + $0x1c] sm:$0xf] %vm5548_vm8, %v5996_v49  ;;  %v5366_v59 = vadd.f32 %v9202_v11, %v5206_v23  ;;  %v5207_v30 = vadd.f32 %v9216_v12, %v5168_v16  ;;  %v5303_v16 = vpop.permute.xlu1 %5302 }
 0x60b   : > { %5554 = vst.msk [vmem:[%s9235_s14 + $0x14] sm:$0xf] %vm5548_vm8, %v5994_v26  ;;  %v5364_v58 = vadd.f32 %v9211_v54, %v5204_v9  ;;  %v5205_v37 = vadd.f32 %v9216_v12, %v5166_v2 }
 0x60c   : > { %v5398_v60 = vmax.f32 %v5366_v59, 0.0  ;;  %v5367_v1 = vadd.f32 %v9204_v63, %v5207_v30 }
 0x60d   : > { %v5396_v31 = vmax.f32 %v5364_v58, 0.0  ;;  %v5365_v62 = vadd.f32 %v9219_v19, %v5205_v37  ;;  %v7000_v56 = vpop.f32.mrb[12].mxu1 }
 0x60e   : > { %v5999_v36 = vpack.c.bf16 %v5398_v60, %v5398_v60  ;;  %v5399_v11 = vmax.f32 %v5367_v1, 0.0  ;;  %v5171_v15 = vmul.f32 %v7000_v56, %v9209_v44  ;;  %v5039_v46 = vpop.f32.mrb[13].mxu1 }
 0x60f   : > { %v5997_v54 = vpack.c.bf16 %v5396_v31, %v5396_v31  ;;  %v5397_v61 = vmax.f32 %v5365_v62, 0.0  ;;  %v5169_v38 = vmul.f32 %v9209_v44, %v5039_v46  ;;  %v7001_v29 = vpop.f32.mrb[14].mxu1  ;;  %v5313_v31 = vpop.permute.xlu0 %5312 }
 0x610   : > { %5559 = vst.msk [vmem:[%s9235_s14 + $0x28] sm:$0xf] %vm5548_vm8, %v5999_v36  ;;  %v6000_v63 = vpack.c.bf16 %v5399_v11, %v5399_v11  ;;  %v5210_v19 = vadd.f32 %v9216_v12, %v5171_v15  ;;  %v5172_v24 = vmul.f32 %v7001_v29, %v9209_v44  ;;  %v5042_v18 = vpop.f32.mrb[15].mxu1 }
 0x611   : > { %5557 = vst.msk [vmem:[%s9235_s14 + $0x20] sm:$0xf] %vm5548_vm8, %v5997_v54  ;;  %v5998_v32 = vpack.c.bf16 %v5397_v61, %v5397_v61  ;;  %v5208_v14 = vadd.f32 %v9216_v12, %v5169_v38  ;;  %v5170_v53 = vmul.f32 %v9209_v44, %v5042_v18 }
 0x612   : > { %5560 = vst.msk [vmem:[%s9235_s14 + $0x2c] sm:$0xf] %vm5548_vm8, %v6000_v63  ;;  %v5370_v45 = vadd.f32 %v9227_v20, %v5210_v19  ;;  %v5211_v51 = vadd.f32 %v9216_v12, %v5172_v24 }
 0x613   : > { %5558 = vst.msk [vmem:[%s9235_s14 + $0x24] sm:$0xf] %vm5548_vm8, %v5998_v32  ;;  %v5368_v35 = vadd.f32 %v9245_v42, %v5208_v14  ;;  %v5209_v34 = vadd.f32 %v9216_v12, %v5170_v53  ;;  %v5309_v14 = vpop.permute.xlu0 %5308 }
 0x614   : > { %v5402_v39 = vmax.f32 %v5370_v45, 0.0  ;;  %v5371_v27 = vadd.f32 %v9237_v40, %v5211_v51 }
 0x615   : > { %v5400_v5 = vmax.f32 %v5368_v35, 0.0  ;;  %v5369_v25 = vadd.f32 %v9254_v0, %v5209_v34  ;;  %v7004_v33 = vpop.f32.mrb[16].mxu1 }
 0x616   : > { %v6003_v20 = vpack.c.bf16 %v5402_v39, %v5402_v39  ;;  %v5403_v10 = vmax.f32 %v5371_v27, 0.0  ;;  %v5175_v13 = vmul.f32 %v7004_v33, %v9209_v44  ;;  %v5055_v4 = vpop.f32.mrb[17].mxu1 }
 0x617   : > { %v6001_v50 = vpack.c.bf16 %v5400_v5, %v5400_v5  ;;  %v5401_v42 = vmax.f32 %v5369_v25, 0.0  ;;  %v5173_v57 = vmul.f32 %v9209_v44, %v5055_v4  ;;  %v7005_v8 = vpop.f32.mrb[18].mxu1 }
 0x618   : > { %5563 = vst.msk [vmem:[%s9235_s14 + $0x38] sm:$0xf] %vm5548_vm8, %v6003_v20  ;;  %v6004_v40 = vpack.c.bf16 %v5403_v10, %v5403_v10  ;;  %v5214_v17 = vadd.f32 %v9216_v12, %v5175_v13  ;;  %v5176_v0 = vmul.f32 %v7005_v8, %v9209_v44  ;;  %v5058_v22 = vpop.f32.mrb[19].mxu1 }
 0x619   : > { %5561 = vst.msk [vmem:[%s9235_s14 + $0x30] sm:$0xf] %vm5548_vm8, %v6001_v50  ;;  %v6002_v3 = vpack.c.bf16 %v5401_v42, %v5401_v42  ;;  %v5212_v28 = vadd.f32 %v9216_v12, %v5173_v57  ;;  %v5174_v55 = vmul.f32 %v9209_v44, %v5058_v22 }
 0x61a   : > { %5564 = vst.msk [vmem:[%s9235_s14 + $0x3c] sm:$0xf] %vm5548_vm8, %v6004_v40  ;;  %v5374_v49 = vadd.f32 %v9260_v52, %v5214_v17  ;;  %v5215_v23 = vadd.f32 %v9216_v12, %v5176_v0  ;;  %v5317_v17 = vpop.permute.xlu0 %5316 }
 0x61b   : > { %5562 = vst.msk [vmem:[%s9235_s14 + $0x34] sm:$0xf] %vm5548_vm8, %v6002_v3  ;;  %v5372_v21 = vadd.f32 %v5293_v47, %v5212_v28  ;;  %v5213_v26 = vadd.f32 %v9216_v12, %v5174_v55 }
 0x61c   : > { %v5406_v9 = vmax.f32 %v5374_v49, 0.0  ;;  %v5375_v2 = vadd.f32 %v9267_v43, %v5215_v23 }
 0x61d   : > { %v5404_v59 = vmax.f32 %v5372_v21, 0.0  ;;  %v5373_v30 = vadd.f32 %v5295_v41, %v5213_v26  ;;  %v7008_v58 = vpop.f32.mrb[20].mxu1  ;;  %v5315_v41 = vpop.permute.xlu1 %5314 }
 0x61e   : > { %v6007_v37 = vpack.c.bf16 %v5406_v9, %v5406_v9  ;;  %v5407_v60 = vmax.f32 %v5375_v2, 0.0  ;;  %v5179_v52 = vmul.f32 %v7008_v58, %v9209_v44  ;;  %v5071_v1 = vpop.f32.mrb[21].mxu1 }
 0x61f   : > { %v6005_v62 = vpack.c.bf16 %v5404_v59, %v5404_v59  ;;  %v5405_v56 = vmax.f32 %v5373_v30, 0.0  ;;  %v5177_v47 = vmul.f32 %v9209_v44, %v5071_v1  ;;  %v7009_v36 = vpop.f32.mrb[22].mxu1 }
 0x620   : > { %5567 = vst.msk [vmem:[%s9235_s14 + $0x48] sm:$0xf] %vm5548_vm8, %v6007_v37  ;;  %v6008_v43 = vpack.c.bf16 %v5407_v60, %v5407_v60  ;;  %v5218_v11 = vadd.f32 %v9216_v12, %v5179_v52  ;;  %v5180_v15 = vmul.f32 %v7009_v36, %v9209_v44  ;;  %v5074_v46 = vpop.f32.mrb[23].mxu1 }
 0x621   : > { %5565 = vst.msk [vmem:[%s9235_s14 + $0x40] sm:$0xf] %vm5548_vm8, %v6005_v62  ;;  %v6006_v54 = vpack.c.bf16 %v5405_v56, %v5405_v56  ;;  %v5216_v61 = vadd.f32 %v9216_v12, %v5177_v47  ;;  %v5178_v38 = vmul.f32 %v9209_v44, %v5074_v46  ;;  %v5311_v27 = vpop.permute.xlu1 %5310 }
 0x622   : > { %5568 = vst.msk [vmem:[%s9235_s14 + $0x4c] sm:$0xf] %vm5548_vm8, %v6008_v43  ;;  %v5378_v29 = vadd.f32 %v5305_v6, %v5218_v11  ;;  %v5219_v63 = vadd.f32 %v9216_v12, %v5180_v15 }
 0x623   : > { %5566 = vst.msk [vmem:[%s9235_s14 + $0x44] sm:$0xf] %vm5548_vm8, %v6006_v54  ;;  %v5376_v19 = vadd.f32 %v5301_v48, %v5216_v61  ;;  %v5217_v24 = vadd.f32 %v9216_v12, %v5178_v38 }
 0x624   : > { %v5410_v18 = vmax.f32 %v5378_v29, 0.0  ;;  %v5379_v32 = vadd.f32 %v5307_v7, %v5219_v63 }
 0x625   : > { %v5408_v53 = vmax.f32 %v5376_v19, 0.0  ;;  %v5377_v45 = vadd.f32 %v5303_v16, %v5217_v24  ;;  %v7012_v51 = vpop.f32.mrb[24].mxu1  ;;  %v5319_v28 = vpop.permute.xlu1 %5318 }
 0x626   : > { %v6011_v35 = vpack.c.bf16 %v5410_v18, %v5410_v18  ;;  %v5411_v34 = vmax.f32 %v5379_v32, 0.0  ;;  %v5183_v39 = vmul.f32 %v7012_v51, %v9209_v44  ;;  %v5087_v6 = vpop.f32.mrb[25].mxu1 }
 0x627   : > { %v6009_v5 = vpack.c.bf16 %v5408_v53, %v5408_v53  ;;  %v5409_v25 = vmax.f32 %v5377_v45, 0.0  ;;  %v5181_v33 = vmul.f32 %v9209_v44, %v5087_v6  ;;  %v7013_v20 = vpop.f32.mrb[26].mxu1 }
 0x628   : > { %5571 = vst.msk [vmem:[%s9235_s14 + $0x58] sm:$0xf] %vm5548_vm8, %v6011_v35  ;;  %v6012_v7 = vpack.c.bf16 %v5411_v34, %v5411_v34  ;;  %v5222_v10 = vadd.f32 %v9216_v12, %v5183_v39  ;;  %v5184_v13 = vmul.f32 %v7013_v20, %v9209_v44  ;;  %v5090_v4 = vpop.f32.mrb[27].mxu1 }
 0x629   : > { %5569 = vst.msk [vmem:[%s9235_s14 + $0x50] sm:$0xf] %vm5548_vm8, %v6009_v5  ;;  %v6010_v50 = vpack.c.bf16 %v5409_v25, %v5409_v25  ;;  %v5220_v42 = vadd.f32 %v9216_v12, %v5181_v33  ;;  %v5182_v57 = vmul.f32 %v9209_v44, %v5090_v4  ;;  %v5323_v11 = vpop.permute.xlu1 %5322 }
 0x62a   : > { %5572 = vst.msk [vmem:[%s9235_s14 + $0x5c] sm:$0xf] %vm5548_vm8, %v6012_v7  ;;  %v5382_v8 = vadd.f32 %v5313_v31, %v5222_v10  ;;  %v5223_v40 = vadd.f32 %v9216_v12, %v5184_v13  ;;  %v5321_v31 = vpop.permute.xlu0 %5320 }
 0x62b   : > { %5570 = vst.msk [vmem:[%s9235_s14 + $0x54] sm:$0xf] %vm5548_vm8, %v6010_v50  ;;  %v5380_v0 = vadd.f32 %v5309_v14, %v5220_v42  ;;  %v5221_v22 = vadd.f32 %v9216_v12, %v5182_v57 }
 0x62c   : > { %v5414_v48 = vmax.f32 %v5382_v8, 0.0  ;;  %v5383_v3 = vadd.f32 %v5315_v41, %v5223_v40 }
 0x62d   : > { %v5412_v55 = vmax.f32 %v5380_v0, 0.0  ;;  %v5381_v49 = vadd.f32 %v5311_v27, %v5221_v22  ;;  %v7016_v23 = vpop.f32.mrb[28].mxu1 }
 0x62e   : > { %v6015_v16 = vpack.c.bf16 %v5414_v48, %v5414_v48  ;;  %v5415_v21 = vmax.f32 %v5383_v3, 0.0  ;;  %v5187_v26 = vmul.f32 %v7016_v23, %v9209_v44  ;;  %v5103_v9 = vpop.f32.mrb[29].mxu1 }
 0x62f   : > { %v6013_v2 = vpack.c.bf16 %v5412_v55, %v5412_v55  ;;  %v5413_v59 = vmax.f32 %v5381_v49, 0.0  ;;  %v5185_v30 = vmul.f32 %v9209_v44, %v5103_v9  ;;  %v7017_v58 = vpop.f32.mrb[30].mxu1 }
 0x630   : > { %5575 = vst.msk [vmem:[%s9235_s14 + $0x68] sm:$0xf] %vm5548_vm8, %v6015_v16  ;;  %v6016_v37 = vpack.c.bf16 %v5415_v21, %v5415_v21  ;;  %v5226_v60 = vadd.f32 %v9216_v12, %v5187_v26  ;;  %v5188_v52 = vmul.f32 %v7017_v58, %v9209_v44  ;;  %v5106_v1 = vpop.f32.mrb[31].mxu1 }
 0x631   : > { %5573 = vst.msk [vmem:[%s9235_s14 + $0x60] sm:$0xf] %vm5548_vm8, %v6013_v2  ;;  %v6014_v62 = vpack.c.bf16 %v5413_v59, %v5413_v59  ;;  %v5224_v56 = vadd.f32 %v9216_v12, %v5185_v30  ;;  %v5186_v47 = vmul.f32 %v9209_v44, %v5106_v1 }
 0x632   : > { %5576 = vst.msk [vmem:[%s9235_s14 + $0x6c] sm:$0xf] %vm5548_vm8, %v6016_v37  ;;  %v5386_v36 = vadd.f32 %v5321_v31, %v5226_v60  ;;  %v5227_v43 = vadd.f32 %v9216_v12, %v5188_v52 }
 0x633   : > { %5574 = vst.msk [vmem:[%s9235_s14 + $0x64] sm:$0xf] %vm5548_vm8, %v6014_v62  ;;  %v5384_v15 = vadd.f32 %v5317_v17, %v5224_v56  ;;  %v5225_v46 = vadd.f32 %v9216_v12, %v5186_v47 }
 0x634   : > { %v5418_v41 = vmax.f32 %v5386_v36, 0.0  ;;  %v5387_v54 = vadd.f32 %v5323_v11, %v5227_v43 }
 0x635   : > { %v5416_v61 = vmax.f32 %v5384_v15, 0.0  ;;  %v5385_v38 = vadd.f32 %v5319_v28, %v5225_v46 }
 0x636   : > { %v6019_v44 = vpack.c.bf16 %v5418_v41, %v5418_v41  ;;  %v5419_v29 = vmax.f32 %v5387_v54, 0.0 }
 0x637   : > { %v6017_v63 = vpack.c.bf16 %v5416_v61, %v5416_v61  ;;  %v5417_v19 = vmax.f32 %v5385_v38, 0.0 }
 0x638   : > { %5579 = vst.msk [vmem:[%s9235_s14 + $0x78] sm:$0xf] %vm5548_vm8, %v6019_v44  ;;  %v6020_v24 = vpack.c.bf16 %v5419_v29, %v5419_v29 }
 0x639   : > { %5577 = vst.msk [vmem:[%s9235_s14 + $0x70] sm:$0xf] %vm5548_vm8, %v6017_v63  ;;  %v6018_v18 = vpack.c.bf16 %v5417_v19, %v5417_v19 }
 0x63a   : > { %5580 = vst.msk [vmem:[%s9235_s14 + $0x7c] sm:$0xf] %vm5548_vm8, %v6020_v24 }
 0x63b   : > { %5578 = vst.msk [vmem:[%s9235_s14 + $0x74] sm:$0xf] %vm5548_vm8, %v6018_v18 }
 0x63c PF: > { %s17_s24 = sadd.s32 1, %s7564_s24  }
 0x63d   : > { %p14_p4 = scmp.ge.s32.totalorder %s17_s24, 4  }
 0x63f   :  { %16 = sbr.rel (!%p14_p4) target bundleno = 1 (0x1), region = 96 }

</bundles_post_ra>
